<compile_context>
chip_gen: v5e
topology: v5e:2x2
jax: 0.10.0
libtpu: 0.0.40
codegen_flags: <defaults>
</compile_context>

<pallas_src>
import functools

import jax
import jax.numpy as jnp
import numpy as np
from jax.experimental import pallas as pl
from jax.experimental.pallas import tpu as pltpu

LANE = 128
SUB = 16  # batch-tile alignment (covers f32 (8,...) and bf16 (16,...) sublane packing)


def _round_up(x, m):
    return ((x + m - 1) // m) * m


def _device_kind():
    try:
        return jax.devices()[0].device_kind.lower().replace(" ", "")
    except Exception:
        return ""


def _tpu_generation():
    kind = _device_kind()
    for g in (7, 6, 5, 4, 3, 2):
        if (f"v{g}" in kind) or (f"tpu{g}" in kind):
            return g
    return 0  # unknown -> conservative defaults (f32 elementwise, single grid split)


def _vmem_capacity_bytes():
    try:
        cap = int(getattr(pltpu.get_tpu_info(), "vmem_capacity_bytes", 0))
        if cap > 0:
            return cap
    except Exception:
        pass
    return (64 << 20) if _tpu_generation() >= 7 else (128 << 20)


def mlp_kernel(x_ref, w1_ref, b1_ref, w2_ref, b2_ref, w3_ref, b3_ref, o_ref, *, cout, small_cin):
    mm_dt = w2_ref.dtype  # MXU operand dtype (bf16); accumulation is always f32
    ew_dt = b1_ref.dtype  # elementwise (bias + tanh) dtype: f32 on <=v5, bf16 on v6e/v7x

    # ---- Layer 1: Linear(Cin -> H) ----
    if small_cin:
        # Tiny Cin (e.g. 4): Cin broadcast-FMAs on the VPU in f32 instead of a 32x zero-padded
        # MXU pass; x and w1 stay unpadded along Cin so the x DMA is 32x smaller.
        x = x_ref[...].astype(jnp.float32)
        w1 = w1_ref[...].astype(jnp.float32)
        acc1 = x[:, 0:1] * w1[0:1, :]
        for c in range(1, x.shape[1]):
            acc1 = acc1 + x[:, c : c + 1] * w1[c : c + 1, :]
    else:
        acc1 = jnp.dot(x_ref[...], w1_ref[...], preferred_element_type=jnp.float32)
    h1 = jnp.tanh(acc1.astype(ew_dt) + b1_ref[...])

    # ---- Layer 2: Linear(H -> H) -> Dropout(p=0, identity) -> Tanh ----
    # TODO(synk): training-mode dropout (p>0) would need pltpu.prng_seed/prng_random_bits masking;
    # the module defaults to p=0.0 so it is an identity here.
    acc2 = jnp.dot(h1.astype(mm_dt), w2_ref[...], preferred_element_type=jnp.float32)
    h2 = jnp.tanh(acc2.astype(ew_dt) + b2_ref[...])

    # ---- Layer 3: Linear(H -> Cout) ----
    # w3/b3 are lane-padded to a full 128-wide MXU pass; only the real Cout columns are
    # stored so the HBM writeback is unpadded (no wrapper slice afterwards).
    acc3 = jnp.dot(h2.astype(mm_dt), w3_ref[...], preferred_element_type=jnp.float32) + b3_ref[...]
    o_ref[...] = acc3[:, :cout].astype(o_ref.dtype)


def prepare_params(params, *, matmul_dtype=jnp.bfloat16, small_cin_max=16):
    """One-time weight preparation (hoisted out of the forward path): lane-padding + bf16 cast.

    `params` = (w1, b1, w2, b2, w3, b3) with weights already transposed to (in, out).
    Padding is exact: padded hidden units see zero weights/bias, tanh(0)=0, so they never
    contribute to real output columns.
    """
    w1, b1, w2, b2, w3, b3 = params
    Cin, H = w1.shape
    Cout = w3.shape[1]
    gen = _tpu_generation()

    mm_dt = matmul_dtype
    # f32 bias/tanh on v5e and older (no bf16 VPU/EUP path); bf16 elementwise on v6e/v7x.
    ew_dt = jnp.bfloat16 if gen >= 6 else jnp.float32
    # v6e/v7x MXU is 2x256^2: align H to 256 when H is large enough to benefit.
    h_align = 256 if (gen >= 6 and H >= 256) else LANE
    H_p = _round_up(H, h_align)
    Cout_p = _round_up(Cout, LANE)
    small_cin = Cin <= small_cin_max

    f32 = jnp.float32
    if small_cin:
        # layer 1 runs as f32 VPU FMAs -> keep w1 unpadded along Cin and in f32 (a few KiB).
        w1p = jnp.zeros((Cin, H_p), f32).at[:, :H].set(w1.astype(f32))
    else:
        Cin_p = _round_up(Cin, LANE)
        w1p = jnp.zeros((Cin_p, H_p), mm_dt).at[:Cin, :H].set(w1.astype(mm_dt))
    w2p = jnp.zeros((H_p, H_p), mm_dt).at[:H, :H].set(w2.astype(mm_dt))
    w3p = jnp.zeros((H_p, Cout_p), mm_dt).at[:H, :Cout].set(w3.astype(mm_dt))
    b1p = jnp.zeros((1, H_p), ew_dt).at[:, :H].set(b1.reshape(1, H).astype(ew_dt))
    b2p = jnp.zeros((1, H_p), ew_dt).at[:, :H].set(b2.reshape(1, H).astype(ew_dt))
    b3p = jnp.zeros((1, Cout_p), f32).at[:, :Cout].set(b3.reshape(1, Cout).astype(f32))

    arrays = (w1p, b1p, w2p, b2p, w3p, b3p)
    meta = dict(cout=Cout, small_cin=small_cin, matmul_dtype=mm_dt, elementwise_dtype=ew_dt)
    return arrays, meta


@functools.partial(jax.jit, static_argnames=("cout", "small_cin"))
def ann_forward(x, w1p, b1p, w2p, b2p, w3p, b3p, *, cout, small_cin):
    """Fused MLP forward on prepared (padded/cast) parameters."""
    B, Cin = x.shape
    H_p = w2p.shape[0]
    Cout_p = w3p.shape[1]
    out_dtype = x.dtype
    gen = _tpu_generation()

    # Grid-step policy: 1 step on single-TC v5e/v6e (whole batch per step, VMEM permitting);
    # exactly 2 equal steps on v7x so ("parallel",) gives each TensorCore one full tile.
    n_splits = 2 if gen >= 7 else 1
    row_bytes = 4 * (4 * H_p + Cout_p)  # f32 temporaries per batch row (with slack)
    tile_cap = max(SUB, ((24 << 20) // row_bytes) // SUB * SUB)
    tile_b = min(_round_up(pl.cdiv(B, n_splits), SUB), tile_cap)
    B_p = _round_up(B, tile_b)

    if not small_cin:
        # Large Cin: lane-pad x to match the bf16 w1 block (one fused pad under jit).
        Cin_p = w1p.shape[0]
        x_in = jnp.zeros((B_p, Cin_p), w1p.dtype).at[:B, :Cin].set(x.astype(w1p.dtype))
    elif B_p != B:
        x_in = jnp.zeros((B_p, Cin), x.dtype).at[:B].set(x)
    else:
        x_in = x  # no padding at all: unpadded (B, Cin) DMA
    x_cols = x_in.shape[1]

    # VMEM budget: double-buffered x/out tiles + (default double-buffered) resident weights +
    # f32 temporaries. Single safety factor, capped below physical VMEM (64 MiB/TC on v7x).
    # TODO(synk): for very large H (w2 bytes approaching ~half of VMEM), single-buffer the
    # constant weight blocks with pipeline_mode=pl.Buffered(1) and add a K-grid axis over the
    # hidden dim for w2 with an f32 VMEM accumulator (axis marked "arbitrary").
    weight_bytes = sum(int(a.size) * a.dtype.itemsize for a in (w1p, b1p, w2p, b2p, w3p, b3p))
    act_bytes = 2 * tile_b * (x_cols * x_in.dtype.itemsize + cout * jnp.dtype(out_dtype).itemsize)
    temp_bytes = tile_b * (4 * H_p + Cout_p) * 4
    vmem_est = 2 * weight_bytes + act_bytes + temp_bytes
    vmem_limit = int(min(max(32 << 20, vmem_est + vmem_est // 2),
                         (_vmem_capacity_bytes() * 7) // 8))

    rep = lambda i: (0, 0)  # weights/biases: constant block index -> DMA'd once, revisited

    out = pl.pallas_call(
        functools.partial(mlp_kernel, cout=cout, small_cin=small_cin),
        out_shape=jax.ShapeDtypeStruct((B_p, cout), out_dtype),
        grid_spec=pltpu.PrefetchScalarGridSpec(
            num_scalar_prefetch=0,
            grid=(B_p // tile_b,),
            in_specs=[
                pl.BlockSpec((tile_b, x_cols), lambda i: (i, 0)),
                pl.BlockSpec(w1p.shape, rep),
                pl.BlockSpec(b1p.shape, rep),
                pl.BlockSpec(w2p.shape, rep),
                pl.BlockSpec(b2p.shape, rep),
                pl.BlockSpec(w3p.shape, rep),
                pl.BlockSpec(b3p.shape, rep),
            ],
            out_specs=pl.BlockSpec((tile_b, cout), lambda i: (i, 0)),
        ),
        compiler_params=pltpu.CompilerParams(
            dimension_semantics=("parallel",),  # batch steps shard across v7x's 2 TensorCores
            vmem_limit_bytes=vmem_limit,
        ),
    )(x_in, w1p, b1p, w2p, b2p, w3p, b3p)

    return out if B_p == B else out[:B]


def init_params(key, input_channels, hdim, output_channels, dtype=jnp.float32):
    """Deterministic init matching the PyTorch module's scheme:
    xavier_normal_ for weights, normal(0, sqrt(6/(hdim*2))) for biases."""
    keys = jax.random.split(key, 6)
    bias_std = np.sqrt(6.0 / (hdim * 2))

    def xavier_normal(k, fan_in, fan_out):
        std = np.sqrt(2.0 / (fan_in + fan_out))
        # sample in (out, in) like torch, then transpose to (in, out) for the kernel
        w = jax.random.normal(k, (fan_out, fan_in), dtype) * std
        return w.T

    w1 = xavier_normal(keys[0], input_channels, hdim)
    b1 = jax.random.normal(keys[1], (1, hdim), dtype) * bias_std
    w2 = xavier_normal(keys[2], hdim, hdim)
    b2 = jax.random.normal(keys[3], (1, hdim), dtype) * bias_std
    w3 = xavier_normal(keys[4], hdim, output_channels)
    b3 = jax.random.normal(keys[5], (1, output_channels), dtype) * bias_std
    return (w1, b1, w2, b2, w3, b3)


def ann_reference_f32(x, params):
    """Pure-f32 reference: exactly the PyTorch module's forward (weights pre-transposed)."""
    w1, b1, w2, b2, w3, b3 = params
    h1 = jnp.tanh(x @ w1 + b1)
    h2 = jnp.tanh(h1 @ w2 + b2)  # Dropout(p=0.0) is an identity
    return h2 @ w3 + b3


def ann_reference_matched(x, params, *, matmul_dtype, elementwise_dtype, small_cin):
    """Reference mirroring the kernel's mixed precision (bf16 MXU operands, f32 accumulation,
    per-generation elementwise dtype) for a tight self-consistency check."""
    w1, b1, w2, b2, w3, b3 = params
    mm, ew, f32 = matmul_dtype, elementwise_dtype, jnp.float32
    if small_cin:
        acc1 = jnp.dot(x.astype(f32), w1.astype(f32))
    else:
        acc1 = jnp.dot(x.astype(mm), w1.astype(mm), preferred_element_type=f32)
    h1 = jnp.tanh(acc1.astype(ew) + b1.astype(ew))
    acc2 = jnp.dot(h1.astype(mm), w2.astype(mm), preferred_element_type=f32)
    h2 = jnp.tanh(acc2.astype(ew) + b2.astype(ew))
    out = jnp.dot(h2.astype(mm), w3.astype(mm), preferred_element_type=f32) + b3.astype(f32)
    return out.astype(x.dtype)


if __name__ == "__main__":
    input_channels, hdim, output_channels = 4, 32, 4
    batch = 512  # 1 batch tile on v5e/v6e (single TC), 2 equal tiles on v7x (2 TCs)

    key = jax.random.PRNGKey(0)
    kx, kp = jax.random.split(key)
    x = jax.random.normal(kx, (batch, input_channels), jnp.float32)
    params = init_params(kp, input_channels, hdim, output_channels)

    # One-time weight prep (padding + casts) hoisted out of the per-call forward path.
    prep, meta = prepare_params(params)

    out = ann_forward(x, *prep, cout=meta["cout"], small_cin=meta["small_cin"])
    out = jax.block_until_ready(out)
    assert out.shape == (batch, output_channels)

    # Tight check vs a reference using the same mixed precision as the kernel.
    ref_m = ann_reference_matched(
        x, params,
        matmul_dtype=meta["matmul_dtype"],
        elementwise_dtype=meta["elementwise_dtype"],
        small_cin=meta["small_cin"],
    )
    np.testing.assert_allclose(np.asarray(out), np.asarray(ref_m), rtol=1e-2, atol=1e-2)

    # Fidelity check vs the pure-f32 PyTorch-equivalent forward (loose: bf16 MXU operands).
    ref_f32 = ann_reference_f32(x, params)
    np.testing.assert_allclose(np.asarray(out), np.asarray(ref_f32), rtol=3e-2, atol=6e-2)

    print("KERNEL_OK")
</pallas_src>

<mosaic_0001>
module attributes {stable_mosaic.version = 11 : i64} {
  func.func @mlp_kernel(%arg0: i32, %arg1: memref<512x4xf32, #tpu.memory_space<vmem>>, %arg2: memref<4x128xf32, #tpu.memory_space<vmem>>, %arg3: memref<1x128xf32, #tpu.memory_space<vmem>>, %arg4: memref<128x128xbf16, #tpu.memory_space<vmem>>, %arg5: memref<1x128xf32, #tpu.memory_space<vmem>>, %arg6: memref<128x128xbf16, #tpu.memory_space<vmem>>, %arg7: memref<1x128xf32, #tpu.memory_space<vmem>>, %arg8: memref<512x4xf32, #tpu.memory_space<vmem>>) attributes {dimension_semantics = [#tpu.dimension_semantics<parallel>], iteration_bounds = array<i64: 1>, scalar_prefetch = 0 : i64, scratch_operands = 0 : i64, tpu.core_type = #tpu.core_type<tc>, window_params = [{transform_indices = @transform_0, window_bounds = array<i64: 512, 4>}, {pipeline_mode = #tpu.pipeline_mode<synchronous>, transform_indices = @transform_1, window_bounds = array<i64: 4, 128>}, {pipeline_mode = #tpu.pipeline_mode<synchronous>, transform_indices = @transform_2, window_bounds = array<i64: 1, 128>}, {pipeline_mode = #tpu.pipeline_mode<synchronous>, transform_indices = @transform_3, window_bounds = array<i64: 128, 128>}, {pipeline_mode = #tpu.pipeline_mode<synchronous>, transform_indices = @transform_4, window_bounds = array<i64: 1, 128>}, {pipeline_mode = #tpu.pipeline_mode<synchronous>, transform_indices = @transform_5, window_bounds = array<i64: 128, 128>}, {pipeline_mode = #tpu.pipeline_mode<synchronous>, transform_indices = @transform_6, window_bounds = array<i64: 1, 128>}, {transform_indices = @transform_7, window_bounds = array<i64: 512, 4>}]} {
    %c0 = arith.constant 0 : index
    %c0_0 = arith.constant 0 : index
    %0 = vector.load %arg1[%c0, %c0_0] : memref<512x4xf32, #tpu.memory_space<vmem>>, vector<512x4xf32>
    %c0_1 = arith.constant 0 : index
    %c0_2 = arith.constant 0 : index
    %1 = vector.load %arg2[%c0_1, %c0_2] : memref<4x128xf32, #tpu.memory_space<vmem>>, vector<4x128xf32>
    %2 = vector.extract_strided_slice %0 {offsets = [0, 0], sizes = [512, 1], strides = [1, 1]} : vector<512x4xf32> to vector<512x1xf32>
    %3 = vector.extract_strided_slice %1 {offsets = [0, 0], sizes = [1, 128], strides = [1, 1]} : vector<4x128xf32> to vector<1x128xf32>
    %4 = vector.broadcast %2 : vector<512x1xf32> to vector<512x128xf32>
    %5 = vector.broadcast %3 : vector<1x128xf32> to vector<512x128xf32>
    %6 = arith.mulf %4, %5 : vector<512x128xf32>
    %7 = vector.extract_strided_slice %0 {offsets = [0, 1], sizes = [512, 1], strides = [1, 1]} : vector<512x4xf32> to vector<512x1xf32>
    %8 = vector.extract_strided_slice %1 {offsets = [1, 0], sizes = [1, 128], strides = [1, 1]} : vector<4x128xf32> to vector<1x128xf32>
    %9 = vector.broadcast %7 : vector<512x1xf32> to vector<512x128xf32>
    %10 = vector.broadcast %8 : vector<1x128xf32> to vector<512x128xf32>
    %11 = arith.mulf %9, %10 : vector<512x128xf32>
    %12 = arith.addf %6, %11 : vector<512x128xf32>
    %13 = vector.extract_strided_slice %0 {offsets = [0, 2], sizes = [512, 1], strides = [1, 1]} : vector<512x4xf32> to vector<512x1xf32>
    %14 = vector.extract_strided_slice %1 {offsets = [2, 0], sizes = [1, 128], strides = [1, 1]} : vector<4x128xf32> to vector<1x128xf32>
    %15 = vector.broadcast %13 : vector<512x1xf32> to vector<512x128xf32>
    %16 = vector.broadcast %14 : vector<1x128xf32> to vector<512x128xf32>
    %17 = arith.mulf %15, %16 : vector<512x128xf32>
    %18 = arith.addf %12, %17 : vector<512x128xf32>
    %19 = vector.extract_strided_slice %0 {offsets = [0, 3], sizes = [512, 1], strides = [1, 1]} : vector<512x4xf32> to vector<512x1xf32>
    %20 = vector.extract_strided_slice %1 {offsets = [3, 0], sizes = [1, 128], strides = [1, 1]} : vector<4x128xf32> to vector<1x128xf32>
    %21 = vector.broadcast %19 : vector<512x1xf32> to vector<512x128xf32>
    %22 = vector.broadcast %20 : vector<1x128xf32> to vector<512x128xf32>
    %23 = arith.mulf %21, %22 : vector<512x128xf32>
    %24 = arith.addf %18, %23 : vector<512x128xf32>
    %c0_3 = arith.constant 0 : index
    %c0_4 = arith.constant 0 : index
    %25 = vector.load %arg3[%c0_3, %c0_4] : memref<1x128xf32, #tpu.memory_space<vmem>>, vector<1x128xf32>
    %26 = vector.broadcast %25 : vector<1x128xf32> to vector<512x128xf32>
    %27 = arith.addf %24, %26 : vector<512x128xf32>
    %28 = math.tanh %27 : vector<512x128xf32>
    %29 = arith.truncf %28 : vector<512x128xf32> to vector<512x128xbf16>
    %c0_5 = arith.constant 0 : index
    %c0_6 = arith.constant 0 : index
    %30 = vector.load %arg4[%c0_5, %c0_6] : memref<128x128xbf16, #tpu.memory_space<vmem>>, vector<128x128xbf16>
    %cst = arith.constant dense<0.000000e+00> : vector<512x128xf32>
    %31 = tpu.matmul %29, %30, %cst {dimension_numbers = #tpu.dot_dimension_numbers<[1], [0], [0], [1], [0, 0, 1, 1], [], []>} : vector<512x128xbf16>, vector<128x128xbf16>, vector<512x128xf32> -> vector<512x128xf32>
    %c0_7 = arith.constant 0 : index
    %c0_8 = arith.constant 0 : index
    %32 = vector.load %arg5[%c0_7, %c0_8] : memref<1x128xf32, #tpu.memory_space<vmem>>, vector<1x128xf32>
    %33 = vector.broadcast %32 : vector<1x128xf32> to vector<512x128xf32>
    %34 = arith.addf %31, %33 : vector<512x128xf32>
    %35 = math.tanh %34 : vector<512x128xf32>
    %36 = arith.truncf %35 : vector<512x128xf32> to vector<512x128xbf16>
    %c0_9 = arith.constant 0 : index
    %c0_10 = arith.constant 0 : index
    %37 = vector.load %arg6[%c0_9, %c0_10] : memref<128x128xbf16, #tpu.memory_space<vmem>>, vector<128x128xbf16>
    %cst_11 = arith.constant dense<0.000000e+00> : vector<512x128xf32>
    %38 = tpu.matmul %36, %37, %cst_11 {dimension_numbers = #tpu.dot_dimension_numbers<[1], [0], [0], [1], [0, 0, 1, 1], [], []>} : vector<512x128xbf16>, vector<128x128xbf16>, vector<512x128xf32> -> vector<512x128xf32>
    %c0_12 = arith.constant 0 : index
    %c0_13 = arith.constant 0 : index
    %39 = vector.load %arg7[%c0_12, %c0_13] : memref<1x128xf32, #tpu.memory_space<vmem>>, vector<1x128xf32>
    %40 = vector.broadcast %39 : vector<1x128xf32> to vector<512x128xf32>
    %41 = arith.addf %38, %40 : vector<512x128xf32>
    %42 = vector.extract_strided_slice %41 {offsets = [0, 0], sizes = [512, 4], strides = [1, 1]} : vector<512x128xf32> to vector<512x4xf32>
    %c0_14 = arith.constant 0 : index
    %c0_15 = arith.constant 0 : index
    %43 = vector.load %arg8[%c0_14, %c0_15] : memref<512x4xf32, #tpu.memory_space<vmem>>, vector<512x4xf32>
    tpu.vector_store %arg8[%c0_14, %c0_15], %42 {strides = array<i32>} : memref<512x4xf32, #tpu.memory_space<vmem>>, vector<512x4xf32>,
    return
  }
  func.func @transform_0(%arg0: i32) -> (i32, i32) {
    %c0_i32 = arith.constant 0 : i32
    %c0_i32_0 = arith.constant 0 : i32
    return %arg0, %c0_i32 : i32, i32
  }
  func.func @transform_1(%arg0: i32) -> (i32, i32) {
    %c0_i32 = arith.constant 0 : i32
    %c0_i32_0 = arith.constant 0 : i32
    %c0_i32_1 = arith.constant 0 : i32
    return %c0_i32, %c0_i32_0 : i32, i32
  }
  func.func @transform_2(%arg0: i32) -> (i32, i32) {
    %c0_i32 = arith.constant 0 : i32
    %c0_i32_0 = arith.constant 0 : i32
    %c0_i32_1 = arith.constant 0 : i32
    return %c0_i32, %c0_i32_0 : i32, i32
  }
  func.func @transform_3(%arg0: i32) -> (i32, i32) {
    %c0_i32 = arith.constant 0 : i32
    %c0_i32_0 = arith.constant 0 : i32
    %c0_i32_1 = arith.constant 0 : i32
    return %c0_i32, %c0_i32_0 : i32, i32
  }
  func.func @transform_4(%arg0: i32) -> (i32, i32) {
    %c0_i32 = arith.constant 0 : i32
    %c0_i32_0 = arith.constant 0 : i32
    %c0_i32_1 = arith.constant 0 : i32
    return %c0_i32, %c0_i32_0 : i32, i32
  }
  func.func @transform_5(%arg0: i32) -> (i32, i32) {
    %c0_i32 = arith.constant 0 : i32
    %c0_i32_0 = arith.constant 0 : i32
    %c0_i32_1 = arith.constant 0 : i32
    return %c0_i32, %c0_i32_0 : i32, i32
  }
  func.func @transform_6(%arg0: i32) -> (i32, i32) {
    %c0_i32 = arith.constant 0 : i32
    %c0_i32_0 = arith.constant 0 : i32
    %c0_i32_1 = arith.constant 0 : i32
    return %c0_i32, %c0_i32_0 : i32, i32
  }
  func.func @transform_7(%arg0: i32) -> (i32, i32) {
    %c0_i32 = arith.constant 0 : i32
    %c0_i32_0 = arith.constant 0 : i32
    return %arg0, %c0_i32 : i32, i32
  }
}

</mosaic_0001>

<bundles_post_ra>
// kernel: ann_forward.1
= control target key start
LH: loop header
LB: loop body
LE: loop exit
PB: predicated region body
PF: predicated region fallthrough
CT: control target
= control target key end

     0   :  { %v2897_v0 = vmov 0   ;;  %vm2365_vm0 = vcmask 31744   ;;  %s5063_s0 = inlined_call_operand.vmem [shape: f32[512,4], index: 0, kind: input, shape index: {}]   ;;  %s5064_s2 = inlined_call_operand.vmem [shape: f32[1,128], index: 2, kind: input, shape index: {}]   ;;  %s5065_s3 = inlined_call_operand.vmem [shape: bf16[128,128], index: 3, kind: input, shape index: {}]   ;;  %s5066_s1 = inlined_call_operand.vmem [shape: f32[4,128], index: 1, kind: input, shape index: {}]   ;;  %s5067_s4 = inlined_call_operand.vmem [shape: f32[1,128], index: 4, kind: input, shape index: {}]   ;;  %s5068_s5 = inlined_call_operand.vmem [shape: bf16[128,128], index: 5, kind: input, shape index: {}]   ;;  %s5069_s6 = inlined_call_operand.vmem [shape: f32[1,128], index: 6, kind: input, shape index: {}]   ;;  %s5070_s7 = inlined_call_operand.vmem [shape: f32[512,4], index: 7, kind: output, shape index: {}]  }
   0x1   :  { %2536 = vset.pattern.permute.xlu2 %v2897_v0  ;;  %2535 = vset.pattern.permute.xlu1 %v2897_v0  ;;  %v2944_v1 = vld [vmem:[%s5063_s0 + $0x20] sm:$0xff]  ;;  %v2949_v2 = vld [vmem:[%s5063_s0 + $0x10] sm:$0xff]  ;;  %v2962_v4 = vld [vmem:[%s5063_s0 + $0x28] sm:$0xff] }
   0x2   :  { %v2954_v3 = vld [vmem:[%s5063_s0] sm:$0xff]  ;;  %2534 = vset.pattern.permute.xlu0 %v2897_v0  ;;  %113 = vperm.xlu2 %2536, %v2944_v1   ;;  %v2967_v5 = vld [vmem:[%s5063_s0 + $0x18] sm:$0xff]  ;;  %v2972_v6 = vld [vmem:[%s5063_s0 + $0x8] sm:$0xff] }
   0x3   :  { %103 = vperm.xlu1 %2535, %v2949_v2   ;;  %93 = vperm.xlu0 %2534, %v2954_v3   ;;  %5085 = vst [vmem:[#allocation2_spill] sm:$0xff] %v2972_v6  ;;  %v2980_v7 = vld [vmem:[%s5063_s0 + $0x40] sm:$0xff]  ;;  %v2985_v8 = vld [vmem:[%s5063_s0 + $0x38] sm:$0xff]  ;;  %v2990_v9 = vld [vmem:[%s5063_s0 + $0x30] sm:$0xff] }
   0x4   :  { %v2998_v10 = vld [vmem:[%s5063_s0 + $0x58] sm:$0xff]  ;;  %v3003_v11 = vld [vmem:[%s5063_s0 + $0x50] sm:$0xff]  ;;  %v3008_v12 = vld [vmem:[%s5063_s0 + $0x48] sm:$0xff] }
   0x5   :  { %v3016_v13 = vld [vmem:[%s5063_s0 + $0x70] sm:$0xff]  ;;  %v3021_v14 = vld [vmem:[%s5063_s0 + $0x68] sm:$0xff]  ;;  %v3026_v15 = vld [vmem:[%s5063_s0 + $0x60] sm:$0xff] }
   0x6   :  { %v3034_v16 = vld [vmem:[%s5063_s0 + $0x88] sm:$0xff]  ;;  %v3039_v17 = vld [vmem:[%s5063_s0 + $0x80] sm:$0xff]  ;;  %v3044_v18 = vld [vmem:[%s5063_s0 + $0x78] sm:$0xff] }
   0x7   :  { %v3052_v19 = vld [vmem:[%s5063_s0 + $0xa0] sm:$0xff]  ;;  %v3057_v20 = vld [vmem:[%s5063_s0 + $0x98] sm:$0xff]  ;;  %v3062_v21 = vld [vmem:[%s5063_s0 + $0x90] sm:$0xff] }
   0x8   :  { %v3070_v22 = vld [vmem:[%s5063_s0 + $0xb8] sm:$0xff]  ;;  %v3075_v23 = vld [vmem:[%s5063_s0 + $0xb0] sm:$0xff]  ;;  %v3080_v24 = vld [vmem:[%s5063_s0 + $0xa8] sm:$0xff] }
   0x9   :  { %v3088_v25 = vld [vmem:[%s5063_s0 + $0xd0] sm:$0xff]  ;;  %v3093_v26 = vld [vmem:[%s5063_s0 + $0xc8] sm:$0xff]  ;;  %v3098_v27 = vld [vmem:[%s5063_s0 + $0xc0] sm:$0xff] }
   0xa   :  { %118 = vperm.xlu2 %2536, %v2962_v4   ;;  %v3106_v28 = vld [vmem:[%s5063_s0 + $0xe8] sm:$0xff]  ;;  %v3111_v29 = vld [vmem:[%s5063_s0 + $0xe0] sm:$0xff]  ;;  %v3116_v30 = vld [vmem:[%s5063_s0 + $0xd8] sm:$0xff] }
   0xb   :  { %108 = vperm.xlu1 %2535, %v2967_v5   ;;  %98 = vperm.xlu0 %2534, %v2972_v6   ;;  %v3124_v31 = vld [vmem:[%s5063_s0 + $0x100] sm:$0xff]  ;;  %v3129_v32 = vld [vmem:[%s5063_s0 + $0xf8] sm:$0xff]  ;;  %v3134_v33 = vld [vmem:[%s5063_s0 + $0xf0] sm:$0xff] }
   0xc   :  { %v3142_v34 = vld [vmem:[%s5063_s0 + $0x118] sm:$0xff]  ;;  %v3147_v35 = vld [vmem:[%s5063_s0 + $0x110] sm:$0xff]  ;;  %v3152_v36 = vld [vmem:[%s5063_s0 + $0x108] sm:$0xff] }
   0xd   :  { %v3162_v38 = vld [vmem:[%s5063_s0 + $0x130] sm:$0xff]  ;;  %v3167_v39 = vld [vmem:[%s5063_s0 + $0x128] sm:$0xff]  ;;  %v3172_v40 = vld [vmem:[%s5063_s0 + $0x120] sm:$0xff] }
   0xe   :  { %v3182_v42 = vld [vmem:[%s5063_s0 + $0x148] sm:$0xff]  ;;  %v3187_v43 = vld [vmem:[%s5063_s0 + $0x140] sm:$0xff]  ;;  %v3192_v44 = vld [vmem:[%s5063_s0 + $0x138] sm:$0xff] }
   0xf   :  { %v3202_v46 = vld [vmem:[%s5063_s0 + $0x160] sm:$0xff]  ;;  %v3207_v47 = vld [vmem:[%s5063_s0 + $0x158] sm:$0xff]  ;;  %v3212_v48 = vld [vmem:[%s5063_s0 + $0x150] sm:$0xff] }
  0x10   :  { %v3226_v52 = vld [vmem:[%s5063_s0 + $0x178] sm:$0xff]  ;;  %v3231_v53 = vld [vmem:[%s5063_s0 + $0x170] sm:$0xff]  ;;  %v3236_v54 = vld [vmem:[%s5063_s0 + $0x168] sm:$0xff] }
  0x11   :  { %v3250_v58 = vld [vmem:[%s5063_s0 + $0x190] sm:$0xff]  ;;  %v3255_v59 = vld [vmem:[%s5063_s0 + $0x188] sm:$0xff]  ;;  %v3260_v60 = vld [vmem:[%s5063_s0 + $0x180] sm:$0xff] }
  0x12   :  { %133 = vperm.xlu2 %2536, %v2980_v7   ;;  %5095 = vst [vmem:[#allocation12_spill] sm:$0xff] %v3255_v59  ;;  %v3274_v0 = vld [vmem:[%s5063_s0 + $0x1a8] sm:$0xff] }
  0x13   :  { %128 = vperm.xlu1 %2535, %v2985_v8   ;;  %123 = vperm.xlu0 %2534, %v2990_v9  }
  0x1a   :  { %148 = vperm.xlu2 %2536, %v2998_v10  }
  0x1b   :  { %143 = vperm.xlu1 %2535, %v3003_v11   ;;  %138 = vperm.xlu0 %2534, %v3008_v12  }
  0x22   :  { %163 = vperm.xlu2 %2536, %v3016_v13  }
  0x23   :  { %158 = vperm.xlu1 %2535, %v3021_v14   ;;  %153 = vperm.xlu0 %2534, %v3026_v15  }
  0x2a   :  { %178 = vperm.xlu2 %2536, %v3034_v16  }
  0x2b   :  { %173 = vperm.xlu1 %2535, %v3039_v17   ;;  %168 = vperm.xlu0 %2534, %v3044_v18  }
  0x32   :  { %193 = vperm.xlu2 %2536, %v3052_v19  }
  0x33   :  { %188 = vperm.xlu1 %2535, %v3057_v20   ;;  %183 = vperm.xlu0 %2534, %v3062_v21  }
  0x3a   :  { %208 = vperm.xlu2 %2536, %v3070_v22  }
  0x3b   :  { %203 = vperm.xlu1 %2535, %v3075_v23   ;;  %198 = vperm.xlu0 %2534, %v3080_v24  }
  0x42   :  { %223 = vperm.xlu2 %2536, %v3088_v25  }
  0x43   :  { %218 = vperm.xlu1 %2535, %v3093_v26   ;;  %213 = vperm.xlu0 %2534, %v3098_v27  }
  0x4a   :  { %238 = vperm.xlu2 %2536, %v3106_v28  }
  0x4b   :  { %233 = vperm.xlu1 %2535, %v3111_v29   ;;  %228 = vperm.xlu0 %2534, %v3116_v30  }
  0x52   :  { %253 = vperm.xlu2 %2536, %v3124_v31  }
  0x53   :  { %248 = vperm.xlu1 %2535, %v3129_v32   ;;  %243 = vperm.xlu0 %2534, %v3134_v33  }
  0x5a   :  { %268 = vperm.xlu2 %2536, %v3142_v34  }
  0x5b   :  { %263 = vperm.xlu1 %2535, %v3147_v35   ;;  %258 = vperm.xlu0 %2534, %v3152_v36  }
  0x5c   :  { %v3157_v37 = vpop.permute.xlu2 %113 }
  0x5d   :  { %5086 = vst [vmem:[#allocation3_spill] sm:$0xff] %v3157_v37 }
  0x62   :  { %283 = vperm.xlu2 %2536, %v3162_v38  }
  0x63   :  { %278 = vperm.xlu1 %2535, %v3167_v39   ;;  %273 = vperm.xlu0 %2534, %v3172_v40  }
  0x64   :  { %v3177_v41 = vpop.permute.xlu2 %118 }
  0x65   :  { %5087 = vst [vmem:[#allocation4_spill] sm:$0xff] %v3177_v41  ;;  %v3298_v41 = vld [vmem:[%s5063_s0 + $0x1c0] sm:$0xff] }
  0x66   :  { %5102 = vst [vmem:[#allocation19_spill] sm:$0xff] %v3298_v41 }
  0x6a   :  { %298 = vperm.xlu2 %2536, %v3182_v42  }
  0x6b   :  { %293 = vperm.xlu1 %2535, %v3187_v43   ;;  %288 = vperm.xlu0 %2534, %v3192_v44  }
  0x6c   :  { %v3197_v45 = vpop.permute.xlu2 %133 }
  0x6d   :  { %5088 = vst [vmem:[#allocation5_spill] sm:$0xff] %v3197_v45 }
  0x72   :  { %313 = vperm.xlu2 %2536, %v3202_v46  }
  0x73   :  { %308 = vperm.xlu1 %2535, %v3207_v47   ;;  %303 = vperm.xlu0 %2534, %v3212_v48  }
  0x74   :  { %v3217_v49 = vpop.permute.xlu2 %148 }
  0x75   :  { %5089 = vst [vmem:[#allocation6_spill] sm:$0xff] %v3217_v49  ;;  %v3219_v50 = vpop.permute.xlu1 %103  ;;  %v3221_v51 = vpop.permute.xlu0 %93  ;;  %v3284_v49 = vld [vmem:[%s5063_s0 + $0x198] sm:$0xff] }
  0x76   :  { %5090 = vst [vmem:[#allocation7_spill] sm:$0xff] %v3219_v50  ;;  %v3322_v50 = vld [vmem:[%s5063_s0 + $0x1d8] sm:$0xff] }
  0x77   :  { %5091 = vst [vmem:[#allocation8_spill] sm:$0xff] %v3221_v51  ;;  %v3346_v51 = vld [vmem:[%s5063_s0 + $0x1f0] sm:$0xff] }
  0x78   :  { %5107 = vst [vmem:[#allocation24_spill] sm:$0xff] %v3322_v50 }
  0x79   :  { %5113 = vst [vmem:[#allocation30_spill] sm:$0xff] %v3346_v51 }
  0x7a   :  { %328 = vperm.xlu2 %2536, %v3226_v52  }
  0x7b   :  { %323 = vperm.xlu1 %2535, %v3231_v53   ;;  %318 = vperm.xlu0 %2534, %v3236_v54  }
  0x7c   :  { %v3241_v55 = vpop.permute.xlu2 %163 }
  0x7d   :  { %5092 = vst [vmem:[#allocation9_spill] sm:$0xff] %v3241_v55  ;;  %v3243_v56 = vpop.permute.xlu1 %108  ;;  %v3245_v57 = vpop.permute.xlu0 %98  ;;  %v3279_v55 = vld [vmem:[%s5063_s0 + $0x1a0] sm:$0xff] }
  0x7e   :  { %5093 = vst [vmem:[#allocation10_spill] sm:$0xff] %v3243_v56  ;;  %v3327_v56 = vld [vmem:[%s5063_s0 + $0x1d0] sm:$0xff] }
  0x7f   :  { %5094 = vst [vmem:[#allocation11_spill] sm:$0xff] %v3245_v57  ;;  %v3332_v57 = vld [vmem:[%s5063_s0 + $0x1c8] sm:$0xff] }
  0x80   :  { %5108 = vst [vmem:[#allocation25_spill] sm:$0xff] %v3327_v56 }
  0x81   :  { %5109 = vst [vmem:[#allocation26_spill] sm:$0xff] %v3332_v57 }
  0x82   :  { %343 = vperm.xlu2 %2536, %v3250_v58  }
  0x83   :  { %338 = vperm.xlu1 %2535, %v3255_v59   ;;  %333 = vperm.xlu0 %2534, %v3260_v60  }
  0x84   :  { %v3265_v61 = vpop.permute.xlu2 %178 }
  0x85   :  { %5096 = vst [vmem:[#allocation13_spill] sm:$0xff] %v3265_v61  ;;  %v3267_v62 = vpop.permute.xlu1 %128  ;;  %v3269_v63 = vpop.permute.xlu0 %123 }
  0x86   :  { %5097 = vst [vmem:[#allocation14_spill] sm:$0xff] %v3267_v62  ;;  %v3308_v62 = vld [vmem:[%s5063_s0 + $0x1b0] sm:$0xff] }
  0x87   :  { %5098 = vst [vmem:[#allocation15_spill] sm:$0xff] %v3269_v63  ;;  %v3303_v63 = vld [vmem:[%s5063_s0 + $0x1b8] sm:$0xff] }
  0x88   :  { %5103 = vst [vmem:[#allocation20_spill] sm:$0xff] %v3308_v62 }
  0x8a   :  { %358 = vperm.xlu2 %2536, %v3274_v0  }
  0x8b   :  { %353 = vperm.xlu1 %2535, %v3279_v55   ;;  %348 = vperm.xlu0 %2534, %v3284_v49  }
  0x8c   :  { %v3289_v61 = vpop.permute.xlu2 %193 }
  0x8d   :  { %5099 = vst [vmem:[#allocation16_spill] sm:$0xff] %v3289_v61  ;;  %v3291_v45 = vpop.permute.xlu1 %143  ;;  %v3293_v37 = vpop.permute.xlu0 %138 }
  0x8e   :  { %5100 = vst [vmem:[#allocation17_spill] sm:$0xff] %v3291_v45 }
  0x8f   :  { %5101 = vst [vmem:[#allocation18_spill] sm:$0xff] %v3293_v37 }
  0x92   :  { %373 = vperm.xlu2 %2536, %v3298_v41   ;;  %v3351_v41 = vld [vmem:[%s5063_s0 + $0x1e8] sm:$0xff] }
  0x93   :  { %368 = vperm.xlu1 %2535, %v3303_v63   ;;  %363 = vperm.xlu0 %2534, %v3308_v62  }
  0x94   :  { %v3313_v61 = vpop.permute.xlu2 %208 }
  0x95   :  { %5104 = vst [vmem:[#allocation21_spill] sm:$0xff] %v3313_v61  ;;  %v3315_v45 = vpop.permute.xlu1 %158  ;;  %v3317_v37 = vpop.permute.xlu0 %153 }
  0x96   :  { %5105 = vst [vmem:[#allocation22_spill] sm:$0xff] %v3315_v45 }
  0x97   :  { %5106 = vst [vmem:[#allocation23_spill] sm:$0xff] %v3317_v37 }
  0x9a   :  { %388 = vperm.xlu2 %2536, %v3322_v50   ;;  %v3356_v50 = vld [vmem:[%s5063_s0 + $0x1e0] sm:$0xff] }
  0x9b   :  { %383 = vperm.xlu1 %2535, %v3327_v56   ;;  %378 = vperm.xlu0 %2534, %v3332_v57   ;;  %v3370_v56 = vld [vmem:[%s5063_s0 + $0x1f8] sm:$0xff]  ;;  %v2898_v57 = vmov 1  }
  0x9c   :  { %v3337_v61 = vpop.permute.xlu2 %223  ;;  %5117 = vst [vmem:[#allocation34_spill] sm:$0xff] %v3370_v56 }
  0x9d   :  { %5110 = vst [vmem:[#allocation27_spill] sm:$0xff] %v3337_v61  ;;  %v3339_v37 = vpop.permute.xlu1 %173  ;;  %v3341_v45 = vpop.permute.xlu0 %168 }
  0x9e   :  { %5111 = vst [vmem:[#allocation28_spill] sm:$0xff] %v3339_v37 }
  0x9f   :  { %5112 = vst [vmem:[#allocation29_spill] sm:$0xff] %v3341_v45 }
  0xa2   :  { %403 = vperm.xlu2 %2536, %v3346_v51  }
  0xa3   :  { %398 = vperm.xlu1 %2535, %v3351_v41   ;;  %393 = vperm.xlu0 %2534, %v3356_v50  }
  0xa4   :  { %v3361_v61 = vpop.permute.xlu2 %238 }
  0xa5   :  { %5114 = vst [vmem:[#allocation31_spill] sm:$0xff] %v3361_v61  ;;  %v3363_v37 = vpop.permute.xlu1 %188  ;;  %v3365_v45 = vpop.permute.xlu0 %183 }
  0xa6   :  { %5115 = vst [vmem:[#allocation32_spill] sm:$0xff] %v3363_v37 }
  0xa7   :  { %5116 = vst [vmem:[#allocation33_spill] sm:$0xff] %v3365_v45 }
  0xaa   :  { %2538 = vset.pattern.permute.xlu2 %v2898_v57 }
  0xab   :  { %2537 = vset.pattern.permute.xlu1 %v2898_v57  ;;  %408 = vperm.xlu0 %2534, %v3370_v56  }
  0xac   :  { %481 = vperm.xlu2 %2538, %v2972_v6   ;;  %477 = vperm.xlu1 %2537, %v2954_v3   ;;  %v3375_v51 = vpop.permute.xlu2 %253 }
  0xad   :  { %v3377_v61 = vpop.permute.xlu1 %203  ;;  %v3379_v37 = vpop.permute.xlu0 %198 }
  0xae   :  { %5118 = vst [vmem:[#allocation35_spill] sm:$0xff] %v3377_v61 }
  0xaf   :  { %5119 = vst [vmem:[#allocation36_spill] sm:$0xff] %v3379_v37 }
  0xb3   :  { %2539 = vset.pattern.permute.xlu0 %v2898_v57 }
  0xb4   :  { %493 = vperm.xlu2 %2538, %v2944_v1   ;;  %489 = vperm.xlu1 %2537, %v2967_v5   ;;  %v3383_v45 = vpop.permute.xlu2 %268 }
  0xb5   :  { %5120 = vst [vmem:[#allocation37_spill] sm:$0xff] %v3383_v45  ;;  %485 = vperm.xlu0 %2539, %v2949_v2   ;;  %v3386_v56 = vpop.permute.xlu1 %218  ;;  %v3388_v6 = vpop.permute.xlu0 %213 }
  0xb6   :  { %5121 = vst [vmem:[#allocation38_spill] sm:$0xff] %v3386_v56 }
  0xb7   :  { %5122 = vst [vmem:[#allocation39_spill] sm:$0xff] %v3388_v6 }
  0xbc   :  { %501 = vperm.xlu2 %2538, %v2990_v9   ;;  %497 = vperm.xlu1 %2537, %v2962_v4   ;;  %v3392_v61 = vpop.permute.xlu2 %283 }
  0xbd   :  { %5123 = vst [vmem:[#allocation40_spill] sm:$0xff] %v3392_v61  ;;  %505 = vperm.xlu0 %2539, %v2985_v8   ;;  %v3395_v57 = vpop.permute.xlu1 %233  ;;  %v3397_v37 = vpop.permute.xlu0 %228 }
  0xbe   :  { %5124 = vst [vmem:[#allocation41_spill] sm:$0xff] %v3395_v57 }
  0xbf   :  { %5125 = vst [vmem:[#allocation42_spill] sm:$0xff] %v3397_v37 }
  0xc4   :  { %513 = vperm.xlu2 %2538, %v3008_v12   ;;  %509 = vperm.xlu1 %2537, %v2980_v7   ;;  %v3401_v45 = vpop.permute.xlu2 %298 }
  0xc5   :  { %5126 = vst [vmem:[#allocation43_spill] sm:$0xff] %v3401_v45  ;;  %517 = vperm.xlu0 %2539, %v3003_v11   ;;  %v3404_v6 = vpop.permute.xlu1 %248  ;;  %v3406_v56 = vpop.permute.xlu0 %243 }
  0xc6   :  { %5127 = vst [vmem:[#allocation44_spill] sm:$0xff] %v3404_v6 }
  0xc7   :  { %5128 = vst [vmem:[#allocation45_spill] sm:$0xff] %v3406_v56 }
  0xcc   :  { %525 = vperm.xlu2 %2538, %v3026_v15   ;;  %521 = vperm.xlu1 %2537, %v2998_v10   ;;  %v3410_v61 = vpop.permute.xlu2 %313 }
  0xcd   :  { %5129 = vst [vmem:[#allocation46_spill] sm:$0xff] %v3410_v61  ;;  %529 = vperm.xlu0 %2539, %v3021_v14   ;;  %v3413_v57 = vpop.permute.xlu1 %263  ;;  %v3415_v37 = vpop.permute.xlu0 %258 }
  0xce   :  { %5130 = vst [vmem:[#allocation47_spill] sm:$0xff] %v3413_v57 }
  0xcf   :  { %5131 = vst [vmem:[#allocation48_spill] sm:$0xff] %v3415_v37 }
  0xd4   :  { %537 = vperm.xlu2 %2538, %v3044_v18   ;;  %533 = vperm.xlu1 %2537, %v3016_v13   ;;  %v3419_v45 = vpop.permute.xlu2 %328 }
  0xd5   :  { %5132 = vst [vmem:[#allocation49_spill] sm:$0xff] %v3419_v45  ;;  %541 = vperm.xlu0 %2539, %v3039_v17   ;;  %v3422_v56 = vpop.permute.xlu1 %278  ;;  %v3424_v6 = vpop.permute.xlu0 %273 }
  0xd6   :  { %5133 = vst [vmem:[#allocation50_spill] sm:$0xff] %v3422_v56 }
  0xd7   :  { %5134 = vst [vmem:[#allocation51_spill] sm:$0xff] %v3424_v6 }
  0xdc   :  { %549 = vperm.xlu2 %2538, %v3062_v21   ;;  %545 = vperm.xlu1 %2537, %v3034_v16   ;;  %v3428_v61 = vpop.permute.xlu2 %343 }
  0xdd   :  { %5135 = vst [vmem:[#allocation52_spill] sm:$0xff] %v3428_v61  ;;  %553 = vperm.xlu0 %2539, %v3057_v20   ;;  %v3431_v57 = vpop.permute.xlu1 %293  ;;  %v3433_v37 = vpop.permute.xlu0 %288 }
  0xde   :  { %5136 = vst [vmem:[#allocation53_spill] sm:$0xff] %v3431_v57 }
  0xdf   :  { %5137 = vst [vmem:[#allocation54_spill] sm:$0xff] %v3433_v37 }
  0xe4   :  { %561 = vperm.xlu2 %2538, %v3080_v24   ;;  %557 = vperm.xlu1 %2537, %v3052_v19   ;;  %v3437_v45 = vpop.permute.xlu2 %358 }
  0xe5   :  { %5138 = vst [vmem:[#allocation55_spill] sm:$0xff] %v3437_v45  ;;  %565 = vperm.xlu0 %2539, %v3075_v23   ;;  %v3440_v56 = vpop.permute.xlu1 %308  ;;  %v3442_v6 = vpop.permute.xlu0 %303 }
  0xe6   :  { %5139 = vst [vmem:[#allocation56_spill] sm:$0xff] %v3440_v56 }
  0xe7   :  { %5140 = vst [vmem:[#allocation57_spill] sm:$0xff] %v3442_v6 }
  0xec   :  { %573 = vperm.xlu2 %2538, %v3098_v27   ;;  %569 = vperm.xlu1 %2537, %v3070_v22   ;;  %v3446_v61 = vpop.permute.xlu2 %373 }
  0xed   :  { %5141 = vst [vmem:[#allocation58_spill] sm:$0xff] %v3446_v61  ;;  %577 = vperm.xlu0 %2539, %v3093_v26   ;;  %v3449_v57 = vpop.permute.xlu1 %323  ;;  %v3451_v37 = vpop.permute.xlu0 %318 }
  0xee   :  { %5142 = vst [vmem:[#allocation59_spill] sm:$0xff] %v3449_v57 }
  0xef   :  { %5143 = vst [vmem:[#allocation60_spill] sm:$0xff] %v3451_v37 }
  0xf4   :  { %585 = vperm.xlu2 %2538, %v3116_v30   ;;  %581 = vperm.xlu1 %2537, %v3088_v25   ;;  %v3455_v45 = vpop.permute.xlu2 %388 }
  0xf5   :  { %5144 = vst [vmem:[#allocation61_spill] sm:$0xff] %v3455_v45  ;;  %589 = vperm.xlu0 %2539, %v3111_v29   ;;  %v3458_v56 = vpop.permute.xlu1 %338  ;;  %v3460_v6 = vpop.permute.xlu0 %333 }
  0xf6   :  { %5145 = vst [vmem:[#allocation62_spill] sm:$0xff] %v3458_v56 }
  0xf7   :  { %5146 = vst [vmem:[#allocation63_spill] sm:$0xff] %v3460_v6 }
  0xfc   :  { %597 = vperm.xlu2 %2538, %v3134_v33   ;;  %593 = vperm.xlu1 %2537, %v3106_v28   ;;  %v3464_v61 = vpop.permute.xlu2 %403 }
  0xfd   :  { %5147 = vst [vmem:[#allocation64_spill] sm:$0xff] %v3464_v61  ;;  %601 = vperm.xlu0 %2539, %v3129_v32   ;;  %v3467_v57 = vpop.permute.xlu1 %353  ;;  %v3469_v37 = vpop.permute.xlu0 %348 }
  0xfe   :  { %5148 = vst [vmem:[#allocation65_spill] sm:$0xff] %v3467_v57 }
  0xff   :  { %5149 = vst [vmem:[#allocation66_spill] sm:$0xff] %v3469_v37 }
 0x104   :  { %609 = vperm.xlu2 %2538, %v3152_v36   ;;  %605 = vperm.xlu1 %2537, %v3124_v31  }
 0x105   :  { %613 = vperm.xlu0 %2539, %v3147_v35   ;;  %v3474_v45 = vpop.permute.xlu1 %368  ;;  %v3476_v56 = vpop.permute.xlu0 %363 }
 0x106   :  { %5150 = vst [vmem:[#allocation67_spill] sm:$0xff] %v3474_v45  ;;  %v3478_v33 = vpop.permute.xlu2 %481 }
 0x107   :  { %5151 = vst [vmem:[#allocation68_spill] sm:$0xff] %v3476_v56 }
 0x10c   :  { %621 = vperm.xlu2 %2538, %v3172_v40   ;;  %617 = vperm.xlu1 %2537, %v3142_v34  }
 0x10d   :  { %625 = vperm.xlu0 %2539, %v3167_v39   ;;  %v3483_v32 = vpop.permute.xlu1 %383  ;;  %v3485_v61 = vpop.permute.xlu0 %378 }
 0x10e   :  { %5152 = vst [vmem:[#allocation69_spill] sm:$0xff] %v3483_v32  ;;  %v3487_v57 = vpop.permute.xlu2 %493 }
 0x10f   :  { %5153 = vst [vmem:[#allocation70_spill] sm:$0xff] %v3485_v61 }
 0x110   :  { %5154 = vst [vmem:[#allocation71_spill] sm:$0xff] %v3487_v57 }
 0x114   :  { %633 = vperm.xlu2 %2538, %v3192_v44   ;;  %629 = vperm.xlu1 %2537, %v3162_v38  }
 0x115   :  { %637 = vperm.xlu0 %2539, %v3187_v43   ;;  %v3492_v45 = vpop.permute.xlu1 %398  ;;  %v3494_v56 = vpop.permute.xlu0 %393 }
 0x116   :  { %5155 = vst [vmem:[#allocation72_spill] sm:$0xff] %v3492_v45  ;;  %v3496_v37 = vpop.permute.xlu2 %501 }
 0x117   :  { %5156 = vst [vmem:[#allocation73_spill] sm:$0xff] %v3494_v56 }
 0x118   :  { %5157 = vst [vmem:[#allocation74_spill] sm:$0xff] %v3496_v37 }
 0x11c   :  { %645 = vperm.xlu2 %2538, %v3212_v48   ;;  %641 = vperm.xlu1 %2537, %v3182_v42  }
 0x11d   :  { %649 = vperm.xlu0 %2539, %v3207_v47   ;;  %v3501_v32 = vpop.permute.xlu0 %408 }
 0x11e   :  { %5158 = vst [vmem:[#allocation75_spill] sm:$0xff] %v3501_v32  ;;  %v3503_v61 = vpop.permute.xlu2 %513  ;;  %v3505_v6 = vpop.permute.xlu1 %477 }
 0x11f   :  { %5159 = vst [vmem:[#allocation76_spill] sm:$0xff] %v3503_v61 }
 0x124   :  { %657 = vperm.xlu2 %2538, %v3236_v54   ;;  %653 = vperm.xlu1 %2537, %v3202_v46  }
 0x125   :  { %661 = vperm.xlu0 %2539, %v3231_v53  }
 0x126   :  { %v3510_v45 = vpop.permute.xlu2 %525  ;;  %v3512_v56 = vpop.permute.xlu1 %489 }
 0x127   :  { %5160 = vst [vmem:[#allocation77_spill] sm:$0xff] %v3510_v45  ;;  %v3514_v57 = vpop.permute.xlu0 %485 }
 0x128   :  { %5161 = vst [vmem:[#allocation78_spill] sm:$0xff] %v3512_v56 }
 0x129   :  { %5162 = vst [vmem:[#allocation79_spill] sm:$0xff] %v3514_v57 }
 0x12c   :  { %669 = vperm.xlu2 %2538, %v3260_v60   ;;  %665 = vperm.xlu1 %2537, %v3226_v52  }
 0x12d   :  { %673 = vperm.xlu0 %2539, %v3255_v59   ;;  %v5172_v59 = vld [vmem:[#allocation26_spill] sm:$0xff] }
 0x12e   :  { %v3519_v32 = vpop.permute.xlu2 %537  ;;  %v3521_v61 = vpop.permute.xlu1 %497 }
 0x12f   :  { %5163 = vst [vmem:[#allocation80_spill] sm:$0xff] %v3519_v32  ;;  %v3523_v37 = vpop.permute.xlu0 %505 }
 0x130   :  { %5164 = vst [vmem:[#allocation81_spill] sm:$0xff] %v3521_v61 }
 0x131   :  { %5165 = vst [vmem:[#allocation82_spill] sm:$0xff] %v3523_v37  ;;  %v5173_v37 = vld [vmem:[#allocation19_spill] sm:$0xff] }
 0x134   :  { %681 = vperm.xlu2 %2538, %v3284_v49   ;;  %677 = vperm.xlu1 %2537, %v3250_v58  }
 0x135   :  { %685 = vperm.xlu0 %2539, %v3279_v55  }
 0x136   :  { %v3528_v45 = vpop.permute.xlu2 %549  ;;  %v3530_v57 = vpop.permute.xlu1 %509 }
 0x137   :  { %5166 = vst [vmem:[#allocation83_spill] sm:$0xff] %v3528_v45  ;;  %v3532_v56 = vpop.permute.xlu0 %517  ;;  %v5174_v45 = vld [vmem:[#allocation25_spill] sm:$0xff] }
 0x138   :  { %5167 = vst [vmem:[#allocation84_spill] sm:$0xff] %v3530_v57 }
 0x139   :  { %5168 = vst [vmem:[#allocation85_spill] sm:$0xff] %v3532_v56 }
 0x13c   :  { %693 = vperm.xlu2 %2538, %v3308_v62   ;;  %689 = vperm.xlu1 %2537, %v3274_v0  }
 0x13d   :  { %697 = vperm.xlu0 %2539, %v3303_v63   ;;  %v5178_v63 = vld [vmem:[#allocation24_spill] sm:$0xff] }
 0x13e   :  { %v3537_v32 = vpop.permute.xlu2 %561  ;;  %v3539_v61 = vpop.permute.xlu1 %521 }
 0x13f   :  { %5169 = vst [vmem:[#allocation86_spill] sm:$0xff] %v3537_v32  ;;  %v3541_v49 = vpop.permute.xlu0 %529 }
 0x140   :  { %5170 = vst [vmem:[#allocation87_spill] sm:$0xff] %v3539_v61 }
 0x141   :  { %5171 = vst [vmem:[#allocation88_spill] sm:$0xff] %v3541_v49 }
 0x144   :  { %705 = vperm.xlu2 %2538, %v5172_v59   ;;  %701 = vperm.xlu1 %2537, %v5173_v37   ;;  %v5182_v37 = vld [vmem:[#allocation34_spill] sm:$0xff] }
 0x145   :  { %709 = vperm.xlu0 %2539, %v5174_v45   ;;  %v5183_v45 = vld [vmem:[#allocation30_spill] sm:$0xff] }
 0x146   :  { %v3546_v57 = vpop.permute.xlu2 %573  ;;  %v3548_v56 = vpop.permute.xlu1 %533 }
 0x147   :  { %5175 = vst [vmem:[#allocation26_spill] sm:$0xff] %v3546_v57  ;;  %v3550_v62 = vpop.permute.xlu0 %541  ;;  %v5081_v57 = vmov 3  }
 0x148   :  { %5176 = vst [vmem:[#allocation19_spill] sm:$0xff] %v3548_v56 }
 0x149   :  { %5177 = vst [vmem:[#allocation25_spill] sm:$0xff] %v3550_v62 }
 0x14c   :  { %717 = vperm.xlu2 %2538, %v3356_v50   ;;  %713 = vperm.xlu1 %2537, %v5178_v63  }
 0x14d   :  { %721 = vperm.xlu0 %2539, %v3351_v41  }
 0x14e   :  { %v3555_v0 = vpop.permute.xlu2 %585  ;;  %v3557_v32 = vpop.permute.xlu1 %545 }
 0x14f   :  { %5179 = vst [vmem:[#allocation24_spill] sm:$0xff] %v3555_v0  ;;  %v3559_v59 = vpop.permute.xlu0 %553  ;;  %v5083_v0 = vmov 2  }
 0x150   :  { %5180 = vst [vmem:[#allocation89_spill] sm:$0xff] %v3557_v32 }
 0x151   :  { %5181 = vst [vmem:[#allocation90_spill] sm:$0xff] %v3559_v59 }
 0x154   :  { %729 = vperm.xlu2 %2538, %v5182_v37   ;;  %725 = vperm.xlu1 %2537, %v5183_v45   ;;  %v5187_v37 = vld [vmem:[#allocation2_spill] sm:$0xff] }
 0x155   :  { %2542 = vset.pattern.permute.xlu0 %v5081_v57 }
 0x156   :  { %1375 = vperm.xlu0 %2542, %v3124_v31   ;;  %v3565_v50 = vpop.permute.xlu2 %597  ;;  %v3567_v63 = vpop.permute.xlu1 %557 }
 0x157   :  { %5184 = vst [vmem:[#allocation34_spill] sm:$0xff] %v3565_v50  ;;  %v3569_v41 = vpop.permute.xlu0 %565 }
 0x158   :  { %5185 = vst [vmem:[#allocation30_spill] sm:$0xff] %v3567_v63 }
 0x159   :  { %5186 = vst [vmem:[#allocation91_spill] sm:$0xff] %v3569_v41 }
 0x15c   :  { %2541 = vset.pattern.permute.xlu2 %v5083_v0  ;;  %2540 = vset.pattern.permute.xlu1 %v5083_v0 }
 0x15d   :  { %870 = vperm.xlu2 %2541, %v2949_v2   ;;  %866 = vperm.xlu1 %2540, %v5187_v37  }
 0x15e   :  { %2543 = vset.pattern.permute.xlu0 %v5083_v0  ;;  %v3576_v45 = vpop.permute.xlu2 %609  ;;  %v3578_v57 = vpop.permute.xlu1 %569 }
 0x15f   :  { %5188 = vst [vmem:[#allocation2_spill] sm:$0xff] %v3578_v57  ;;  %862 = vperm.xlu0 %2543, %v2954_v3   ;;  %v3581_v50 = vpop.permute.xlu0 %577 }
 0x160   :  { %5189 = vst [vmem:[#allocation92_spill] sm:$0xff] %v3581_v50 }
 0x165   :  { %878 = vperm.xlu2 %2541, %v2944_v1   ;;  %874 = vperm.xlu1 %2540, %v2967_v5  }
 0x166   :  { %v3585_v41 = vpop.permute.xlu2 %621  ;;  %v3587_v63 = vpop.permute.xlu1 %581 }
 0x167   :  { %5190 = vst [vmem:[#allocation93_spill] sm:$0xff] %v3587_v63  ;;  %882 = vperm.xlu0 %2543, %v2962_v4   ;;  %v3590_v59 = vpop.permute.xlu0 %589 }
 0x168   :  { %5191 = vst [vmem:[#allocation94_spill] sm:$0xff] %v3590_v59 }
 0x16d   :  { %890 = vperm.xlu2 %2541, %v2985_v8   ;;  %886 = vperm.xlu1 %2540, %v2990_v9  }
 0x16e   :  { %v3594_v0 = vpop.permute.xlu2 %633  ;;  %v3596_v57 = vpop.permute.xlu1 %593 }
 0x16f   :  { %5192 = vst [vmem:[#allocation95_spill] sm:$0xff] %v3596_v57  ;;  %894 = vperm.xlu0 %2543, %v2980_v7   ;;  %v3599_v50 = vpop.permute.xlu0 %601 }
 0x170   :  { %5193 = vst [vmem:[#allocation96_spill] sm:$0xff] %v3599_v50 }
 0x175   :  { %902 = vperm.xlu2 %2541, %v3003_v11   ;;  %898 = vperm.xlu1 %2540, %v3008_v12  }
 0x176   :  { %v3603_v63 = vpop.permute.xlu2 %645  ;;  %v3605_v62 = vpop.permute.xlu1 %605 }
 0x177   :  { %5194 = vst [vmem:[#allocation97_spill] sm:$0xff] %v3603_v63  ;;  %906 = vperm.xlu0 %2543, %v2998_v10   ;;  %v3608_v59 = vpop.permute.xlu0 %613 }
 0x17d   :  { %914 = vperm.xlu2 %2541, %v3021_v14   ;;  %910 = vperm.xlu1 %2540, %v3026_v15  }
 0x17e   :  { %v3612_v57 = vpop.permute.xlu2 %657  ;;  %v3614_v32 = vpop.permute.xlu1 %617 }
 0x17f   :  { %5195 = vst [vmem:[#allocation98_spill] sm:$0xff] %v3612_v57  ;;  %918 = vperm.xlu0 %2543, %v3016_v13   ;;  %v3617_v50 = vpop.permute.xlu0 %625 }
 0x185   :  { %926 = vperm.xlu2 %2541, %v3039_v17   ;;  %922 = vperm.xlu1 %2540, %v3044_v18  }
 0x186   :  { %v3621_v56 = vpop.permute.xlu2 %669  ;;  %v3623_v63 = vpop.permute.xlu1 %629 }
 0x187   :  { %5196 = vst [vmem:[#allocation99_spill] sm:$0xff] %v3621_v56  ;;  %930 = vperm.xlu0 %2543, %v3034_v16   ;;  %v3626_v49 = vpop.permute.xlu0 %637 }
 0x188   :  { %5197 = vst [vmem:[#allocation100_spill] sm:$0xff] %v3626_v49 }
 0x18d   :  { %938 = vperm.xlu2 %2541, %v3057_v20   ;;  %934 = vperm.xlu1 %2540, %v3062_v21  }
 0x18e   :  { %v3630_v57 = vpop.permute.xlu2 %681  ;;  %v3632_v13 = vpop.permute.xlu1 %641 }
 0x18f   :  { %5198 = vst [vmem:[#allocation101_spill] sm:$0xff] %v3630_v57  ;;  %942 = vperm.xlu0 %2543, %v3052_v19   ;;  %v3635_v17 = vpop.permute.xlu0 %649 }
 0x195   :  { %950 = vperm.xlu2 %2541, %v3075_v23   ;;  %946 = vperm.xlu1 %2540, %v3080_v24  }
 0x196   :  { %v3639_v56 = vpop.permute.xlu2 %693  ;;  %v3641_v61 = vpop.permute.xlu1 %653 }
 0x197   :  { %5199 = vst [vmem:[#allocation102_spill] sm:$0xff] %v3639_v56  ;;  %954 = vperm.xlu0 %2543, %v3070_v22   ;;  %v3644_v49 = vpop.permute.xlu0 %661 }
 0x19d   :  { %962 = vperm.xlu2 %2541, %v3093_v26   ;;  %958 = vperm.xlu1 %2540, %v3098_v27  }
 0x19e   :  { %v3648_v21 = vpop.permute.xlu2 %705  ;;  %v3650_v19 = vpop.permute.xlu1 %665 }
 0x19f   :  { %5200 = vst [vmem:[#allocation103_spill] sm:$0xff] %v3648_v21  ;;  %966 = vperm.xlu0 %2543, %v3088_v25   ;;  %v3653_v23 = vpop.permute.xlu0 %673 }
 0x1a0   :  { %5201 = vst [vmem:[#allocation104_spill] sm:$0xff] %v3653_v23 }
 0x1a5   :  { %974 = vperm.xlu2 %2541, %v3111_v29   ;;  %970 = vperm.xlu1 %2540, %v3116_v30   ;;  %v5208_v30 = vmov 3  }
 0x1a6   :  { %v3657_v24 = vpop.permute.xlu2 %717  ;;  %v3659_v22 = vpop.permute.xlu1 %677 }
 0x1a7   :  { %5202 = vst [vmem:[#allocation105_spill] sm:$0xff] %v3657_v24  ;;  %978 = vperm.xlu0 %2543, %v3106_v28   ;;  %v3662_v26 = vpop.permute.xlu0 %685  ;;  %v5211_v24 = vmov 2  }
 0x1a8   :  { %5203 = vst [vmem:[#allocation106_spill] sm:$0xff] %v3659_v22 }
 0x1a9   :  { %5204 = vst [vmem:[#allocation107_spill] sm:$0xff] %v3662_v26 }
 0x1ad   :  { %994 = vperm.xlu2 %2541, %v3152_v36   ;;  %990 = vperm.xlu1 %2540, %v3124_v31  }
 0x1ae   :  { %v3666_v27 = vpop.permute.xlu2 %729  ;;  %v3668_v25 = vpop.permute.xlu1 %689 }
 0x1af   :  { %5205 = vst [vmem:[#allocation108_spill] sm:$0xff] %v3666_v27  ;;  %1002 = vperm.xlu0 %2543, %v3142_v34   ;;  %v3671_v29 = vpop.permute.xlu0 %697 }
 0x1b0   :  { %5206 = vst [vmem:[#allocation109_spill] sm:$0xff] %v3668_v25 }
 0x1b1   :  { %5207 = vst [vmem:[#allocation110_spill] sm:$0xff] %v3671_v29 }
 0x1b5   :  { %2545 = vset.pattern.permute.xlu2 %v5208_v30  ;;  %2544 = vset.pattern.permute.xlu1 %v5208_v30 }
 0x1b6   :  { %1247 = vperm.xlu2 %2545, %v2954_v3   ;;  %1379 = vperm.xlu1 %2544, %v3152_v36   ;;  %v3677_v28 = vpop.permute.xlu1 %701 }
 0x1b7   :  { %5209 = vst [vmem:[#allocation111_spill] sm:$0xff] %v3677_v28  ;;  %1006 = vperm.xlu0 %2543, %v3172_v40   ;;  %v3680_v31 = vpop.permute.xlu0 %709  ;;  %v3682_v27 = vpop.permute.xlu2 %870 }
 0x1b8   :  { %5210 = vst [vmem:[#allocation112_spill] sm:$0xff] %v3680_v31 }
 0x1be   :  { %2546 = vset.pattern.permute.xlu2 %v5211_v24  ;;  %1251 = vperm.xlu1 %2544, %v5187_v37   ;;  %v3686_v21 = vpop.permute.xlu1 %713 }
 0x1bf   :  { %5212 = vst [vmem:[#allocation113_spill] sm:$0xff] %v3686_v21  ;;  %2549 = vset.pattern.permute.xlu0 %v5208_v30  ;;  %v3689_v29 = vpop.permute.xlu2 %878  ;;  %998 = vperm.xlu2 %2546, %v3147_v35   ;;  %v3692_v3 = vpop.permute.xlu0 %721 }
 0x1c0   :  { %5213 = vst [vmem:[#allocation114_spill] sm:$0xff] %v3692_v3  ;;  %1395 = vperm.xlu0 %2549, %v3167_v39  }
 0x1c6   :  { %1383 = vperm.xlu1 %2544, %v3147_v35   ;;  %v3696_v36 = vpop.permute.xlu1 %725 }
 0x1c7   :  { %5214 = vst [vmem:[#allocation115_spill] sm:$0xff] %v3696_v36  ;;  %v3698_v31 = vpop.permute.xlu2 %890  ;;  %2547 = vset.pattern.permute.xlu2 %v5208_v30 }
 0x1c8   :  { %1399 = vperm.xlu0 %2549, %v3162_v38   ;;  %1387 = vperm.xlu2 %2547, %v3142_v34   ;;  %v3703_v37 = vpop.permute.xlu0 %1375 }
 0x1ce   :  { %1255 = vperm.xlu1 %2544, %v2949_v2  }
 0x1cf   :  { %v3706_v21 = vpop.permute.xlu2 %902  ;;  %v3708_v3 = vpop.permute.xlu1 %866 }
 0x1d0   :  { %1275 = vperm.xlu0 %2549, %v2985_v8   ;;  %1259 = vperm.xlu2 %2547, %v2967_v5  }
 0x1d1   :  { %v3712_v35 = vpop.permute.xlu0 %862 }
 0x1d6   :  { %2548 = vset.pattern.permute.xlu1 %v5211_v24 }
 0x1d7   :  { %v3715_v36 = vpop.permute.xlu2 %914  ;;  %1010 = vperm.xlu1 %2548, %v3167_v39   ;;  %v3718_v34 = vpop.permute.xlu1 %874 }
 0x1d8   :  { %1407 = vperm.xlu0 %2549, %v3187_v43   ;;  %1391 = vperm.xlu2 %2547, %v3172_v40  }
 0x1d9   :  { %v3722_v2 = vpop.permute.xlu0 %882 }
 0x1df   :  { %v3724_v28 = vpop.permute.xlu2 %926  ;;  %2550 = vset.pattern.permute.xlu1 %v5208_v30  ;;  %v3727_v5 = vpop.permute.xlu1 %886 }
 0x1e0   :  { %1283 = vperm.xlu0 %2549, %v3008_v12   ;;  %1267 = vperm.xlu2 %2547, %v2962_v4  }
 0x1e1   :  { %1263 = vperm.xlu1 %2550, %v2944_v1   ;;  %v3732_v8 = vpop.permute.xlu0 %894 }
 0x1e7   :  { %v3734_v39 = vpop.permute.xlu2 %938  ;;  %v3736_v56 = vpop.permute.xlu1 %898 }
 0x1e8   :  { %5215 = vst [vmem:[#allocation116_spill] sm:$0xff] %v3734_v39  ;;  %1415 = vperm.xlu0 %2549, %v3212_v48   ;;  %2552 = vset.pattern.permute.xlu2 %v5211_v24  ;;  %v5227_v39 = vld [vmem:[#allocation48_spill] sm:$0xff] }
 0x1e9   :  { %2551 = vset.pattern.permute.xlu1 %v5211_v24  ;;  %v3741_v40 = vpop.permute.xlu0 %906  ;;  %1018 = vperm.xlu2 %2552, %v3192_v44  }
 0x1ea   :  { %1014 = vperm.xlu1 %2551, %v3162_v38  }
 0x1ef   :  { %v3745_v4 = vpop.permute.xlu2 %950  ;;  %v3747_v1 = vpop.permute.xlu1 %910 }
 0x1f0   :  { %5216 = vst [vmem:[#allocation117_spill] sm:$0xff] %v3745_v4  ;;  %1291 = vperm.xlu0 %2549, %v2998_v10   ;;  %v2505_v10 = vld [vmem:[%s5065_s3 + $0x38] sm:$0xff]  ;;  %v2503_v4 = vld [vmem:[%s5065_s3 + $0x28] sm:$0xff] }
 0x1f1   :  { %v3750_v12 = vpop.permute.xlu0 %918  ;;  %2554 = vset.pattern.permute.xlu2 %v5208_v30  ;;  %2514 = vmatpush.bf16.msra.mxu2 %v2505_v10 }
 0x1f2   :  { %2553 = vset.pattern.permute.xlu1 %v5208_v30  ;;  %1271 = vperm.xlu2 %2554, %v2990_v9   ;;  %v2504_v9 = vld [vmem:[%s5065_s3 + $0x30] sm:$0xff] }
 0x1f3   :  { %1403 = vperm.xlu1 %2553, %v3192_v44   ;;  %1863 = vmatpush.bf16.msra.mxu0 %v2505_v10 }
 0x1f5   :  { %2515 = vmatpush.bf16.msra.mxu2 %v2504_v9 }
 0x1f7   :  { %v3756_v25 = vpop.permute.xlu2 %962  ;;  %v3758_v26 = vpop.permute.xlu1 %922  ;;  %1864 = vmatpush.bf16.msra.mxu0 %v2504_v9  ;;  %v2501_v9 = vld [vmem:[%s5065_s3 + $0x18] sm:$0xff] }
 0x1f8   :  { %5217 = vst [vmem:[#allocation118_spill] sm:$0xff] %v3756_v25  ;;  %1423 = vperm.xlu0 %2549, %v3202_v46  }
 0x1f9   :  { %v3764_v38 = vpop.permute.xlu0 %930  ;;  %2516 = vmatpush.bf16.msra.mxu2 %v2503_v4 }
 0x1fa   :  { %2556 = vset.pattern.permute.xlu2 %v5211_v24 }
 0x1fb   :  { %2555 = vset.pattern.permute.xlu1 %v5211_v24  ;;  %1026 = vperm.xlu2 %2556, %v3182_v42  }
 0x1fc   :  { %1022 = vperm.xlu1 %2555, %v3187_v43   ;;  %v2502_v43 = vld [vmem:[%s5065_s3 + $0x20] sm:$0xff]  ;;  %1865 = vmatpush.bf16.msra.mxu0 %v2503_v4 }
 0x1fd   :  { %2517 = vmatpush.bf16.msra.mxu2 %v2502_v43 }
 0x1ff   :  { %v3773_v44 = vpop.permute.xlu2 %974  ;;  %v3775_v25 = vpop.permute.xlu1 %934 }
 0x200   :  { %5218 = vst [vmem:[#allocation119_spill] sm:$0xff] %v3773_v44  ;;  %1299 = vperm.xlu0 %2549, %v3021_v14   ;;  %1866 = vmatpush.bf16.msra.mxu0 %v2502_v43  ;;  %v2499_v43 = vld [vmem:[%s5065_s3 + $0x8] sm:$0xff] }
 0x201   :  { %5219 = vst [vmem:[#allocation120_spill] sm:$0xff] %v3775_v25  ;;  %v3781_v57 = vpop.permute.xlu0 %942  ;;  %2518 = vmatpush.bf16.msra.mxu2 %v2501_v9 }
 0x202   :  { %5220 = vst [vmem:[#allocation121_spill] sm:$0xff] %v3781_v57  ;;  %v2498_v57 = vld [vmem:[%s5065_s3] sm:$0xff] }
 0x203   :  { %2558 = vset.pattern.permute.xlu2 %v5208_v30 }
 0x204   :  { %2557 = vset.pattern.permute.xlu1 %v5208_v30  ;;  %1279 = vperm.xlu2 %2558, %v2980_v7   ;;  %v2500_v7 = vld [vmem:[%s5065_s3 + $0x10] sm:$0xff] }
 0x205   :  { %1411 = vperm.xlu1 %2557, %v3182_v42   ;;  %2519 = vmatpush.bf16.msra.mxu2 %v2500_v7 }
 0x206   :  { %1867 = vmatpush.bf16.msra.mxu0 %v2501_v9 }
 0x207   :  { %v995_v14 = vpop.permute.xlu2 %994  ;;  %v3790_v10 = vpop.permute.xlu1 %946 }
 0x208   :  { %5221 = vst [vmem:[#allocation122_spill] sm:$0xff] %v3790_v10  ;;  %1431 = vperm.xlu0 %2549, %v3231_v53  }
 0x209   :  { %v3796_v44 = vpop.permute.xlu0 %954  ;;  %2520 = vmatpush.bf16.msra.mxu2 %v2499_v43 }
 0x20a   :  { %5222 = vst [vmem:[#allocation123_spill] sm:$0xff] %v3796_v44  ;;  %1868 = vmatpush.bf16.msra.mxu0 %v2500_v7 }
 0x20c   :  { %2560 = vset.pattern.permute.xlu2 %v5211_v24 }
 0x20d   :  { %2559 = vset.pattern.permute.xlu1 %v5211_v24  ;;  %1034 = vperm.xlu2 %2560, %v3207_v47  }
 0x20e   :  { %1030 = vperm.xlu1 %2559, %v3212_v48   ;;  %2521 = vmatpush.bf16.msra.mxu2 %v2498_v57  ;;  %v90_v48 = vld [vmem:[%s5066_s1] sm:$0xf] }
 0x20f   :  { %v3805_v42 = vpop.permute.xlu1 %958  ;;  %1869 = vmatpush.bf16.msra.mxu0 %v2499_v43  ;;  %v3838_v43 = vperm.slane %v90_v48, 2  ;;  %v3843_v22 = vperm.slane %v90_v48, 3 }
 0x210   :  { %5223 = vst [vmem:[#allocation124_spill] sm:$0xff] %v3805_v42  ;;  %1307 = vperm.xlu0 %2549, %v3044_v18   ;;  %v1248_v4 = vpop.permute.xlu2 %1247  ;;  %v3832_v42 = vperm.slane %v90_v48, 0 }
 0x211   :  { %v3811_v44 = vpop.permute.xlu0 %966  ;;  %v1535_v25 = vmul.f32 %v3843_v22, %v3703_v37  ;;  %v3865_v37 = vld [vmem:[%s5064_s2] ss:$0 sm:$0xff] }
 0x212   :  { %5224 = vst [vmem:[#allocation125_spill] sm:$0xff] %v3811_v44  ;;  %v3830_v44 = vperm.slane %v90_v48, 1  ;;  %v1151_v48 = vmul.f32 %v3838_v43, %v995_v14  ;;  %v1503_v14 = vmul.f32 %v3843_v22, %v1248_v4  ;;  %v5230_v4 = vld [vmem:[#allocation37_spill] sm:$0xff] }
 0x213   :  { %1870 = vmatpush.bf16.msra.mxu0 %v2498_v57 }
 0x214   :  { %v766_v23 = vmul.f32 %v3830_v44, %v3576_v45  ;;  %v1118_v45 = vmul.f32 %v3838_v43, %v3712_v35 }
 0x215   :  { %2562 = vset.pattern.permute.xlu2 %v5208_v30 }
 0x216   :  { %2561 = vset.pattern.permute.xlu1 %v5208_v30  ;;  %1287 = vperm.xlu2 %2562, %v3003_v11   ;;  %v765_v11 = vmul.f32 %v3830_v44, %v3605_v62 }
 0x217   :  { %1419 = vperm.xlu1 %2561, %v3207_v47   ;;  %v3820_v18 = vpop.permute.xlu1 %970  ;;  %v444_v47 = vmul.f32 %v3832_v42, %v3375_v51 }
 0x218   :  { %5225 = vst [vmem:[#allocation126_spill] sm:$0xff] %v3820_v18  ;;  %1439 = vperm.xlu0 %2549, %v3260_v60  }
 0x219   :  { %v3826_v9 = vpop.permute.xlu0 %978  ;;  %v3828_v7 = vpop.permute.xlu2 %998  ;;  %v829_v18 = vadd.f32 %v765_v11, %v444_v47  ;;  %v445_v11 = vmul.f32 %v3832_v42, %v5227_v39 }
 0x21a   :  { %5226 = vst [vmem:[#allocation127_spill] sm:$0xff] %v3826_v9 }
 0x21b   :  { %v830_v47 = vadd.f32 %v766_v23, %v445_v11  ;;  %v734_v11 = vmul.f32 %v3830_v44, %v3478_v33 }
 0x21e   :  { %2564 = vset.pattern.permute.xlu2 %v5211_v24 }
 0x21f   :  { %2563 = vset.pattern.permute.xlu1 %v5211_v24  ;;  %1042 = vperm.xlu2 %2564, %v3236_v54   ;;  %v991_v9 = vpop.permute.xlu1 %990 }
 0x220   :  { %1038 = vperm.xlu1 %2563, %v3202_v46   ;;  %v1150_v62 = vmul.f32 %v3838_v43, %v991_v9  ;;  %1315 = vperm.xlu0 %2549, %v3034_v16   ;;  %v733_v46 = vmul.f32 %v3830_v44, %v3505_v6  ;;  %v5228_v16 = vld [vmem:[#allocation8_spill] sm:$0xff] }
 0x221   :  { %v1003_v57 = vpop.permute.xlu0 %1002 }
 0x222   :  { %v1214_v51 = vadd.f32 %v1150_v62, %v829_v18  ;;  %v1388_v10 = vpop.permute.xlu2 %1387  ;;  %v412_v18 = vmul.f32 %v3832_v42, %v5228_v16  ;;  %v1119_v16 = vmul.f32 %v3838_v43, %v3708_v3  ;;  %v1153_v33 = vmul.f32 %v3838_v43, %v1003_v57 }
 0x224   :  { %v1599_v9 = vadd.f32 %v1535_v25, %v1214_v51  ;;  %v1215_v25 = vadd.f32 %v1151_v48, %v830_v47  ;;  %v797_v35 = vadd.f32 %v733_v46, %v412_v18  ;;  %v768_v48 = vmul.f32 %v3830_v44, %v3614_v32  ;;  %v5229_v47 = vld [vmem:[#allocation11_spill] sm:$0xff] }
 0x226   :  { %v1667_v62 = vadd.f32 %v3865_v37, %v1599_v9  ;;  %v447_v9 = vmul.f32 %v3832_v42, %v5230_v4 }
 0x227   :  { %2566 = vset.pattern.permute.xlu2 %v5208_v30 }
 0x228   :  { %2565 = vset.pattern.permute.xlu1 %v5208_v30  ;;  %1447 = vperm.xlu0 %2549, %v3250_v58   ;;  %v1380_v6 = vpop.permute.xlu1 %1379  ;;  %2608 = vtanh.f32 %v1667_v62  ;;  %v767_v62 = vmul.f32 %v3830_v44, %v3608_v59  ;;  %v5233_v59 = vld [vmem:[#allocation10_spill] sm:$0xff] }
 0x229   :  { %1295 = vperm.xlu2 %2566, %v3026_v15   ;;  %1427 = vperm.xlu1 %2565, %v3236_v54   ;;  %v1536_v23 = vmul.f32 %v3843_v22, %v1380_v6  ;;  %v3872_v39 = vpop.permute.xlu0 %1006  ;;  %v1182_v15 = vadd.f32 %v1118_v45, %v797_v35  ;;  %v413_v54 = vmul.f32 %v3832_v42, %v5229_v47 }
 0x22a   :  { %v1260_v51 = vpop.permute.xlu2 %1259 }
 0x22b   :  { %v1600_v58 = vadd.f32 %v1536_v23, %v1215_v25  ;;  %v1567_v18 = vadd.f32 %v1503_v14, %v1182_v15  ;;  %v798_v6 = vadd.f32 %v734_v11, %v413_v54  ;;  %v832_v25 = vadd.f32 %v768_v48, %v447_v9  ;;  %v5231_v15 = vld [vmem:[#allocation47_spill] sm:$0xff] }
 0x22c   :  { %v1538_v14 = vmul.f32 %v3843_v22, %v1388_v10  ;;  %v446_v47 = vmul.f32 %v3832_v42, %v5231_v15  ;;  %v1152_v10 = vmul.f32 %v3838_v43, %v3828_v7 }
 0x22d   :  { %v1668_v46 = vadd.f32 %v3865_v37, %v1600_v58  ;;  %v1183_v45 = vadd.f32 %v1119_v16, %v798_v6  ;;  %v1635_v23 = vadd.f32 %v3865_v37, %v1567_v18  ;;  %v1217_v35 = vadd.f32 %v1153_v33, %v832_v25  ;;  %v5232_v16 = vld [vmem:[#allocation78_spill] sm:$0xff] }
 0x22e   :  { %v2609_v58 = vpop.eup %2608  ;;  %v831_v9 = vadd.f32 %v767_v62, %v446_v47  ;;  %v415_v18 = vmul.f32 %v3832_v42, %v5233_v59  ;;  %v1121_v33 = vmul.f32 %v3838_v43, %v3718_v34  ;;  %v5234_v34 = vld [vmem:[#allocation79_spill] sm:$0xff]  ;;  %v2864_v62 = vld [vmem:[%s5063_s0 + $0x70] sm:$0xff]  ;;  %v1120_v47 = vmul.f32 %v3838_v43, %v3682_v27 }
 0x22f   :  { %2610 = vtanh.f32 %v1668_v46  ;;  %v1602_v46 = vadd.f32 %v1538_v14, %v1217_v35 }
 0x230   :  { %1323 = vperm.xlu0 %2549, %v3057_v20   ;;  %v1252_v32 = vpop.permute.xlu1 %1251  ;;  %2612 = vtanh.f32 %v1635_v23  ;;  %v1216_v7 = vadd.f32 %v1152_v10, %v831_v9  ;;  %v5236_v9 = vld [vmem:[#allocation82_spill] sm:$0xff] }
 0x231   :  { %2568 = vset.pattern.permute.xlu2 %v5211_v24  ;;  %2567 = vset.pattern.permute.xlu1 %v5211_v24  ;;  %v1504_v3 = vmul.f32 %v3843_v22, %v1252_v32  ;;  %v740_v27 = vmul.f32 %v3830_v44, %v5236_v9 }
 0x232   :  { %1050 = vperm.xlu2 %2568, %v3226_v52   ;;  %1046 = vperm.xlu1 %2567, %v3231_v53   ;;  %v3896_v57 = vpop.permute.xlu0 %1395  ;;  %v3898_v20 = vpop.permute.xlu2 %1391  ;;  %v736_v53 = vmul.f32 %v3830_v44, %v5232_v16 }
 0x233   :  { %v1568_v11 = vadd.f32 %v1504_v3, %v1183_v45  ;;  %v1670_v45 = vadd.f32 %v3865_v37, %v1602_v46  ;;  %v1506_v3 = vmul.f32 %v3843_v22, %v1260_v51  ;;  %v769_v46 = vmul.f32 %v3830_v44, %v3585_v41 }
 0x234   :  { %v800_v32 = vadd.f32 %v736_v53, %v415_v18 }
 0x235   :  { %v2611_v48 = vpop.eup %2610  ;;  %v1636_v54 = vadd.f32 %v3865_v37, %v1568_v11 }
 0x236   :  { %v1779_v4 = vpack.c.bf16 %v2611_v48, %v2609_v58  ;;  %v2613_v51 = vpop.eup %2612  ;;  %v1185_v11 = vadd.f32 %v1121_v33, %v800_v32  ;;  %v5235_v48 = vld [vmem:[#allocation7_spill] sm:$0xff]  ;;  %v5238_v32 = vld [vmem:[#allocation14_spill] sm:$0xff] }
 0x237   :  { %2614 = vtanh.f32 %v1636_v54  ;;  %v414_v15 = vmul.f32 %v3832_v42, %v5235_v48  ;;  %v5237_v33 = vld [vmem:[#allocation51_spill] sm:$0xff] }
 0x238   :  { %1455 = vperm.xlu0 %2549, %v3279_v55   ;;  %v1384_v6 = vpop.permute.xlu1 %1383  ;;  %1951 = vmatmul.bf16.vlgmr.msra.gmra.mxu2 %v1779_v4  ;;  %v735_v55 = vmul.f32 %v3830_v44, %v5234_v34  ;;  %2616 = vtanh.f32 %v1670_v45  ;;  %v1570_v54 = vadd.f32 %v1506_v3, %v1185_v11  ;;  %v419_v45 = vmul.f32 %v3832_v42, %v5238_v32 }
 0x239   :  { %v1537_v25 = vmul.f32 %v3843_v22, %v1384_v6  ;;  %v448_v6 = vmul.f32 %v3832_v42, %v5237_v33  ;;  %v1125_v3 = vmul.f32 %v3838_v43, %v3698_v31  ;;  %v1540_v32 = vmul.f32 %v3843_v22, %v3896_v57 }
 0x23a   :  { %2570 = vset.pattern.permute.xlu2 %v5208_v30  ;;  %2569 = vset.pattern.permute.xlu1 %v5208_v30  ;;  %v3919_v23 = vpop.permute.xlu0 %1399  ;;  %v3921_v35 = vpop.permute.xlu2 %1267  ;;  %v799_v53 = vadd.f32 %v735_v55, %v414_v15  ;;  %v1638_v41 = vadd.f32 %v3865_v37, %v1570_v54  ;;  %v804_v48 = vadd.f32 %v740_v27, %v419_v45 }
 0x23b   :  { %v1601_v14 = vadd.f32 %v1537_v25, %v1216_v7  ;;  %1303 = vperm.xlu2 %2570, %v2864_v62   ;;  %1435 = vperm.xlu1 %2569, %v3226_v52   ;;  %v2865_v52 = vld [vmem:[%s5063_s0 + $0xa8] sm:$0xff]  ;;  %v1154_v7 = vmul.f32 %v3838_v43, %v3872_v39  ;;  %v833_v62 = vadd.f32 %v769_v46, %v448_v6  ;;  %v5242_v46 = vld [vmem:[#allocation81_spill] sm:$0xff] }
 0x23c   :  { %v1184_v59 = vadd.f32 %v1120_v47, %v799_v53  ;;  %v1539_v39 = vmul.f32 %v3843_v22, %v3898_v20  ;;  %v5241_v20 = vld [vmem:[#allocation15_spill] sm:$0xff]  ;;  %v1124_v27 = vmul.f32 %v3838_v43, %v3727_v5  ;;  %v1123_v5 = vmul.f32 %v3838_v43, %v3722_v2  ;;  %v2866_v2 = vld [vmem:[%s5063_s0 + $0x80] sm:$0xff] }
 0x23d   :  { %v2615_v58 = vpop.eup %2614  ;;  %v1669_v10 = vadd.f32 %v3865_v37, %v1601_v14  ;;  %v1218_v54 = vadd.f32 %v1154_v7, %v833_v62  ;;  %v418_v53 = vmul.f32 %v3832_v42, %v5241_v20  ;;  %v1508_v57 = vmul.f32 %v3843_v22, %v3921_v35 }
 0x23e   :  { %v1763_v16 = vpack.c.bf16 %v2615_v58, %v2613_v51  ;;  %v2617_v14 = vpop.eup %2616  ;;  %v5239_v51 = vld [vmem:[#allocation12_spill] sm:$0xff]  ;;  %v5240_v58 = vld [vmem:[#allocation74_spill] sm:$0xff] }
 0x23f   :  { %2618 = vtanh.f32 %v1669_v10  ;;  %v739_v31 = vmul.f32 %v3830_v44, %v5240_v58  ;;  %v770_v10 = vmul.f32 %v3830_v44, %v3617_v50  ;;  %v5245_v50 = vld [vmem:[#allocation4_spill] sm:$0xff] }
 0x240   :  { %1331 = vperm.xlu0 %2549, %v2865_v52   ;;  %v1256_v4 = vpop.permute.xlu1 %1255  ;;  %1871 = vmatmul.bf16.vlgmr.msra.gmra.mxu0 %v1763_v16  ;;  %2620 = vtanh.f32 %v1638_v41  ;;  %v1189_v52 = vadd.f32 %v1125_v3, %v804_v48  ;;  %v417_v33 = vmul.f32 %v3832_v42, %v5245_v50 }
 0x241   :  { %v1505_v18 = vmul.f32 %v3843_v22, %v1256_v4  ;;  %v5243_v4 = vld [vmem:[#allocation50_spill] sm:$0xff]  ;;  %v803_v41 = vadd.f32 %v739_v31, %v418_v53  ;;  %v5247_v53 = vld [vmem:[#allocation3_spill] sm:$0xff] }
 0x242   :  { %v1276_v25 = vpop.permute.xlu0 %1275  ;;  %v449_v9 = vmul.f32 %v3832_v42, %v5243_v4  ;;  %v2868_v4 = vld [vmem:[%s5063_s0 + $0xb8] sm:$0xff] }
 0x243   :  { %v1569_v34 = vadd.f32 %v1505_v18, %v1184_v59  ;;  %2572 = vset.pattern.permute.xlu2 %v5211_v24  ;;  %2571 = vset.pattern.permute.xlu1 %v5211_v24  ;;  %v3953_v55 = vpop.permute.xlu2 %1018  ;;  %v1510_v47 = vmul.f32 %v3843_v22, %v1276_v25  ;;  %v1603_v59 = vadd.f32 %v1539_v39, %v1218_v54  ;;  %v5244_v18 = vld [vmem:[#allocation20_spill] sm:$0xff] }
 0x244   :  { %1058 = vperm.xlu2 %2572, %v5239_v51   ;;  %1054 = vperm.xlu1 %2571, %v3260_v60   ;;  %v738_v60 = vmul.f32 %v3830_v44, %v5242_v46  ;;  %v834_v25 = vadd.f32 %v770_v10, %v449_v9  ;;  %v1188_v62 = vadd.f32 %v1124_v27, %v803_v41 }
 0x245   :  { %v2619_v11 = vpop.eup %2618  ;;  %v1637_v15 = vadd.f32 %v3865_v37, %v1569_v34  ;;  %v1574_v6 = vadd.f32 %v1510_v47, %v1189_v52  ;;  %v1671_v39 = vadd.f32 %v3865_v37, %v1603_v59  ;;  %v5246_v47 = vld [vmem:[#allocation71_spill] sm:$0xff]  ;;  %v416_v46 = vmul.f32 %v3832_v42, %v5247_v53 }
 0x246   :  { %v1780_v16 = vpack.c.bf16 %v2617_v14, %v2619_v11  ;;  %v802_v34 = vadd.f32 %v738_v60, %v417_v33  ;;  %v2621_v14 = vpop.eup %2620  ;;  %v737_v10 = vmul.f32 %v3830_v44, %v5246_v47  ;;  %v1122_v60 = vmul.f32 %v3838_v43, %v3689_v29  ;;  %v5248_v33 = vld [vmem:[#allocation76_spill] sm:$0xff] }
 0x247   :  { %2622 = vtanh.f32 %v1637_v15  ;;  %v1642_v31 = vadd.f32 %v3865_v37, %v1574_v6  ;;  %v2867_v15 = vld [vmem:[%s5063_s0 + $0x188] sm:$0xff]  ;;  %v742_v29 = vmul.f32 %v3830_v44, %v5248_v33  ;;  %v771_v47 = vmul.f32 %v3830_v44, %v3623_v63 }
 0x248   :  { %1463 = vperm.xlu0 %2549, %v5244_v18   ;;  %1956 = vmatmul.bf16.gmra.mxu2 %v1780_v16  ;;  %v1187_v35 = vadd.f32 %v1123_v5, %v802_v34  ;;  %2624 = vtanh.f32 %v1671_v39  ;;  %v801_v59 = vadd.f32 %v737_v10, %v416_v46  ;;  %v5252_v46 = vld [vmem:[#allocation40_spill] sm:$0xff]  ;;  %v1541_v33 = vmul.f32 %v3843_v22, %v3919_v23 }
 0x249   :  { %v1011_v7 = vpop.permute.xlu1 %1010  ;;  %2626 = vtanh.f32 %v1642_v31 }
 0x24a   :  { %v1155_v45 = vmul.f32 %v3838_v43, %v1011_v7  ;;  %v3979_v3 = vpop.permute.xlu0 %1407  ;;  %v1572_v9 = vadd.f32 %v1508_v57, %v1187_v35  ;;  %v1186_v6 = vadd.f32 %v1122_v60, %v801_v59  ;;  %v5250_v57 = vld [vmem:[#allocation84_spill] sm:$0xff]  ;;  %v1126_v35 = vmul.f32 %v3838_v43, %v3732_v8 }
 0x24b   :  { %v741_v31 = vmul.f32 %v3830_v44, %v5250_v57  ;;  %v450_v60 = vmul.f32 %v3832_v42, %v5252_v46  ;;  %v2875_v46 = vld [vmem:[%s5063_s0 + $0x1a0] sm:$0xff] }
 0x24c   :  { %v1219_v51 = vadd.f32 %v1155_v45, %v834_v25  ;;  %2574 = vset.pattern.permute.xlu2 %v5208_v30  ;;  %2573 = vset.pattern.permute.xlu1 %v5208_v30  ;;  %v1272_v11 = vpop.permute.xlu2 %1271  ;;  %v1640_v41 = vadd.f32 %v3865_v37, %v1572_v9  ;;  %v5249_v45 = vld [vmem:[#allocation18_spill] sm:$0xff] }
 0x24d   :  { %v2623_v58 = vpop.eup %2622  ;;  %1311 = vperm.xlu2 %2574, %v2866_v2   ;;  %v1509_v48 = vmul.f32 %v3843_v22, %v1272_v11  ;;  %1443 = vperm.xlu1 %2573, %v2867_v15   ;;  %v421_v34 = vmul.f32 %v3832_v42, %v5249_v45  ;;  %v835_v9 = vadd.f32 %v771_v47, %v450_v60  ;;  %v2873_v45 = vld [vmem:[%s5063_s0 + $0xc8] sm:$0xff]  ;;  %v5255_v60 = vld [vmem:[#allocation6_spill] sm:$0xff] }
 0x24e   :  { %v1604_v54 = vadd.f32 %v1540_v32, %v1219_v51  ;;  %v1764_v16 = vpack.c.bf16 %v2621_v14, %v2623_v58  ;;  %v2625_v32 = vpop.eup %2624  ;;  %v2869_v14 = vld [vmem:[%s5063_s0 + $0x198] sm:$0xff]  ;;  %v1127_v51 = vmul.f32 %v3838_v43, %v3736_v56 }
 0x24f   :  { %v1573_v20 = vadd.f32 %v1509_v48, %v1188_v62  ;;  %v2870_v62 = vld [vmem:[%s5063_s0 + $0x190] sm:$0xff]  ;;  %v4023_v39 = vpop.eup %2626  ;;  %v806_v58 = vadd.f32 %v742_v29, %v421_v34  ;;  %v4033_v48 = vld [vmem:[%s5063_s0 + $0x1c0] sm:$0xff] }
 0x250   :  { %v1672_v52 = vadd.f32 %v3865_v37, %v1604_v54  ;;  %1339 = vperm.xlu0 %2549, %v2868_v4   ;;  %1876 = vmatmul.bf16.gmra.mxu0 %v1764_v16  ;;  %v5251_v54 = vld [vmem:[#allocation5_spill] sm:$0xff] }
 0x251   :  { %v1641_v27 = vadd.f32 %v3865_v37, %v1573_v20  ;;  %v420_v16 = vmul.f32 %v3832_v42, %v5251_v54  ;;  %v1191_v63 = vadd.f32 %v1127_v51, %v806_v58 }
 0x252   :  { %2628 = vtanh.f32 %v1672_v52  ;;  %v1284_v18 = vpop.permute.xlu0 %1283 }
 0x253   :  { %2630 = vtanh.f32 %v1641_v27  ;;  %v1264_v50 = vpop.permute.xlu1 %1263  ;;  %v1512_v56 = vmul.f32 %v3843_v22, %v1284_v18  ;;  %v805_v52 = vadd.f32 %v741_v31, %v420_v16 }
 0x254   :  { %v1507_v7 = vmul.f32 %v3843_v22, %v1264_v50  ;;  %2632 = vtanh.f32 %v1640_v41 }
 0x255   :  { %2576 = vset.pattern.permute.xlu2 %v5211_v24  ;;  %2575 = vset.pattern.permute.xlu1 %v5211_v24  ;;  %v4013_v25 = vpop.permute.xlu2 %1026  ;;  %v1576_v27 = vadd.f32 %v1512_v56, %v1191_v63  ;;  %v1190_v18 = vadd.f32 %v1126_v35, %v805_v52  ;;  %v5254_v56 = vld [vmem:[#allocation87_spill] sm:$0xff]  ;;  %v423_v63 = vmul.f32 %v3832_v42, %v5255_v60 }
 0x256   :  { %v1571_v5 = vadd.f32 %v1507_v7, %v1186_v6  ;;  %1066 = vperm.xlu2 %2576, %v2869_v14   ;;  %1062 = vperm.xlu1 %2575, %v2870_v62   ;;  %v2872_v6 = vld [vmem:[%s5063_s0 + $0x90] sm:$0xff]  ;;  %v5253_v62 = vld [vmem:[#allocation54_spill] sm:$0xff]  ;;  %v2874_v35 = vld [vmem:[%s5063_s0 + $0x1a8] sm:$0xff]  ;;  %v1129_v52 = vmul.f32 %v3838_v43, %v3741_v40 }
 0x257   :  { %v1644_v23 = vadd.f32 %v3865_v37, %v1576_v27  ;;  %v451_v51 = vmul.f32 %v3832_v42, %v5253_v62 }
 0x258   :  { %v2629_v11 = vpop.eup %2628  ;;  %v1639_v2 = vadd.f32 %v3865_v37, %v1571_v5  ;;  %1471 = vperm.xlu0 %2549, %v4033_v48  }
 0x259   :  { %v4036_v15 = vpop.eup %2630  ;;  %v1781_v10 = vpack.c.bf16 %v2629_v11, %v2625_v32  ;;  %v772_v32 = vmul.f32 %v3830_v44, %v3594_v0  ;;  %v1157_v11 = vmul.f32 %v3838_v43, %v3953_v55 }
 0x25a   :  { %2634 = vtanh.f32 %v1639_v2  ;;  %v4045_v20 = vpop.permute.xlu0 %1415  ;;  %v1766_v53 = vpack.c.bf16 %v4023_v39, %v4036_v15  ;;  %v2633_v50 = vpop.eup %2632  ;;  %v4143_v15 = vld [vmem:[%s5063_s0 + $0x1e0] sm:$0xff] }
 0x25b   :  { %1961 = vmatmul.bf16.gmra.mxu2 %v1781_v10  ;;  %v836_v0 = vadd.f32 %v772_v32, %v451_v51  ;;  %2636 = vtanh.f32 %v1644_v23  ;;  %v744_v10 = vmul.f32 %v3830_v44, %v5254_v56  ;;  %v5259_v32 = vld [vmem:[#allocation53_spill] sm:$0xff]  ;;  %v1128_v23 = vmul.f32 %v3838_v43, %v3706_v21 }
 0x25c   :  { %v1015_v4 = vpop.permute.xlu1 %1014  ;;  %v2877_v21 = vld [vmem:[%s5063_s0 + $0xd8] sm:$0xff] }
 0x25d   :  { %v1156_v59 = vmul.f32 %v3838_v43, %v1015_v4  ;;  %v1221_v2 = vadd.f32 %v1157_v11, %v836_v0  ;;  %v4092_v4 = vld [vmem:[%s5063_s0 + $0x1d0] sm:$0xff] }
 0x25e   :  { %2578 = vset.pattern.permute.xlu2 %v5208_v30  ;;  %2577 = vset.pattern.permute.xlu1 %v5208_v30  ;;  %v1280_v8 = vpop.permute.xlu2 %1279 }
 0x25f   :  { %v1220_v29 = vadd.f32 %v1156_v59, %v835_v9  ;;  %1319 = vperm.xlu2 %2578, %v2872_v6   ;;  %v1511_v7 = vmul.f32 %v3843_v22, %v1280_v8  ;;  %1451 = vperm.xlu1 %2577, %v2869_v14   ;;  %v5256_v9 = vld [vmem:[#allocation85_spill] sm:$0xff] }
 0x260   :  { %v2635_v41 = vpop.eup %2634  ;;  %1347 = vperm.xlu0 %2549, %v2873_v45   ;;  %v743_v27 = vmul.f32 %v3830_v44, %v5256_v9  ;;  %v452_v45 = vmul.f32 %v3832_v42, %v5259_v32  ;;  %v5260_v9 = vld [vmem:[#allocation43_spill] sm:$0xff] }
 0x261   :  { %v1575_v34 = vadd.f32 %v1511_v7, %v1190_v18  ;;  %v1765_v5 = vpack.c.bf16 %v2633_v50, %v2635_v41  ;;  %v1605_v58 = vadd.f32 %v1541_v33, %v1220_v29  ;;  %v4100_v8 = vpop.eup %2636  ;;  %v808_v50 = vadd.f32 %v744_v10, %v423_v63  ;;  %v5257_v33 = vld [vmem:[#allocation100_spill] sm:$0xff]  ;;  %v5258_v7 = vld [vmem:[#allocation17_spill] sm:$0xff] }
 0x262   :  { %v1292_v14 = vpop.permute.xlu0 %1291  ;;  %v773_v40 = vmul.f32 %v3830_v44, %v5257_v33  ;;  %v422_v41 = vmul.f32 %v3832_v42, %v5258_v7 }
 0x263   :  { %v1643_v57 = vadd.f32 %v3865_v37, %v1575_v34  ;;  %1881 = vmatmul.bf16.gmra.mxu0 %v1765_v5  ;;  %v1673_v54 = vadd.f32 %v3865_v37, %v1605_v58  ;;  %v1514_v29 = vmul.f32 %v3843_v22, %v1292_v14  ;;  %v1193_v34 = vadd.f32 %v1129_v52, %v808_v50 }
 0x264   :  { %v807_v51 = vadd.f32 %v743_v27, %v422_v41  ;;  %v837_v11 = vadd.f32 %v773_v40, %v452_v45  ;;  %v453_v27 = vmul.f32 %v3832_v42, %v5260_v9  ;;  %v2880_v41 = vld [vmem:[%s5063_s0 + $0x1b8] sm:$0xff]  ;;  %v2881_v45 = vld [vmem:[%s5063_s0 + $0x1b0] sm:$0xff] }
 0x265   :  { %v1404_v31 = vpop.permute.xlu1 %1403  ;;  %2638 = vtanh.f32 %v1643_v57  ;;  %v1578_v14 = vadd.f32 %v1514_v29, %v1193_v34 }
 0x266   :  { %v1542_v47 = vmul.f32 %v3843_v22, %v1404_v31  ;;  %2640 = vtanh.f32 %v1673_v54  ;;  %v1192_v31 = vadd.f32 %v1128_v23, %v807_v51  ;;  %v774_v54 = vmul.f32 %v3830_v44, %v3632_v13  ;;  %v5262_v23 = vld [vmem:[#allocation22_spill] sm:$0xff] }
 0x267   :  { %2580 = vset.pattern.permute.xlu2 %v5211_v24  ;;  %2579 = vset.pattern.permute.xlu1 %v5211_v24  ;;  %v4077_v55 = vpop.permute.xlu2 %1034  ;;  %v1646_v60 = vadd.f32 %v3865_v37, %v1578_v14  ;;  %v425_v34 = vmul.f32 %v3832_v42, %v5262_v23  ;;  %v5263_v14 = vld [vmem:[#allocation97_spill] sm:$0xff] }
 0x268   :  { %v1606_v16 = vadd.f32 %v1542_v47, %v1221_v2  ;;  %1074 = vperm.xlu2 %2580, %v2874_v35   ;;  %1070 = vperm.xlu1 %2579, %v2875_v46   ;;  %v2878_v47 = vld [vmem:[%s5063_s0 + $0xa0] sm:$0xff]  ;;  %v1543_v46 = vmul.f32 %v3843_v22, %v3979_v3  ;;  %v838_v50 = vadd.f32 %v774_v54, %v453_v27 }
 0x269   :  { %1479 = vperm.xlu0 %2549, %v4092_v4  }
 0x26a   :  { %v1674_v59 = vadd.f32 %v3865_v37, %v1606_v16  ;;  %v4098_v18 = vpop.permute.xlu0 %1423 }
 0x26b   :  { %v4105_v6 = vpop.eup %2638 }
 0x26c   :  { %2642 = vtanh.f32 %v1674_v59  ;;  %v1767_v5 = vpack.c.bf16 %v4100_v8, %v4105_v6  ;;  %v2641_v0 = vpop.eup %2640  ;;  %v1159_v59 = vmul.f32 %v3838_v43, %v4013_v25  ;;  %v4208_v8 = vld [vmem:[%s5063_s0 + $0x1f0] sm:$0xff] }
 0x26d   :  { %2644 = vtanh.f32 %v1646_v60  ;;  %v1130_v60 = vmul.f32 %v3838_v43, %v3747_v1  ;;  %v2883_v1 = vld [vmem:[%s5063_s0 + $0xb0] sm:$0xff] }
 0x26e   :  { %v1023_v62 = vpop.permute.xlu1 %1022  ;;  %v1223_v33 = vadd.f32 %v1159_v59, %v838_v50 }
 0x26f   :  { %v1158_v58 = vmul.f32 %v3838_v43, %v1023_v62  ;;  %v1131_v62 = vmul.f32 %v3838_v43, %v3715_v36 }
 0x270   :  { %2582 = vset.pattern.permute.xlu2 %v5208_v30  ;;  %2581 = vset.pattern.permute.xlu1 %v5208_v30  ;;  %v1288_v57 = vpop.permute.xlu2 %1287 }
 0x271   :  { %v1222_v2 = vadd.f32 %v1158_v58, %v837_v11  ;;  %1355 = vperm.xlu0 %2549, %v2877_v21   ;;  %1327 = vperm.xlu2 %2582, %v2878_v47   ;;  %v1513_v56 = vmul.f32 %v3843_v22, %v1288_v57  ;;  %v775_v58 = vmul.f32 %v3830_v44, %v5263_v14  ;;  %v5265_v47 = vld [vmem:[#allocation57_spill] sm:$0xff] }
 0x272   :  { %v2643_v10 = vpop.eup %2642  ;;  %1459 = vperm.xlu1 %2581, %v2874_v35   ;;  %v1300_v16 = vpop.permute.xlu0 %1299  ;;  %v454_v36 = vmul.f32 %v3832_v42, %v5265_v47 }
 0x273   :  { %v1577_v63 = vadd.f32 %v1513_v56, %v1192_v31  ;;  %1886 = vmatmul.bf16.gmra.mxu0 %v1766_v53  ;;  %v1782_v52 = vpack.c.bf16 %v2643_v10, %v2641_v0  ;;  %v1607_v13 = vadd.f32 %v1543_v46, %v1222_v2  ;;  %v5261_v53 = vld [vmem:[#allocation88_spill] sm:$0xff]  ;;  %v4165_v11 = vpop.eup %2644  ;;  %v5264_v0 = vld [vmem:[#allocation77_spill] sm:$0xff]  ;;  %v1516_v21 = vmul.f32 %v3843_v22, %v1300_v16  ;;  %v5266_v10 = vld [vmem:[#allocation23_spill] sm:$0xff] }
 0x274   :  { %v746_v29 = vmul.f32 %v3830_v44, %v5261_v53  ;;  %v745_v31 = vmul.f32 %v3830_v44, %v5264_v0  ;;  %v424_v54 = vmul.f32 %v3832_v42, %v5266_v10  ;;  %v2882_v16 = vld [vmem:[%s5063_s0 + $0xe8] sm:$0xff] }
 0x275   :  { %v1645_v35 = vadd.f32 %v3865_v37, %v1577_v63  ;;  %1966 = vmatmul.bf16.gmra.mxu2 %v1782_v52  ;;  %v1675_v39 = vadd.f32 %v3865_v37, %v1607_v13  ;;  %v839_v52 = vadd.f32 %v775_v58, %v454_v36  ;;  %v5268_v58 = vld [vmem:[#allocation80_spill] sm:$0xff]  ;;  %v5269_v36 = vld [vmem:[#allocation29_spill] sm:$0xff] }
 0x276   :  { %v810_v2 = vadd.f32 %v746_v29, %v425_v34  ;;  %v809_v27 = vadd.f32 %v745_v31, %v424_v54  ;;  %v1545_v29 = vmul.f32 %v3843_v22, %v4045_v20  ;;  %v1161_v34 = vmul.f32 %v3838_v43, %v4077_v55 }
 0x277   :  { %v1412_v3 = vpop.permute.xlu1 %1411  ;;  %2646 = vtanh.f32 %v1645_v35  ;;  %v748_v0 = vmul.f32 %v3830_v44, %v5268_v58  ;;  %v427_v10 = vmul.f32 %v3832_v42, %v5269_v36  ;;  %v1133_v54 = vmul.f32 %v3838_v43, %v3758_v26  ;;  %v2513_v26 = vld [vmem:[%s5068_s5 + $0x38] sm:$0xff] }
 0x278   :  { %v1544_v40 = vmul.f32 %v3843_v22, %v1412_v3  ;;  %2648 = vtanh.f32 %v1675_v39  ;;  %v1195_v46 = vadd.f32 %v1131_v62, %v810_v2  ;;  %v1194_v39 = vadd.f32 %v1130_v60, %v809_v27  ;;  %2522 = vmatpush.bf16.msra.mxu3 %v2513_v26  ;;  %2196 = vmatpush.bf16.msra.mxu1 %v2513_v26  ;;  %v2888_v26 = vld [vmem:[%s5063_s0 + $0x1d8] sm:$0xff] }
 0x279   :  { %1487 = vperm.xlu0 %2549, %v4143_v15   ;;  %2584 = vset.pattern.permute.xlu2 %v5211_v24  ;;  %v4147_v25 = vpop.permute.xlu2 %1042  ;;  %v812_v60 = vadd.f32 %v748_v0, %v427_v10 }
 0x27a   :  { %v1608_v7 = vadd.f32 %v1544_v40, %v1223_v33  ;;  %2583 = vset.pattern.permute.xlu1 %v5211_v24  ;;  %1082 = vperm.xlu2 %2584, %v2880_v41   ;;  %v4155_v32 = vpop.permute.xlu0 %1431  ;;  %v1580_v59 = vadd.f32 %v1516_v21, %v1195_v46  ;;  %v776_v40 = vmul.f32 %v3830_v44, %v3635_v17  ;;  %v2885_v21 = vld [vmem:[%s5063_s0 + $0x1c8] sm:$0xff] }
 0x27b   :  { %1078 = vperm.xlu1 %2583, %v2881_v45   ;;  %v5267_v45 = vld [vmem:[#allocation56_spill] sm:$0xff]  ;;  %v1163_v0 = vmul.f32 %v3838_v43, %v4147_v25 }
 0x27c   :  { %v1676_v51 = vadd.f32 %v3865_v37, %v1608_v7  ;;  %v455_v23 = vmul.f32 %v3832_v42, %v5267_v45  ;;  %v1648_v17 = vadd.f32 %v3865_v37, %v1580_v59  ;;  %v5271_v59 = vld [vmem:[#allocation46_spill] sm:$0xff]  ;;  %v2512_v45 = vld [vmem:[%s5068_s5 + $0x30] sm:$0xff] }
 0x27d   :  { %v4169_v57 = vpop.eup %2646  ;;  %2523 = vmatpush.bf16.msra.mxu3 %v2512_v45  ;;  %2197 = vmatpush.bf16.msra.mxu1 %v2512_v45  ;;  %v5278_v45 = vld [vmem:[#allocation59_spill] sm:$0xff] }
 0x27e   :  { %2650 = vtanh.f32 %v1676_v51  ;;  %v1768_v56 = vpack.c.bf16 %v4165_v11, %v4169_v57  ;;  %v2649_v35 = vpop.eup %2648 }
 0x27f   :  { %2652 = vtanh.f32 %v1648_v17  ;;  %v2887_v17 = vld [vmem:[%s5063_s0 + $0xc0] sm:$0xff] }
 0x280   :  { %v1031_v63 = vpop.permute.xlu1 %1030 }
 0x281   :  { %v1160_v9 = vmul.f32 %v3838_v43, %v1031_v63  ;;  %1363 = vperm.xlu0 %2549, %v2882_v16   ;;  %v777_v63 = vmul.f32 %v3830_v44, %v3641_v61  ;;  %v5270_v16 = vld [vmem:[#allocation19_spill] sm:$0xff]  ;;  %v5272_v61 = vld [vmem:[#allocation9_spill] sm:$0xff] }
 0x282   :  { %2586 = vset.pattern.permute.xlu2 %v5208_v30  ;;  %v1308_v13 = vpop.permute.xlu0 %1307  ;;  %v747_v27 = vmul.f32 %v3830_v44, %v5270_v16 }
 0x283   :  { %v1224_v50 = vadd.f32 %v1160_v9, %v839_v52  ;;  %2585 = vset.pattern.permute.xlu1 %v5208_v30  ;;  %1335 = vperm.xlu2 %2586, %v2883_v1   ;;  %v1296_v3 = vpop.permute.xlu2 %1295  ;;  %v1518_v52 = vmul.f32 %v3843_v22, %v1308_v13  ;;  %v426_v13 = vmul.f32 %v3832_v42, %v5272_v61 }
 0x284   :  { %v2651_v33 = vpop.eup %2650  ;;  %v1515_v53 = vmul.f32 %v3843_v22, %v1296_v3  ;;  %1467 = vperm.xlu1 %2585, %v2880_v41   ;;  %1891 = vmatmul.bf16.gmra.mxu0 %v1767_v5  ;;  %v840_v41 = vadd.f32 %v776_v40, %v455_v23  ;;  %v1132_v1 = vmul.f32 %v3838_v43, %v3750_v12  ;;  %v4252_v3 = vld [vmem:[%s5063_s0 + $0xf8] sm:$0xff] }
 0x285   :  { %v1783_v7 = vpack.c.bf16 %v2651_v33, %v2649_v35  ;;  %v1609_v51 = vadd.f32 %v1545_v29, %v1224_v50  ;;  %v4233_v9 = vpop.eup %2652  ;;  %v456_v35 = vmul.f32 %v3832_v42, %v5271_v59  ;;  %v1197_v50 = vadd.f32 %v1133_v54, %v812_v60  ;;  %v2510_v60 = vld [vmem:[%s5068_s5 + $0x20] sm:$0xff] }
 0x286   :  { %v1579_v62 = vadd.f32 %v1515_v53, %v1194_v39  ;;  %v1225_v6 = vadd.f32 %v1161_v34, %v840_v41  ;;  %v811_v12 = vadd.f32 %v747_v27, %v426_v13  ;;  %v5273_v41 = vld [vmem:[#allocation98_spill] sm:$0xff]  ;;  %v1135_v61 = vmul.f32 %v3838_v43, %v3764_v38 }
 0x287   :  { %1971 = vmatmul.bf16.gmra.mxu2 %v1783_v7  ;;  %v1677_v31 = vadd.f32 %v3865_v37, %v1609_v51  ;;  %v841_v53 = vadd.f32 %v777_v63, %v456_v35  ;;  %v1582_v29 = vadd.f32 %v1518_v52, %v1197_v50  ;;  %v778_v11 = vmul.f32 %v3830_v44, %v5273_v41  ;;  %v5275_v63 = vld [vmem:[#allocation89_spill] sm:$0xff]  ;;  %v2508_v41 = vld [vmem:[%s5068_s5 + $0x10] sm:$0xff] }
 0x288   :  { %v1647_v14 = vadd.f32 %v3865_v37, %v1579_v62  ;;  %v1196_v57 = vadd.f32 %v1132_v1, %v811_v12  ;;  %v750_v52 = vmul.f32 %v3830_v44, %v5275_v63  ;;  %v5276_v35 = vld [vmem:[#allocation13_spill] sm:$0xff] }
 0x289   :  { %1495 = vperm.xlu0 %2549, %v4208_v8   ;;  %v1420_v20 = vpop.permute.xlu1 %1419  ;;  %v429_v50 = vmul.f32 %v3832_v42, %v5276_v35  ;;  %v2509_v1 = vld [vmem:[%s5068_s5 + $0x18] sm:$0xff] }
 0x28a   :  { %v1546_v55 = vmul.f32 %v3843_v22, %v1420_v20  ;;  %v4212_v5 = vpop.permute.xlu0 %1439  ;;  %2654 = vtanh.f32 %v1647_v14  ;;  %v1547_v14 = vmul.f32 %v3843_v22, %v4098_v18  ;;  %v1650_v20 = vadd.f32 %v3865_v37, %v1582_v29 }
 0x28b   :  { %2588 = vset.pattern.permute.xlu2 %v5211_v24  ;;  %2656 = vtanh.f32 %v1677_v31  ;;  %v779_v29 = vmul.f32 %v3830_v44, %v3644_v49 }
 0x28c   :  { %v1610_v2 = vadd.f32 %v1546_v55, %v1225_v6  ;;  %2587 = vset.pattern.permute.xlu1 %v5211_v24  ;;  %1090 = vperm.xlu2 %2588, %v2885_v21   ;;  %v4222_v47 = vpop.permute.xlu2 %1050  ;;  %v5274_v55 = vld [vmem:[#allocation60_spill] sm:$0xff] }
 0x28d   :  { %1086 = vperm.xlu1 %2587, %v4033_v48   ;;  %v457_v58 = vmul.f32 %v3832_v42, %v5274_v55  ;;  %v780_v55 = vmul.f32 %v3830_v44, %v3650_v19  ;;  %v1165_v19 = vmul.f32 %v3838_v43, %v4222_v47 }
 0x28e   :  { %v1678_v46 = vadd.f32 %v3865_v37, %v1610_v2  ;;  %v2511_v2 = vld [vmem:[%s5068_s5 + $0x28] sm:$0xff] }
 0x28f   :  { %v842_v36 = vadd.f32 %v778_v11, %v457_v58  ;;  %2524 = vmatpush.bf16.msra.mxu3 %v2511_v2  ;;  %2198 = vmatpush.bf16.msra.mxu1 %v2511_v2  ;;  %v1549_v2 = vmul.f32 %v3843_v22, %v4155_v32  ;;  %v2506_v32 = vld [vmem:[%s5068_s5] sm:$0xff] }
 0x290   :  { %2658 = vtanh.f32 %v1678_v46  ;;  %v4240_v48 = vpop.eup %2654 }
 0x291   :  { %2602 = vset.pattern.permute.xlu0 %v5211_v24  ;;  %v1769_v39 = vpack.c.bf16 %v4233_v9, %v4240_v48  ;;  %v2657_v23 = vpop.eup %2656  ;;  %2660 = vtanh.f32 %v1650_v20  ;;  %v1227_v46 = vadd.f32 %v1163_v0, %v842_v36  ;;  %v2889_v9 = vld [vmem:[%s5063_s0 + $0xd0] sm:$0xff] }
 0x292   :  { %986 = vperm.xlu0 %2602, %v4252_v3   ;;  %v1039_v33 = vpop.permute.xlu1 %1038  ;;  %v4255_v40 = vpop.permute.xlu0 %1315 }
 0x293   :  { %v1162_v7 = vmul.f32 %v3838_v43, %v1039_v33  ;;  %2525 = vmatpush.bf16.msra.mxu3 %v2510_v60  ;;  %2199 = vmatpush.bf16.msra.mxu1 %v2510_v60  ;;  %v1520_v38 = vmul.f32 %v3843_v22, %v4255_v40  ;;  %v1134_v40 = vmul.f32 %v3838_v43, %v3724_v28 }
 0x294   :  { %1896 = vmatmul.bf16.gmra.mxu0 %v1768_v56  ;;  %2590 = vset.pattern.permute.xlu2 %v5208_v30 }
 0x295   :  { %v1226_v34 = vadd.f32 %v1162_v7, %v841_v53  ;;  %2589 = vset.pattern.permute.xlu1 %v5208_v30  ;;  %1343 = vperm.xlu2 %2590, %v2887_v17   ;;  %v1304_v62 = vpop.permute.xlu2 %1303  ;;  %v814_v53 = vadd.f32 %v750_v52, %v429_v50 }
 0x296   :  { %v2659_v51 = vpop.eup %2658  ;;  %v1517_v56 = vmul.f32 %v3843_v22, %v1304_v62  ;;  %1475 = vperm.xlu1 %2589, %v2885_v21   ;;  %v5279_v62 = vld [vmem:[#allocation28_spill] sm:$0xff] }
 0x297   :  { %v1784_v6 = vpack.c.bf16 %v2659_v51, %v2657_v23  ;;  %v1611_v21 = vadd.f32 %v1547_v14, %v1226_v34  ;;  %v4311_v33 = vpop.eup %2660  ;;  %v458_v23 = vmul.f32 %v3832_v42, %v5278_v45  ;;  %v1199_v34 = vadd.f32 %v1135_v61, %v814_v53  ;;  %2526 = vmatpush.bf16.msra.mxu3 %v2509_v1  ;;  %v5282_v53 = vld [vmem:[#allocation32_spill] sm:$0xff] }
 0x298   :  { %v1581_v31 = vadd.f32 %v1517_v56, %v1196_v57  ;;  %v428_v49 = vmul.f32 %v3832_v42, %v5279_v62  ;;  %2200 = vmatpush.bf16.msra.mxu1 %v2509_v1 }
 0x299   :  { %1976 = vmatmul.bf16.gmra.mxu2 %v1784_v6  ;;  %v1679_v16 = vadd.f32 %v3865_v37, %v1611_v21  ;;  %v843_v11 = vadd.f32 %v779_v29, %v458_v23  ;;  %v1584_v57 = vadd.f32 %v1520_v38, %v1199_v34  ;;  %v431_v29 = vmul.f32 %v3832_v42, %v5282_v53  ;;  %v5283_v38 = vld [vmem:[#allocation116_spill] sm:$0xff]  ;;  %v5284_v34 = vld [vmem:[#allocation99_spill] sm:$0xff] }
 0x29a   :  { %v1649_v18 = vadd.f32 %v3865_v37, %v1581_v31  ;;  %2604 = vset.pattern.permute.xlu0 %v5208_v30  ;;  %v4286_v10 = vpop.permute.xlu0 %1447  ;;  %v2507_v31 = vld [vmem:[%s5068_s5 + $0x8] sm:$0xff]  ;;  %v781_v62 = vmul.f32 %v3830_v44, %v5284_v34 }
 0x29b   :  { %v1428_v54 = vpop.permute.xlu1 %1427  ;;  %2527 = vmatpush.bf16.msra.mxu3 %v2508_v41  ;;  %v1652_v21 = vadd.f32 %v3865_v37, %v1584_v57 }
 0x29c   :  { %2662 = vtanh.f32 %v1649_v18  ;;  %v1548_v25 = vmul.f32 %v3843_v22, %v1428_v54  ;;  %2201 = vmatpush.bf16.msra.mxu1 %v2508_v41  ;;  %v5280_v18 = vld [vmem:[#allocation49_spill] sm:$0xff] }
 0x29d   :  { %2592 = vset.pattern.permute.xlu2 %v5211_v24  ;;  %2664 = vtanh.f32 %v1679_v16  ;;  %v459_v54 = vmul.f32 %v3832_v42, %v5280_v18  ;;  %v1551_v18 = vmul.f32 %v3843_v22, %v4212_v5 }
 0x29e   :  { %v1612_v27 = vadd.f32 %v1548_v25, %v1227_v46  ;;  %2591 = vset.pattern.permute.xlu1 %v5211_v24  ;;  %1098 = vperm.xlu2 %2592, %v2888_v26   ;;  %v4300_v59 = vpop.permute.xlu2 %1058 }
 0x29f   :  { %1094 = vperm.xlu1 %2591, %v4092_v4   ;;  %v5277_v4 = vld [vmem:[#allocation25_spill] sm:$0xff]  ;;  %v844_v60 = vadd.f32 %v780_v55, %v459_v54  ;;  %2528 = vmatpush.bf16.msra.mxu3 %v2507_v31 }
 0x2a0   :  { %v1680_v13 = vadd.f32 %v3865_v37, %v1612_v27  ;;  %v749_v12 = vmul.f32 %v3830_v44, %v5277_v4  ;;  %2202 = vmatpush.bf16.msra.mxu1 %v2507_v31  ;;  %v1137_v4 = vmul.f32 %v3838_v43, %v5283_v38 }
 0x2a1   :  { %v1229_v16 = vadd.f32 %v1165_v19, %v844_v60  ;;  %v4411_v19 = vld [vmem:[%s5064_s2] ss:$0 sm:$0xff] }
 0x2a2   :  { %v4317_v7 = vpop.eup %2662  ;;  %2666 = vtanh.f32 %v1680_v13  ;;  %v1324_v56 = vpop.permute.xlu0 %1323  ;;  %v813_v20 = vadd.f32 %v749_v12, %v428_v49  ;;  %v2890_v13 = vld [vmem:[%s5063_s0 + $0x1e8] sm:$0xff] }
 0x2a3   :  { %v1770_v17 = vpack.c.bf16 %v4311_v33, %v4317_v7  ;;  %v2665_v6 = vpop.eup %2664  ;;  %2668 = vtanh.f32 %v1652_v21  ;;  %2529 = vmatpush.bf16.msra.mxu3 %v2506_v32  ;;  %v1522_v49 = vmul.f32 %v3843_v22, %v1324_v56 }
 0x2a4   :  { %1901 = vmatmul.bf16.gmra.mxu0 %v1769_v39  ;;  %v1047_v51 = vpop.permute.xlu1 %1046  ;;  %v1198_v58 = vadd.f32 %v1134_v40, %v813_v20  ;;  %2203 = vmatpush.bf16.msra.mxu1 %v2506_v32  ;;  %v5288_v20 = vld [vmem:[#allocation120_spill] sm:$0xff]  ;;  %v1167_v32 = vmul.f32 %v3838_v43, %v4300_v59 }
 0x2a5   :  { %v1164_v14 = vmul.f32 %v3838_v43, %v1047_v51  ;;  %v5285_v51 = vld [vmem:[#allocation83_spill] sm:$0xff] }
 0x2a6   :  { %2594 = vset.pattern.permute.xlu2 %v5208_v30  ;;  %v751_v41 = vmul.f32 %v3830_v44, %v5285_v51 }
 0x2a7   :  { %v1228_v28 = vadd.f32 %v1164_v14, %v843_v11  ;;  %2593 = vset.pattern.permute.xlu1 %v5208_v30  ;;  %1351 = vperm.xlu2 %2594, %v2889_v9   ;;  %v1312_v48 = vpop.permute.xlu2 %1311  ;;  %v5287_v14 = vld [vmem:[#allocation33_spill] sm:$0xff] }
 0x2a8   :  { %v2667_v39 = vpop.eup %2666  ;;  %v1519_v0 = vmul.f32 %v3843_v22, %v1312_v48  ;;  %1483 = vperm.xlu1 %2593, %v2888_v26   ;;  %v5281_v26 = vld [vmem:[#allocation90_spill] sm:$0xff]  ;;  %v430_v56 = vmul.f32 %v3832_v42, %v5287_v14 }
 0x2a9   :  { %v1785_v36 = vpack.c.bf16 %v2667_v39, %v2665_v6  ;;  %v1613_v25 = vadd.f32 %v1549_v2, %v1228_v28  ;;  %v752_v47 = vmul.f32 %v3830_v44, %v5281_v26  ;;  %v4377_v45 = vpop.eup %2668  ;;  %v1136_v6 = vmul.f32 %v3838_v43, %v5288_v20  ;;  %v5289_v2 = vld [vmem:[#allocation104_spill] sm:$0xff] }
 0x2aa   :  { %v1583_v46 = vadd.f32 %v1519_v0, %v1198_v58  ;;  %v4362_v50 = vpop.permute.xlu0 %1455  ;;  %v815_v33 = vadd.f32 %v751_v41, %v430_v56  ;;  %v2891_v58 = vld [vmem:[%s5063_s0 + $0xe0] sm:$0xff]  ;;  %v782_v21 = vmul.f32 %v3830_v44, %v5289_v2 }
 0x2ab   :  { %1981 = vmatmul.bf16.gmra.mxu2 %v1785_v36  ;;  %v1681_v35 = vadd.f32 %v3865_v37, %v1613_v25  ;;  %v816_v23 = vadd.f32 %v752_v47, %v431_v29  ;;  %v4417_v25 = vld [vmem:[%s5067_s4] ss:$0 sm:$0xff] }
 0x2ac   :  { %v1651_v63 = vadd.f32 %v3865_v37, %v1583_v46  ;;  %v1200_v36 = vadd.f32 %v1136_v6, %v815_v33  ;;  %v5294_v56 = vld [vmem:[#allocation106_spill] sm:$0xff] }
 0x2ad   :  { %v1436_v52 = vpop.permute.xlu1 %1435  ;;  %v1201_v11 = vadd.f32 %v1137_v4, %v816_v23  ;;  %v5291_v4 = vld [vmem:[#allocation86_spill] sm:$0xff]  ;;  %v2893_v23 = vld [vmem:[%s5063_s0 + $0x1f8] sm:$0xff]  ;;  %v783_v20 = vmul.f32 %v3830_v44, %v5294_v56 }
 0x2ae   :  { %2670 = vtanh.f32 %v1651_v63  ;;  %v1550_v27 = vmul.f32 %v3843_v22, %v1436_v52  ;;  %v5290_v52 = vld [vmem:[#allocation62_spill] sm:$0xff]  ;;  %v754_v59 = vmul.f32 %v3830_v44, %v5291_v4 }
 0x2af   :  { %2596 = vset.pattern.permute.xlu2 %v5211_v24  ;;  %2672 = vtanh.f32 %v1681_v35  ;;  %v1586_v48 = vadd.f32 %v1522_v49, %v1201_v11  ;;  %v461_v5 = vmul.f32 %v3832_v42, %v5290_v52 }
 0x2b0   :  { %v1614_v61 = vadd.f32 %v1550_v27, %v1229_v16  ;;  %2595 = vset.pattern.permute.xlu1 %v5211_v24  ;;  %1106 = vperm.xlu2 %2596, %v2890_v13   ;;  %v4369_v1 = vpop.permute.xlu2 %1066 }
 0x2b1   :  { %1102 = vperm.xlu1 %2595, %v4143_v15   ;;  %v1654_v46 = vadd.f32 %v4411_v19, %v1586_v48  ;;  %v846_v47 = vadd.f32 %v782_v21, %v461_v5  ;;  %v5295_v48 = vld [vmem:[#allocation30_spill] sm:$0xff] }
 0x2b2   :  { %v1682_v12 = vadd.f32 %v3865_v37, %v1614_v61  ;;  %v5286_v37 = vld [vmem:[#allocation63_spill] sm:$0xff] }
 0x2b3   :  { %v460_v15 = vmul.f32 %v3832_v42, %v5286_v37  ;;  %v1231_v53 = vadd.f32 %v1167_v32, %v846_v47 }
 0x2b4   :  { %v4382_v40 = vpop.eup %2670  ;;  %2674 = vtanh.f32 %v1682_v12  ;;  %1906 = vmatmul.bf16.gmra.mxu0 %v1770_v17  ;;  %v1332_v17 = vpop.permute.xlu0 %1331 }
 0x2b5   :  { %v1771_v57 = vpack.c.bf16 %v4377_v45, %v4382_v40  ;;  %v845_v9 = vadd.f32 %v781_v62, %v460_v15  ;;  %v2673_v7 = vpop.eup %2672  ;;  %2676 = vtanh.f32 %v1654_v46  ;;  %v5292_v62 = vld [vmem:[#allocation36_spill] sm:$0xff]  ;;  %v5293_v40 = vld [vmem:[#allocation122_spill] sm:$0xff]  ;;  %v1524_v6 = vmul.f32 %v3843_v22, %v1332_v17  ;;  %v5298_v17 = vld [vmem:[#allocation121_spill] sm:$0xff] }
 0x2b6   :  { %v1055_v28 = vpop.permute.xlu1 %1054  ;;  %v433_v49 = vmul.f32 %v3832_v42, %v5292_v62  ;;  %v1139_v51 = vmul.f32 %v3838_v43, %v5293_v40 }
 0x2b7   :  { %v1166_v39 = vmul.f32 %v3838_v43, %v1055_v28 }
 0x2b8   :  { %2598 = vset.pattern.permute.xlu2 %v5208_v30  ;;  %v818_v14 = vadd.f32 %v754_v59, %v433_v49  ;;  %v1169_v49 = vmul.f32 %v3838_v43, %v4369_v1  ;;  %v5301_v1 = vld [vmem:[#allocation2_spill] sm:$0xff] }
 0x2b9   :  { %v1230_v55 = vadd.f32 %v1166_v39, %v845_v9  ;;  %2597 = vset.pattern.permute.xlu1 %v5208_v30  ;;  %1359 = vperm.xlu2 %2598, %v2891_v58   ;;  %v1320_v0 = vpop.permute.xlu2 %1319  ;;  %v5297_v58 = vld [vmem:[#allocation16_spill] sm:$0xff] }
 0x2ba   :  { %v2675_v31 = vpop.eup %2674  ;;  %v1521_v54 = vmul.f32 %v3843_v22, %v1320_v0  ;;  %1491 = vperm.xlu1 %2597, %v2890_v13   ;;  %v432_v0 = vmul.f32 %v3832_v42, %v5297_v58 }
 0x2bb   :  { %v1952_v60 = vpop.f32.mrf.mxu2  ;;  %v1786_v63 = vpack.c.bf16 %v2675_v31, %v2673_v7  ;;  %v1615_v16 = vadd.f32 %v1551_v18, %v1230_v55  ;;  %v4446_v11 = vpop.eup %2676  ;;  %v1203_v7 = vadd.f32 %v1139_v51, %v818_v14  ;;  %v1138_v31 = vmul.f32 %v3838_v43, %v5298_v17 }
 0x2bc   :  { %v1585_v27 = vadd.f32 %v1521_v54, %v1200_v36  ;;  %v1953_v61 = vadd.f32 %v4417_v25, %v1952_v60  ;;  %v4441_v41 = vpop.permute.xlu0 %1463 }
 0x2bd   :  { %1986 = vmatmul.bf16.gmra.mxu2 %v1786_v63  ;;  %v1872_v26 = vpop.f32.mrf.mxu0  ;;  %v1683_v29 = vadd.f32 %v4411_v19, %v1615_v16  ;;  %v1588_v18 = vadd.f32 %v1524_v6, %v1203_v7  ;;  %v2894_v63 = vld [vmem:[%s5063_s0 + $0xf0] sm:$0xff] }
 0x2be   :  { %v1653_v35 = vadd.f32 %v4411_v19, %v1585_v27  ;;  %v1873_v12 = vadd.f32 %v4417_v25, %v1872_v26  ;;  %v5299_v26 = vld [vmem:[#allocation101_spill] sm:$0xff] }
 0x2bf   :  { %v1444_v13 = vpop.permute.xlu1 %1443  ;;  %v784_v47 = vmul.f32 %v3830_v44, %v5299_v26 }
 0x2c0   :  { %2678 = vtanh.f32 %v1653_v35  ;;  %v1552_v38 = vmul.f32 %v3843_v22, %v1444_v13 }
 0x2c1   :  { %2600 = vset.pattern.permute.xlu2 %v5211_v24  ;;  %2680 = vtanh.f32 %v1953_v61 }
 0x2c2   :  { %v1616_v45 = vadd.f32 %v1552_v38, %v1231_v53  ;;  %2599 = vset.pattern.permute.xlu1 %v5211_v24  ;;  %1114 = vperm.xlu2 %2600, %v2893_v23   ;;  %v4435_v34 = vpop.permute.xlu2 %1074  ;;  %2682 = vtanh.f32 %v1683_v29  ;;  %v1553_v53 = vmul.f32 %v3843_v22, %v4286_v10  ;;  %v1656_v29 = vadd.f32 %v4411_v19, %v1588_v18 }
 0x2c3   :  { %1110 = vperm.xlu1 %2599, %v4208_v8   ;;  %v1954_v37 = vpop.f32.mrf.mxu2  ;;  %2684 = vtanh.f32 %v1873_v12  ;;  %v753_v8 = vmul.f32 %v3830_v44, %v5295_v48 }
 0x2c4   :  { %v1684_v24 = vadd.f32 %v4411_v19, %v1616_v45  ;;  %1911 = vmatmul.bf16.gmra.mxu0 %v1771_v57  ;;  %v1955_v15 = vadd.f32 %v4417_v25, %v1954_v37  ;;  %v5296_v57 = vld [vmem:[#allocation52_spill] sm:$0xff]  ;;  %v1340_v38 = vpop.permute.xlu0 %1339  ;;  %v5300_v45 = vld [vmem:[#allocation66_spill] sm:$0xff] }
 0x2c5   :  { %v1874_v28 = vpop.f32.mrf.mxu0  ;;  %v462_v33 = vmul.f32 %v3832_v42, %v5296_v57  ;;  %v817_v60 = vadd.f32 %v753_v8, %v432_v0  ;;  %v463_v62 = vmul.f32 %v3832_v42, %v5300_v45 }
 0x2c6   :  { %v2679_v9 = vpop.eup %2678  ;;  %2686 = vtanh.f32 %v1684_v24  ;;  %v1875_v39 = vadd.f32 %v4417_v25, %v1874_v28 }
 0x2c7   :  { %2688 = vtanh.f32 %v1955_v15  ;;  %v1772_v55 = vpack.c.bf16 %v4446_v11, %v2679_v9  ;;  %v2681_v21 = vpop.eup %2680  ;;  %v847_v36 = vadd.f32 %v783_v20, %v462_v33  ;;  %v1202_v35 = vadd.f32 %v1138_v31, %v817_v60  ;;  %v5303_v33 = vld [vmem:[#allocation123_spill] sm:$0xff]  ;;  %v5306_v60 = vld [vmem:[#allocation65_spill] sm:$0xff] }
 0x2c8   :  { %2690 = vtanh.f32 %v1875_v39  ;;  %v1063_v2 = vpop.permute.xlu1 %1062  ;;  %v2683_v46 = vpop.eup %2682  ;;  %v848_v24 = vadd.f32 %v784_v47, %v463_v62  ;;  %v756_v20 = vmul.f32 %v3830_v44, %v5301_v1  ;;  %v5302_v39 = vld [vmem:[#allocation21_spill] sm:$0xff]  ;;  %v5304_v31 = vld [vmem:[#allocation107_spill] sm:$0xff] }
 0x2c9   :  { %v1168_v54 = vmul.f32 %v3838_v43, %v1063_v2  ;;  %v2685_v52 = vpop.eup %2684  ;;  %2692 = vtanh.f32 %v1656_v29  ;;  %v435_v57 = vmul.f32 %v3832_v42, %v5302_v39  ;;  %v785_v2 = vmul.f32 %v3830_v44, %v5304_v31 }
 0x2ca   :  { %982 = vperm.xlu2 %2600, %v2894_v63   ;;  %v1233_v14 = vadd.f32 %v1169_v49, %v848_v24  ;;  %v5309_v24 = vld [vmem:[#allocation109_spill] sm:$0xff] }
 0x2cb   :  { %v1232_v5 = vadd.f32 %v1168_v54, %v847_v36  ;;  %2601 = vset.pattern.permute.xlu1 %v5208_v30  ;;  %v1328_v32 = vpop.permute.xlu2 %1327  ;;  %v1957_v16 = vpop.f32.mrf.mxu2  ;;  %v820_v17 = vadd.f32 %v756_v20, %v435_v57  ;;  %v5305_v54 = vld [vmem:[#allocation91_spill] sm:$0xff] }
 0x2cc   :  { %v2687_v27 = vpop.eup %2686  ;;  %v1523_v61 = vmul.f32 %v3843_v22, %v1328_v32  ;;  %1499 = vperm.xlu1 %2601, %v2893_v23   ;;  %v1958_v15 = vadd.f32 %v4417_v25, %v1957_v16  ;;  %v4497_v36 = vpop.permute.xlu0 %1471  ;;  %v5307_v32 = vld [vmem:[#allocation35_spill] sm:$0xff] }
 0x2cd   :  { %v2689_v13 = vpop.eup %2688  ;;  %v1877_v4 = vpop.f32.mrf.mxu0  ;;  %v1787_v59 = vpack.c.bf16 %v2687_v27, %v2683_v46  ;;  %v1617_v37 = vadd.f32 %v1553_v53, %v1232_v5  ;;  %v755_v46 = vmul.f32 %v3830_v44, %v5305_v54  ;;  %v434_v16 = vmul.f32 %v3832_v42, %v5307_v32  ;;  %v5308_v27 = vld [vmem:[#allocation117_spill] sm:$0xff] }
 0x2ce   :  { %v2691_v12 = vpop.eup %2690  ;;  %v1587_v40 = vadd.f32 %v1523_v61, %v1202_v35  ;;  %v2112_v51 = vpack.c.bf16 %v2689_v13, %v2681_v21  ;;  %v1878_v7 = vadd.f32 %v4417_v25, %v1877_v4  ;;  %v1526_v21 = vmul.f32 %v3843_v22, %v1340_v38 }
 0x2cf   :  { %1991 = vmatmul.bf16.gmra.mxu2 %v1787_v59  ;;  %v2096_v23 = vpack.c.bf16 %v2691_v12, %v2685_v52  ;;  %v1685_v6 = vadd.f32 %v4411_v19, %v1617_v37  ;;  %v1140_v26 = vmul.f32 %v3838_v43, %v5308_v27  ;;  %v819_v38 = vadd.f32 %v755_v46, %v434_v16  ;;  %v5313_v46 = vld [vmem:[#allocation118_spill] sm:$0xff] }
 0x2d0   :  { %v1655_v10 = vadd.f32 %v4411_v19, %v1587_v40  ;;  %2284 = vmatmul.bf16.vlgmr.msra.gmra.mxu3 %v2112_v51  ;;  %v1555_v40 = vmul.f32 %v3843_v22, %v4362_v50  ;;  %v1171_v50 = vmul.f32 %v3838_v43, %v4435_v34 }
 0x2d1   :  { %v1452_v11 = vpop.permute.xlu1 %1451  ;;  %2204 = vmatmul.bf16.vlgmr.msra.gmra.mxu1 %v2096_v23  ;;  %v1204_v49 = vadd.f32 %v1140_v26, %v819_v38 }
 0x2d2   :  { %2694 = vtanh.f32 %v1655_v10  ;;  %v1554_v56 = vmul.f32 %v3843_v22, %v1452_v11  ;;  %2603 = vset.pattern.permute.xlu2 %v5208_v30  ;;  %v1141_v30 = vmul.f32 %v3838_v43, %v5303_v33  ;;  %v786_v10 = vmul.f32 %v3830_v44, %v5309_v24 }
 0x2d3   :  { %1371 = vperm.xlu2 %2603, %v4252_v3   ;;  %v1959_v28 = vpop.f32.mrf.mxu2  ;;  %2696 = vtanh.f32 %v1958_v15 }
 0x2d4   :  { %v1618_v9 = vadd.f32 %v1554_v56, %v1233_v14  ;;  %1367 = vperm.xlu1 %2601, %v2894_v63   ;;  %1916 = vmatmul.bf16.gmra.mxu0 %v1772_v55  ;;  %v4484_v48 = vpop.permute.xlu2 %1082  ;;  %v1960_v8 = vadd.f32 %v4417_v25, %v1959_v28  ;;  %v2693_v55 = vpop.eup %2692  ;;  %v464_v63 = vmul.f32 %v3832_v42, %v5306_v60 }
 0x2d5   :  { %v1879_v58 = vpop.f32.mrf.mxu0  ;;  %v1205_v52 = vadd.f32 %v1141_v30, %v820_v17  ;;  %v1143_v60 = vmul.f32 %v3838_v43, %v5313_v46 }
 0x2d6   :  { %v1686_v3 = vadd.f32 %v4411_v19, %v1618_v9  ;;  %2698 = vtanh.f32 %v1960_v8  ;;  %v1880_v0 = vadd.f32 %v4417_v25, %v1879_v58  ;;  %v849_v61 = vadd.f32 %v785_v2, %v464_v63  ;;  %v1348_v9 = vpop.permute.xlu0 %1347 }
 0x2d7   :  { %2700 = vtanh.f32 %v1685_v6  ;;  %v1590_v13 = vadd.f32 %v1526_v21, %v1205_v52  ;;  %v5310_v6 = vld [vmem:[#allocation55_spill] sm:$0xff] }
 0x2d8   :  { %v2695_v18 = vpop.eup %2694  ;;  %2702 = vtanh.f32 %v1686_v3  ;;  %v465_v28 = vmul.f32 %v3832_v42, %v5310_v6 }
 0x2d9   :  { %2704 = vtanh.f32 %v1878_v7  ;;  %v1773_v5 = vpack.c.bf16 %v2693_v55, %v2695_v18  ;;  %v2697_v35 = vpop.eup %2696  ;;  %v1658_v15 = vadd.f32 %v4411_v19, %v1590_v13  ;;  %v5312_v18 = vld [vmem:[#allocation38_spill] sm:$0xff]  ;;  %v1528_v13 = vmul.f32 %v3843_v22, %v1348_v9 }
 0x2da   :  { %2706 = vtanh.f32 %v1880_v0  ;;  %v1071_v47 = vpop.permute.xlu1 %1070  ;;  %v850_v57 = vadd.f32 %v786_v10, %v465_v28  ;;  %v5311_v0 = vld [vmem:[#allocation92_spill] sm:$0xff]  ;;  %v437_v54 = vmul.f32 %v3832_v42, %v5312_v18 }
 0x2db   :  { %v1170_v53 = vmul.f32 %v3838_v43, %v1071_v47  ;;  %2708 = vtanh.f32 %v1658_v15  ;;  %v758_v34 = vmul.f32 %v3830_v44, %v5311_v0 }
 0x2dc   :  { %v2699_v29 = vpop.eup %2698  ;;  %v1235_v58 = vadd.f32 %v1171_v50, %v850_v57 }
 0x2dd   :  { %v2701_v4 = vpop.eup %2700  ;;  %v1234_v59 = vadd.f32 %v1170_v53, %v849_v61  ;;  %v1336_v12 = vpop.permute.xlu2 %1335  ;;  %v2113_v45 = vpack.c.bf16 %v2699_v29, %v2697_v35  ;;  %v822_v47 = vadd.f32 %v758_v34, %v437_v54  ;;  %v5315_v35 = vld [vmem:[#allocation102_spill] sm:$0xff]  ;;  %v5316_v53 = vld [vmem:[#allocation39_spill] sm:$0xff]  ;;  %v1173_v34 = vmul.f32 %v3838_v43, %v4484_v48 }
 0x2de   :  { %v2703_v62 = vpop.eup %2702  ;;  %v1525_v51 = vmul.f32 %v3843_v22, %v1336_v12  ;;  %v1962_v37 = vpop.f32.mrf.mxu2  ;;  %v787_v61 = vmul.f32 %v3830_v44, %v5315_v35  ;;  %v436_v29 = vmul.f32 %v3832_v42, %v5316_v53 }
 0x2df   :  { %v2705_v23 = vpop.eup %2704  ;;  %v1788_v11 = vpack.c.bf16 %v2703_v62, %v2701_v4  ;;  %v1619_v56 = vadd.f32 %v1555_v40, %v1234_v59  ;;  %v1963_v33 = vadd.f32 %v4417_v25, %v1962_v37  ;;  %v4541_v38 = vpop.permute.xlu0 %1479  ;;  %v5317_v59 = vld [vmem:[#allocation68_spill] sm:$0xff] }
 0x2e0   :  { %v2707_v14 = vpop.eup %2706  ;;  %v1589_v1 = vadd.f32 %v1525_v51, %v1204_v49  ;;  %v1882_v20 = vpop.f32.mrf.mxu0  ;;  %2289 = vmatmul.bf16.gmra.mxu3 %v2113_v45  ;;  %v466_v12 = vmul.f32 %v3832_v42, %v5317_v59  ;;  %v1207_v45 = vadd.f32 %v1143_v60, %v822_v47  ;;  %v5318_v62 = vld [vmem:[#allocation124_spill] sm:$0xff]  ;;  %v5322_v47 = vld [vmem:[#allocation42_spill] sm:$0xff]  ;;  %v5324_v59 = vld [vmem:[#allocation111_spill] sm:$0xff] }
 0x2e1   :  { %1996 = vmatmul.bf16.gmra.mxu2 %v1788_v11  ;;  %v2097_v8 = vpack.c.bf16 %v2707_v14, %v2705_v23  ;;  %v1687_v30 = vadd.f32 %v4411_v19, %v1619_v56  ;;  %v1883_v55 = vadd.f32 %v4417_v25, %v1882_v20  ;;  %v2709_v52 = vpop.eup %2708  ;;  %v1142_v49 = vmul.f32 %v3838_v43, %v5318_v62 }
 0x2e2   :  { %v1657_v39 = vadd.f32 %v4411_v19, %v1589_v1  ;;  %v851_v24 = vadd.f32 %v787_v61, %v466_v12  ;;  %v1592_v10 = vadd.f32 %v1528_v13, %v1207_v45  ;;  %v439_v35 = vmul.f32 %v3832_v42, %v5322_v47  ;;  %v5323_v61 = vld [vmem:[#allocation126_spill] sm:$0xff] }
 0x2e3   :  { %2209 = vmatmul.bf16.gmra.mxu1 %v2097_v8  ;;  %v5319_v8 = vld [vmem:[#allocation110_spill] sm:$0xff]  ;;  %v1145_v13 = vmul.f32 %v3838_v43, %v5323_v61  ;;  %v789_v12 = vmul.f32 %v3830_v44, %v5324_v59 }
 0x2e4   :  { %2710 = vtanh.f32 %v1657_v39  ;;  %v1460_v7 = vpop.permute.xlu1 %1459  ;;  %1921 = vmatmul.bf16.gmra.mxu0 %v1773_v5  ;;  %v5314_v5 = vld [vmem:[#allocation26_spill] sm:$0xff]  ;;  %v788_v39 = vmul.f32 %v3830_v44, %v5319_v8 }
 0x2e5   :  { %v1556_v3 = vmul.f32 %v3843_v22, %v1460_v7  ;;  %2712 = vtanh.f32 %v1963_v33  ;;  %v757_v32 = vmul.f32 %v3830_v44, %v5314_v5  ;;  %v1557_v33 = vmul.f32 %v3843_v22, %v4441_v41 }
 0x2e6   :  { %v4525_v17 = vpop.permute.xlu2 %1090  ;;  %v1964_v31 = vpop.f32.mrf.mxu2  ;;  %2714 = vtanh.f32 %v1687_v30  ;;  %v1660_v30 = vadd.f32 %v4411_v19, %v1592_v10  ;;  %v5327_v10 = vld [vmem:[#allocation27_spill] sm:$0xff] }
 0x2e7   :  { %v1620_v2 = vadd.f32 %v1556_v3, %v1235_v58  ;;  %v1965_v21 = vadd.f32 %v4417_v25, %v1964_v31  ;;  %v821_v23 = vadd.f32 %v757_v32, %v436_v29  ;;  %v5320_v3 = vld [vmem:[#allocation67_spill] sm:$0xff]  ;;  %v1356_v18 = vpop.permute.xlu0 %1355 }
 0x2e8   :  { %v1884_v63 = vpop.f32.mrf.mxu0  ;;  %v467_v0 = vmul.f32 %v3832_v42, %v5320_v3  ;;  %v1530_v45 = vmul.f32 %v3843_v22, %v1356_v18  ;;  %v1559_v18 = vmul.f32 %v3843_v22, %v4497_v36 }
 0x2e9   :  { %v1688_v16 = vadd.f32 %v4411_v19, %v1620_v2  ;;  %2716 = vtanh.f32 %v1965_v21  ;;  %v1885_v27 = vadd.f32 %v4417_v25, %v1884_v63  ;;  %v1206_v1 = vadd.f32 %v1142_v49, %v821_v23  ;;  %v5321_v63 = vld [vmem:[#allocation24_spill] sm:$0xff]  ;;  %v5325_v49 = vld [vmem:[#allocation93_spill] sm:$0xff] }
 0x2ea   :  { %v2711_v26 = vpop.eup %2710  ;;  %2718 = vtanh.f32 %v1883_v55  ;;  %v852_v21 = vadd.f32 %v788_v39, %v467_v0  ;;  %v760_v48 = vmul.f32 %v3830_v44, %v5321_v63  ;;  %v1175_v63 = vmul.f32 %v3838_v43, %v4525_v17 }
 0x2eb   :  { %2720 = vtanh.f32 %v1688_v16  ;;  %v1774_v4 = vpack.c.bf16 %v2709_v52, %v2711_v26  ;;  %v2713_v40 = vpop.eup %2712 }
 0x2ec   :  { %2722 = vtanh.f32 %v1885_v27  ;;  %v2715_v37 = vpop.eup %2714  ;;  %v1237_v46 = vadd.f32 %v1173_v34, %v852_v21 }
 0x2ed   :  { %v1079_v51 = vpop.permute.xlu1 %1078  ;;  %2724 = vtanh.f32 %v1660_v30 }
 0x2ee   :  { %v1172_v15 = vmul.f32 %v3838_v43, %v1079_v51  ;;  %v5326_v51 = vld [vmem:[#allocation58_spill] sm:$0xff] }
 0x2ef   :  { %v2717_v11 = vpop.eup %2716  ;;  %v1344_v14 = vpop.permute.xlu2 %1343 }
 0x2f0   :  { %v2719_v56 = vpop.eup %2718  ;;  %v1236_v20 = vadd.f32 %v1172_v15, %v851_v24  ;;  %v1527_v6 = vmul.f32 %v3843_v22, %v1344_v14  ;;  %v1887_v28 = vpop.f32.mrf.mxu0  ;;  %v2114_v50 = vpack.c.bf16 %v2717_v11, %v2713_v40  ;;  %v759_v40 = vmul.f32 %v3830_v44, %v5325_v49  ;;  %v5328_v11 = vld [vmem:[#allocation125_spill] sm:$0xff] }
 0x2f1   :  { %v2721_v9 = vpop.eup %2720  ;;  %v1888_v41 = vadd.f32 %v4417_v25, %v1887_v28  ;;  %v438_v15 = vmul.f32 %v3832_v42, %v5327_v10  ;;  %v1144_v14 = vmul.f32 %v3838_v43, %v5328_v11 }
 0x2f2   :  { %v2723_v57 = vpop.eup %2722  ;;  %v1591_v7 = vadd.f32 %v1527_v6, %v1206_v1  ;;  %v1789_v58 = vpack.c.bf16 %v2721_v9, %v2715_v37  ;;  %2294 = vmatmul.bf16.gmra.mxu3 %v2114_v50  ;;  %v1621_v31 = vadd.f32 %v1557_v33, %v1236_v20  ;;  %v468_v37 = vmul.f32 %v3832_v42, %v5326_v51 }
 0x2f3   :  { %v2098_v55 = vpack.c.bf16 %v2723_v57, %v2719_v56  ;;  %v2725_v29 = vpop.eup %2724  ;;  %v4583_v56 = vpop.permute.xlu0 %1487  ;;  %v823_v39 = vadd.f32 %v759_v40, %v438_v15  ;;  %v5333_v40 = vld [vmem:[#allocation127_spill] sm:$0xff] }
 0x2f4   :  { %v1659_v2 = vadd.f32 %v4411_v19, %v1591_v7  ;;  %1926 = vmatmul.bf16.gmra.mxu0 %v1774_v4  ;;  %2001 = vmatmul.bf16.gmra.mxu2 %v1789_v58  ;;  %v1689_v52 = vadd.f32 %v4411_v19, %v1621_v31  ;;  %v824_v4 = vadd.f32 %v760_v48, %v439_v35 }
 0x2f5   :  { %2214 = vmatmul.bf16.gmra.mxu1 %v2098_v55  ;;  %v853_v6 = vadd.f32 %v789_v12, %v468_v37  ;;  %v5329_v55 = vld [vmem:[#allocation103_spill] sm:$0xff]  ;;  %v1147_v51 = vmul.f32 %v3838_v43, %v5333_v40 }
 0x2f6   :  { %v1468_v54 = vpop.permute.xlu1 %1467  ;;  %2726 = vtanh.f32 %v1659_v2  ;;  %v1209_v23 = vadd.f32 %v1145_v13, %v824_v4  ;;  %v790_v31 = vmul.f32 %v3830_v44, %v5329_v55  ;;  %v1208_v2 = vadd.f32 %v1144_v14, %v823_v39  ;;  %v5334_v14 = vld [vmem:[#allocation94_spill] sm:$0xff]  ;;  %v5337_v39 = vld [vmem:[#allocation69_spill] sm:$0xff] }
 0x2f7   :  { %v1558_v60 = vmul.f32 %v3843_v22, %v1468_v54  ;;  %2728 = vtanh.f32 %v1888_v41 }
 0x2f8   :  { %v4564_v5 = vpop.permute.xlu2 %1098  ;;  %v1889_v32 = vpop.f32.mrf.mxu0  ;;  %v1594_v28 = vadd.f32 %v1530_v45, %v1209_v23 }
 0x2f9   :  { %v1622_v16 = vadd.f32 %v1558_v60, %v1237_v46  ;;  %v1890_v27 = vadd.f32 %v4417_v25, %v1889_v32  ;;  %v1967_v26 = vpop.f32.mrf.mxu2  ;;  %v5330_v46 = vld [vmem:[#allocation70_spill] sm:$0xff] }
 0x2fa   :  { %v1968_v50 = vadd.f32 %v4417_v25, %v1967_v26  ;;  %v1662_v41 = vadd.f32 %v4411_v19, %v1594_v28  ;;  %v469_v60 = vmul.f32 %v3832_v42, %v5330_v46  ;;  %v5331_v26 = vld [vmem:[#allocation95_spill] sm:$0xff] }
 0x2fb   :  { %v1690_v53 = vadd.f32 %v4411_v19, %v1622_v16  ;;  %2730 = vtanh.f32 %v1890_v27  ;;  %v762_v47 = vmul.f32 %v3830_v44, %v5331_v26  ;;  %v1364_v61 = vpop.permute.xlu0 %1363 }
 0x2fc   :  { %2732 = vtanh.f32 %v1689_v52  ;;  %v2727_v62 = vpop.eup %2726  ;;  %v854_v32 = vadd.f32 %v790_v31, %v469_v60  ;;  %v1532_v10 = vmul.f32 %v3843_v22, %v1364_v61 }
 0x2fd   :  { %2734 = vtanh.f32 %v1690_v53  ;;  %v1775_v24 = vpack.c.bf16 %v2725_v29, %v2727_v62  ;;  %v2729_v20 = vpop.eup %2728  ;;  %v5332_v62 = vld [vmem:[#allocation31_spill] sm:$0xff] }
 0x2fe   :  { %2736 = vtanh.f32 %v1968_v50  ;;  %v1239_v35 = vadd.f32 %v1175_v63, %v854_v32  ;;  %v441_v49 = vmul.f32 %v3832_v42, %v5332_v62  ;;  %v5336_v50 = vld [vmem:[#allocation41_spill] sm:$0xff] }
 0x2ff   :  { %v1087_v1 = vpop.permute.xlu1 %1086 }
 0x300   :  { %v1174_v9 = vmul.f32 %v3838_v43, %v1087_v1  ;;  %v761_v1 = vmul.f32 %v3830_v44, %v5334_v14 }
 0x301   :  { %v2731_v8 = vpop.eup %2730  ;;  %v1892_v57 = vpop.f32.mrf.mxu0 }
 0x302   :  { %v1969_v33 = vpop.f32.mrf.mxu2  ;;  %v2733_v30 = vpop.eup %2732  ;;  %v1238_v7 = vadd.f32 %v1174_v9, %v853_v6  ;;  %v2099_v0 = vpack.c.bf16 %v2731_v8, %v2729_v20  ;;  %v1893_v16 = vadd.f32 %v4417_v25, %v1892_v57  ;;  %v5335_v20 = vld [vmem:[#allocation112_spill] sm:$0xff]  ;;  %v440_v9 = vmul.f32 %v3832_v42, %v5336_v50 }
 0x303   :  { %v1970_v58 = vadd.f32 %v4417_v25, %v1969_v33  ;;  %v1352_v3 = vpop.permute.xlu2 %1351  ;;  %v2735_v34 = vpop.eup %2734  ;;  %v791_v6 = vmul.f32 %v3830_v44, %v5335_v20  ;;  %v470_v57 = vmul.f32 %v3832_v42, %v5337_v39  ;;  %v5338_v33 = vld [vmem:[#allocation119_spill] sm:$0xff]  ;;  %v5341_v20 = vld [vmem:[#allocation105_spill] sm:$0xff] }
 0x304   :  { %v1529_v21 = vmul.f32 %v3843_v22, %v1352_v3  ;;  %1931 = vmatmul.bf16.gmra.mxu0 %v1775_v24  ;;  %v1790_v54 = vpack.c.bf16 %v2735_v34, %v2733_v30  ;;  %v1623_v52 = vadd.f32 %v1559_v18, %v1238_v7  ;;  %v2737_v53 = vpop.eup %2736  ;;  %v826_v24 = vadd.f32 %v762_v47, %v441_v49 }
 0x305   :  { %2738 = vtanh.f32 %v1970_v58  ;;  %2219 = vmatmul.bf16.gmra.mxu1 %v2099_v0  ;;  %v1146_v30 = vmul.f32 %v3838_v43, %v5338_v33  ;;  %v1561_v47 = vmul.f32 %v3843_v22, %v4541_v38 }
 0x306   :  { %v1593_v48 = vadd.f32 %v1529_v21, %v1208_v2  ;;  %2006 = vmatmul.bf16.gmra.mxu2 %v1790_v54  ;;  %2740 = vtanh.f32 %v1662_v41  ;;  %v1691_v29 = vadd.f32 %v4411_v19, %v1623_v52  ;;  %v1211_v8 = vadd.f32 %v1147_v51, %v826_v24 }
 0x307   :  { %v825_v2 = vadd.f32 %v761_v1, %v440_v9  ;;  %v855_v21 = vadd.f32 %v791_v6, %v470_v57  ;;  %v793_v6 = vmul.f32 %v3830_v44, %v5341_v20 }
 0x308   :  { %v1661_v36 = vadd.f32 %v4411_v19, %v1593_v48  ;;  %v1476_v27 = vpop.permute.xlu1 %1475  ;;  %v1596_v0 = vadd.f32 %v1532_v10, %v1211_v8  ;;  %v5342_v8 = vld [vmem:[#allocation73_spill] sm:$0xff] }
 0x309   :  { %v1560_v17 = vmul.f32 %v3843_v22, %v1476_v27  ;;  %v1894_v13 = vpop.f32.mrf.mxu0  ;;  %v1210_v48 = vadd.f32 %v1146_v30, %v825_v2  ;;  %v472_v39 = vmul.f32 %v3832_v42, %v5342_v8 }
 0x30a   :  { %2742 = vtanh.f32 %v1661_v36  ;;  %v1895_v4 = vadd.f32 %v4417_v25, %v1894_v13  ;;  %v1972_v12 = vpop.f32.mrf.mxu2  ;;  %v5339_v36 = vld [vmem:[#allocation113_spill] sm:$0xff]  ;;  %v1664_v26 = vadd.f32 %v4411_v19, %v1596_v0 }
 0x30b   :  { %v4605_v59 = vpop.permute.xlu2 %1106  ;;  %v2739_v45 = vpop.eup %2738  ;;  %2744 = vtanh.f32 %v1893_v16  ;;  %v1624_v37 = vadd.f32 %v1560_v17, %v1239_v35  ;;  %v1973_v7 = vadd.f32 %v4417_v25, %v1972_v12  ;;  %v792_v27 = vmul.f32 %v3830_v44, %v5339_v36  ;;  %v5340_v13 = vld [vmem:[#allocation61_spill] sm:$0xff] }
 0x30c   :  { %2746 = vtanh.f32 %v1895_v4  ;;  %v2115_v23 = vpack.c.bf16 %v2739_v45, %v2737_v53  ;;  %v2741_v11 = vpop.eup %2740  ;;  %v471_v53 = vmul.f32 %v3832_v42, %v5340_v13 }
 0x30d   :  { %v1692_v15 = vadd.f32 %v4411_v19, %v1624_v37  ;;  %2748 = vtanh.f32 %v1691_v29  ;;  %v1177_v29 = vmul.f32 %v3838_v43, %v4564_v5 }
 0x30e   :  { %2299 = vmatmul.bf16.gmra.mxu3 %v2115_v23  ;;  %v856_v45 = vadd.f32 %v792_v27, %v471_v53 }
 0x30f   :  { %2750 = vtanh.f32 %v1692_v15 }
 0x310   :  { %v2743_v28 = vpop.eup %2742  ;;  %2752 = vtanh.f32 %v1973_v7  ;;  %v1241_v37 = vadd.f32 %v1177_v29, %v856_v45 }
 0x311   :  { %v1776_v58 = vpack.c.bf16 %v2741_v11, %v2743_v28  ;;  %v2745_v3 = vpop.eup %2744  ;;  %v1095_v34 = vpop.permute.xlu1 %1094 }
 0x312   :  { %v1897_v55 = vpop.f32.mrf.mxu0  ;;  %v2747_v31 = vpop.eup %2746  ;;  %v1176_v18 = vmul.f32 %v3838_v43, %v1095_v34 }
 0x313   :  { %v1974_v41 = vpop.f32.mrf.mxu2  ;;  %v1360_v46 = vpop.permute.xlu2 %1359  ;;  %v2100_v60 = vpack.c.bf16 %v2747_v31, %v2745_v3  ;;  %v1898_v35 = vadd.f32 %v4417_v25, %v1897_v55 }
 0x314   :  { %v1975_v54 = vadd.f32 %v4417_v25, %v1974_v41  ;;  %v2749_v63 = vpop.eup %2748  ;;  %v1240_v52 = vadd.f32 %v1176_v18, %v855_v21  ;;  %v1531_v32 = vmul.f32 %v3843_v22, %v1360_v46  ;;  %1936 = vmatmul.bf16.gmra.mxu0 %v1776_v58  ;;  %v857_v58 = vadd.f32 %v793_v6, %v472_v39  ;;  %v5343_v18 = vld [vmem:[#allocation114_spill] sm:$0xff]  ;;  %v5348_v39 = vld [vmem:[#allocation44_spill] sm:$0xff] }
 0x315   :  { %v2751_v16 = vpop.eup %2750  ;;  %2224 = vmatmul.bf16.gmra.mxu1 %v2100_v60  ;;  %v794_v41 = vmul.f32 %v3830_v44, %v5343_v18 }
 0x316   :  { %2754 = vtanh.f32 %v1975_v54  ;;  %v1595_v61 = vadd.f32 %v1531_v32, %v1210_v48  ;;  %v1791_v17 = vpack.c.bf16 %v2751_v16, %v2749_v63  ;;  %v1625_v4 = vadd.f32 %v1561_v47, %v1240_v52  ;;  %v2753_v49 = vpop.eup %2752  ;;  %v5344_v63 = vld [vmem:[#allocation72_spill] sm:$0xff] }
 0x317   :  { %2756 = vtanh.f32 %v1664_v26  ;;  %v1563_v54 = vmul.f32 %v3843_v22, %v4583_v56  ;;  %v473_v48 = vmul.f32 %v3832_v42, %v5344_v63  ;;  %v1179_v52 = vmul.f32 %v3838_v43, %v4605_v59  ;;  %v1496_v56 = vpop.permute.xlu0 %1495 }
 0x318   :  { %v1663_v12 = vadd.f32 %v4411_v19, %v1595_v61  ;;  %2011 = vmatmul.bf16.gmra.mxu2 %v1791_v17  ;;  %2758 = vtanh.f32 %v1898_v35  ;;  %v1693_v24 = vadd.f32 %v4411_v19, %v1625_v4 }
 0x319   :  { %v858_v27 = vadd.f32 %v794_v41, %v473_v48 }
 0x31a   :  { %v1899_v62 = vpop.f32.mrf.mxu0  ;;  %v1484_v40 = vpop.permute.xlu1 %1483  ;;  %2760 = vtanh.f32 %v1663_v12 }
 0x31b   :  { %v1900_v38 = vadd.f32 %v4417_v25, %v1899_v62  ;;  %v1562_v23 = vmul.f32 %v3843_v22, %v1484_v40  ;;  %v1243_v61 = vadd.f32 %v1179_v52, %v858_v27 }
 0x31c   :  { %v2755_v51 = vpop.eup %2754  ;;  %v1977_v5 = vpop.f32.mrf.mxu2 }
 0x31d   :  { %2762 = vtanh.f32 %v1900_v38  ;;  %v2116_v10 = vpack.c.bf16 %v2755_v51, %v2753_v49  ;;  %v1626_v15 = vadd.f32 %v1562_v23, %v1241_v37  ;;  %v2757_v11 = vpop.eup %2756  ;;  %v1978_v57 = vadd.f32 %v4417_v25, %v1977_v5  ;;  %v4648_v34 = vpop.permute.xlu2 %1114  ;;  %v5345_v49 = vld [vmem:[#allocation115_spill] sm:$0xff]  ;;  %v5346_v51 = vld [vmem:[#allocation64_spill] sm:$0xff] }
 0x31e   :  { %v2759_v1 = vpop.eup %2758  ;;  %2764 = vtanh.f32 %v1693_v24  ;;  %v795_v38 = vmul.f32 %v3830_v44, %v5345_v49  ;;  %v474_v37 = vmul.f32 %v3832_v42, %v5346_v51  ;;  %v1181_v18 = vmul.f32 %v3838_v43, %v4648_v34 }
 0x31f   :  { %2304 = vmatmul.bf16.gmra.mxu3 %v2116_v10  ;;  %v1694_v14 = vadd.f32 %v4411_v19, %v1626_v15 }
 0x320   :  { %v2761_v28 = vpop.eup %2760  ;;  %v859_v10 = vadd.f32 %v795_v38, %v474_v37 }
 0x321   :  { %2766 = vtanh.f32 %v1694_v14  ;;  %v1777_v33 = vpack.c.bf16 %v2757_v11, %v2761_v28  ;;  %v987_v14 = vpop.permute.xlu0 %986  ;;  %v5347_v28 = vld [vmem:[#allocation96_spill] sm:$0xff] }
 0x322   :  { %v1902_v50 = vpop.f32.mrf.mxu0  ;;  %2768 = vtanh.f32 %v1978_v57  ;;  %v443_v57 = vmul.f32 %v3832_v42, %v5348_v39 }
 0x323   :  { %v2763_v9 = vpop.eup %2762  ;;  %v1103_v30 = vpop.permute.xlu1 %1102  ;;  %v1903_v46 = vadd.f32 %v4417_v25, %v1902_v50  ;;  %v764_v50 = vmul.f32 %v3830_v44, %v5347_v28 }
 0x324   :  { %v2101_v7 = vpack.c.bf16 %v2763_v9, %v2759_v1  ;;  %v1178_v3 = vmul.f32 %v3838_v43, %v1103_v30  ;;  %1941 = vmatmul.bf16.gmra.mxu0 %v1777_v33  ;;  %v1979_v0 = vpop.f32.mrf.mxu2  ;;  %v2765_v31 = vpop.eup %2764  ;;  %v5349_v33 = vld [vmem:[#allocation108_spill] sm:$0xff] }
 0x325   :  { %v1980_v55 = vadd.f32 %v4417_v25, %v1979_v0  ;;  %v983_v59 = vpop.permute.xlu2 %982  ;;  %v796_v30 = vmul.f32 %v3830_v44, %v5349_v33  ;;  %v1149_v0 = vmul.f32 %v3838_v43, %v987_v14  ;;  %v828_v41 = vadd.f32 %v764_v50, %v443_v57 }
 0x326   :  { %2229 = vmatmul.bf16.gmra.mxu1 %v2101_v7  ;;  %v1242_v2 = vadd.f32 %v1178_v3, %v857_v58  ;;  %v1565_v3 = vmul.f32 %v3843_v22, %v1496_v56  ;;  %v5351_v56 = vld [vmem:[#allocation34_spill] sm:$0xff] }
 0x327   :  { %v2767_v21 = vpop.eup %2766  ;;  %2770 = vtanh.f32 %v1980_v55  ;;  %v1213_v48 = vadd.f32 %v1149_v0, %v828_v41 }
 0x328   :  { %v1792_v60 = vpack.c.bf16 %v2767_v21, %v2765_v31  ;;  %v1627_v16 = vadd.f32 %v1563_v54, %v1242_v2  ;;  %v2769_v26 = vpop.eup %2768  ;;  %2772 = vtanh.f32 %v1903_v46  ;;  %v5350_v2 = vld [vmem:[#allocation75_spill] sm:$0xff] }
 0x329   :  { %v475_v21 = vmul.f32 %v3832_v42, %v5350_v2 }
 0x32a   :  { %v1904_v32 = vpop.f32.mrf.mxu0  ;;  %2016 = vmatmul.bf16.gmra.mxu2 %v1792_v60  ;;  %v1695_v13 = vadd.f32 %v4411_v19, %v1627_v16 }
 0x32b   :  { %v1905_v36 = vadd.f32 %v4417_v25, %v1904_v32  ;;  %v860_v60 = vadd.f32 %v796_v30, %v475_v21 }
 0x32c   :  { %v1492_v47 = vpop.permute.xlu1 %1491 }
 0x32d   :  { %v2771_v35 = vpop.eup %2770  ;;  %2774 = vtanh.f32 %v1905_v36  ;;  %v1564_v17 = vmul.f32 %v3843_v22, %v1492_v47  ;;  %v1372_v7 = vpop.permute.xlu2 %1371  ;;  %v1245_v16 = vadd.f32 %v1181_v18, %v860_v60 }
 0x32e   :  { %v1982_v53 = vpop.f32.mrf.mxu2  ;;  %v2117_v29 = vpack.c.bf16 %v2771_v35, %v2769_v26  ;;  %v2773_v62 = vpop.eup %2772  ;;  %2776 = vtanh.f32 %v1695_v13  ;;  %v1534_v54 = vmul.f32 %v3843_v22, %v1372_v7 }
 0x32f   :  { %v1628_v4 = vadd.f32 %v1564_v17, %v1243_v61  ;;  %v1983_v23 = vadd.f32 %v4417_v25, %v1982_v53  ;;  %v763_v61 = vmul.f32 %v3830_v44, %v5351_v56 }
 0x330   :  { %2309 = vmatmul.bf16.gmra.mxu3 %v2117_v29  ;;  %v1598_v27 = vadd.f32 %v1534_v54, %v1213_v48  ;;  %v5352_v29 = vld [vmem:[#allocation45_spill] sm:$0xff] }
 0x331   :  { %v1696_v12 = vadd.f32 %v4411_v19, %v1628_v4  ;;  %v442_v4 = vmul.f32 %v3832_v42, %v5352_v29 }
 0x332   :  { %v1907_v45 = vpop.f32.mrf.mxu0  ;;  %v1666_v49 = vadd.f32 %v4411_v19, %v1598_v27 }
 0x333   :  { %v2775_v40 = vpop.eup %2774  ;;  %2778 = vtanh.f32 %v1696_v12  ;;  %v1908_v1 = vadd.f32 %v4417_v25, %v1907_v45  ;;  %v1148_v12 = vmul.f32 %v3838_v43, %v983_v59  ;;  %v827_v38 = vadd.f32 %v763_v61, %v442_v4 }
 0x334   :  { %v2102_v24 = vpack.c.bf16 %v2775_v40, %v2773_v62  ;;  %v2777_v6 = vpop.eup %2776  ;;  %2780 = vtanh.f32 %v1983_v23 }
 0x335   :  { %v1111_v5 = vpop.permute.xlu1 %1110  ;;  %v1212_v37 = vadd.f32 %v1148_v12, %v827_v38 }
 0x336   :  { %v1180_v15 = vmul.f32 %v3838_v43, %v1111_v5  ;;  %2234 = vmatmul.bf16.gmra.mxu1 %v2102_v24  ;;  %v1984_v11 = vpop.f32.mrf.mxu2  ;;  %v4702_v5 = vld [vmem:[%s5067_s4] ss:$0 sm:$0xff] }
 0x337   :  { %v1985_v20 = vadd.f32 %v4417_v25, %v1984_v11 }
 0x338   :  { %v1244_v9 = vadd.f32 %v1180_v15, %v859_v10 }
 0x339   :  { %v2779_v8 = vpop.eup %2778  ;;  %2782 = vtanh.f32 %v1985_v20 }
 0x33a   :  { %v1909_v58 = vpop.f32.mrf.mxu0  ;;  %v1793_v31 = vpack.c.bf16 %v2779_v8, %v2777_v6  ;;  %2784 = vtanh.f32 %v1908_v1  ;;  %v1629_v46 = vadd.f32 %v1565_v3, %v1244_v9  ;;  %v2781_v63 = vpop.eup %2780 }
 0x33b   :  { %v1910_v55 = vadd.f32 %v4417_v25, %v1909_v58 }
 0x33c   :  { %2021 = vmatmul.bf16.gmra.mxu2 %v1793_v31  ;;  %v1697_v26 = vadd.f32 %v4411_v19, %v1629_v46 }
 0x33d   :  { %2786 = vtanh.f32 %v1910_v55 }
 0x33e   :  { %v1500_v52 = vpop.permute.xlu1 %1499  ;;  %2788 = vtanh.f32 %v1697_v26 }
 0x33f   :  { %v2783_v32 = vpop.eup %2782  ;;  %v1566_v36 = vmul.f32 %v3843_v22, %v1500_v52 }
 0x340   :  { %v1987_v47 = vpop.f32.mrf.mxu2  ;;  %v2118_v34 = vpack.c.bf16 %v2783_v32, %v2781_v63  ;;  %v2785_v35 = vpop.eup %2784 }
 0x341   :  { %v1630_v17 = vadd.f32 %v1566_v36, %v1245_v16  ;;  %v1988_v40 = vadd.f32 %v4417_v25, %v1987_v47 }
 0x342   :  { %v1912_v13 = vpop.f32.mrf.mxu0  ;;  %2314 = vmatmul.bf16.gmra.mxu3 %v2118_v34 }
 0x343   :  { %v2787_v53 = vpop.eup %2786  ;;  %v1698_v45 = vadd.f32 %v4411_v19, %v1630_v17  ;;  %v1913_v44 = vadd.f32 %v4417_v25, %v1912_v13 }
 0x344   :  { %v2103_v62 = vpack.c.bf16 %v2787_v53, %v2785_v35  ;;  %v2789_v19 = vpop.eup %2788 }
 0x345   :  { %2790 = vtanh.f32 %v1698_v45 }
 0x346   :  { %2239 = vmatmul.bf16.gmra.mxu1 %v2103_v62  ;;  %v1368_v51 = vpop.permute.xlu1 %1367  ;;  %2792 = vtanh.f32 %v1666_v49 }
 0x347   :  { %v1533_v23 = vmul.f32 %v3843_v22, %v1368_v51  ;;  %2794 = vtanh.f32 %v1988_v40  ;;  %v2896_v22 = vld [vmem:[%s5064_s2] ss:$0 sm:$0xff] }
 0x348   :  { %v1989_v42 = vpop.f32.mrf.mxu2  ;;  %2796 = vtanh.f32 %v1913_v44 }
 0x349   :  { %v1597_v43 = vadd.f32 %v1533_v23, %v1212_v37  ;;  %v1990_v24 = vadd.f32 %v4417_v25, %v1989_v42  ;;  %v4711_v25 = vld [vmem:[%s5069_s6] ss:$0 sm:$0xff] }
 0x34a   :  { %v1914_v59 = vpop.f32.mrf.mxu0 }
 0x34b   :  { %v1915_v10 = vadd.f32 %v4702_v5, %v1914_v59  ;;  %v2791_v15 = vpop.eup %2790  ;;  %v1665_v11 = vadd.f32 %v2896_v22, %v1597_v43  ;;  %2798 = vtanh.f32 %v1990_v24 }
 0x34c   :  { %v1794_v14 = vpack.c.bf16 %v2791_v15, %v2789_v19  ;;  %v2793_v1 = vpop.eup %2792 }
 0x34d   :  { %2800 = vtanh.f32 %v1915_v10  ;;  %v2795_v6 = vpop.eup %2794 }
 0x34e   :  { %2802 = vtanh.f32 %v1665_v11  ;;  %2026 = vmatmul.bf16.gmra.mxu2 %v1794_v14  ;;  %v2205_v20 = vpop.f32.mrf.mxu1  ;;  %v2797_v50 = vpop.eup %2796 }
 0x34f   :  { %v2206_v28 = vadd.f32 %v4711_v25, %v2205_v20 }
 0x351   :  { %v2799_v9 = vpop.eup %2798  ;;  %2366 = vst.msk [vmem:[%s5070_s7] sm:$0xff] %vm2365_vm0, %v2206_v28 }
 0x352   :  { %v1917_v8 = vpop.f32.mrf.mxu0  ;;  %v1992_v57 = vpop.f32.mrf.mxu2  ;;  %v2119_v33 = vpack.c.bf16 %v2799_v9, %v2795_v6 }
 0x353   :  { %v2801_v39 = vpop.eup %2800  ;;  %v2285_v7 = vpop.f32.mrf.mxu3  ;;  %v1918_v55 = vadd.f32 %v4702_v5, %v1917_v8  ;;  %v1993_v2 = vadd.f32 %v4702_v5, %v1992_v57 }
 0x354   :  { %v2803_v30 = vpop.eup %2802  ;;  %v2104_v58 = vpack.c.bf16 %v2801_v39, %v2797_v50  ;;  %v2286_v3 = vadd.f32 %v4711_v25, %v2285_v7  ;;  %2319 = vmatmul.bf16.gmra.mxu3 %v2119_v33 }
 0x355   :  { %v1778_v0 = vpack.c.bf16 %v2793_v1, %v2803_v30  ;;  %2804 = vtanh.f32 %v1918_v55 }
 0x356   :  { %2398 = vst.msk [vmem:[%s5070_s7 + $0x100] sm:$0xff] %vm2365_vm0, %v2286_v3  ;;  %2244 = vmatmul.bf16.gmra.mxu1 %v2104_v58  ;;  %v2207_v31 = vpop.f32.mrf.mxu1  ;;  %2806 = vtanh.f32 %v1993_v2 }
 0x357   :  { %1946 = vmatmul.bf16.gmra.mxu0 %v1778_v0  ;;  %v2208_v21 = vadd.f32 %v4711_v25, %v2207_v31 }
 0x359   :  { %2367 = vst.msk [vmem:[%s5070_s7 + $0x8] sm:$0xff] %vm2365_vm0, %v2208_v21 }
 0x35a   :  { %v1919_v18 = vpop.f32.mrf.mxu0  ;;  %v1994_v54 = vpop.f32.mrf.mxu2 }
 0x35b   :  { %v1920_v41 = vadd.f32 %v4702_v5, %v1919_v18  ;;  %v1995_v46 = vadd.f32 %v4702_v5, %v1994_v54  ;;  %v2287_v60 = vpop.f32.mrf.mxu3  ;;  %v2805_v48 = vpop.eup %2804 }
 0x35c   :  { %v2288_v63 = vadd.f32 %v4711_v25, %v2287_v60  ;;  %v2807_v32 = vpop.eup %2806 }
 0x35d   :  { %2808 = vtanh.f32 %v1920_v41 }
 0x35e   :  { %2810 = vtanh.f32 %v1995_v46  ;;  %2399 = vst.msk [vmem:[%s5070_s7 + $0x108] sm:$0xff] %vm2365_vm0, %v2288_v63 }
 0x360   :  { %v2210_v52 = vpop.f32.mrf.mxu1 }
 0x361   :  { %v2211_v16 = vadd.f32 %v4711_v25, %v2210_v52 }
 0x362   :  { %v1922_v36 = vpop.f32.mrf.mxu0 }
 0x363   :  { %v2809_v27 = vpop.eup %2808  ;;  %2368 = vst.msk [vmem:[%s5070_s7 + $0x10] sm:$0xff] %vm2365_vm0, %v2211_v16  ;;  %v2290_v47 = vpop.f32.mrf.mxu3  ;;  %v1923_v17 = vadd.f32 %v4702_v5, %v1922_v36 }
 0x364   :  { %v2811_v26 = vpop.eup %2810  ;;  %v2105_v34 = vpack.c.bf16 %v2809_v27, %v2805_v48  ;;  %v2291_v35 = vadd.f32 %v4711_v25, %v2290_v47  ;;  %v1997_v56 = vpop.f32.mrf.mxu2 }
 0x365   :  { %v2120_v61 = vpack.c.bf16 %v2811_v26, %v2807_v32  ;;  %v1998_v4 = vadd.f32 %v4702_v5, %v1997_v56  ;;  %2812 = vtanh.f32 %v1923_v17 }
 0x366   :  { %2400 = vst.msk [vmem:[%s5070_s7 + $0x110] sm:$0xff] %vm2365_vm0, %v2291_v35  ;;  %2249 = vmatmul.bf16.gmra.mxu1 %v2105_v34 }
 0x367   :  { %2324 = vmatmul.bf16.gmra.mxu3 %v2120_v61 }
 0x368   :  { %v2212_v13 = vpop.f32.mrf.mxu1 }
 0x369   :  { %v2213_v53 = vadd.f32 %v4711_v25, %v2212_v13 }
 0x36a   :  { %v1924_v29 = vpop.f32.mrf.mxu0 }
 0x36b   :  { %v1925_v12 = vadd.f32 %v4702_v5, %v1924_v29  ;;  %2369 = vst.msk [vmem:[%s5070_s7 + $0x18] sm:$0xff] %vm2365_vm0, %v2213_v53  ;;  %v2292_v45 = vpop.f32.mrf.mxu3  ;;  %v2813_v40 = vpop.eup %2812 }
 0x36c   :  { %v2293_v62 = vadd.f32 %v4711_v25, %v2292_v45  ;;  %v1999_v49 = vpop.f32.mrf.mxu2 }
 0x36d   :  { %2814 = vtanh.f32 %v1925_v12  ;;  %v2000_v38 = vadd.f32 %v4702_v5, %v1999_v49 }
 0x36e   :  { %2816 = vtanh.f32 %v1998_v4  ;;  %2401 = vst.msk [vmem:[%s5070_s7 + $0x118] sm:$0xff] %vm2365_vm0, %v2293_v62 }
 0x36f   :  { %2818 = vtanh.f32 %v2000_v38 }
 0x372   :  { %v1927_v44 = vpop.f32.mrf.mxu0  ;;  %v2215_v37 = vpop.f32.mrf.mxu1 }
 0x373   :  { %v2815_v51 = vpop.eup %2814  ;;  %v2216_v23 = vadd.f32 %v4711_v25, %v2215_v37  ;;  %v1928_v15 = vadd.f32 %v4702_v5, %v1927_v44 }
 0x374   :  { %v2106_v42 = vpack.c.bf16 %v2815_v51, %v2813_v40  ;;  %v2817_v43 = vpop.eup %2816 }
 0x375   :  { %v2819_v59 = vpop.eup %2818  ;;  %2370 = vst.msk [vmem:[%s5070_s7 + $0x20] sm:$0xff] %vm2365_vm0, %v2216_v23  ;;  %v2295_v24 = vpop.f32.mrf.mxu3  ;;  %2820 = vtanh.f32 %v1928_v15 }
 0x376   :  { %2254 = vmatmul.bf16.gmra.mxu1 %v2106_v42  ;;  %v2296_v19 = vadd.f32 %v4711_v25, %v2295_v24  ;;  %v2121_v10 = vpack.c.bf16 %v2819_v59, %v2817_v43 }
 0x377   :  { %v2002_v22 = vpop.f32.mrf.mxu2 }
 0x378   :  { %2402 = vst.msk [vmem:[%s5070_s7 + $0x120] sm:$0xff] %vm2365_vm0, %v2296_v19  ;;  %2329 = vmatmul.bf16.gmra.mxu3 %v2121_v10  ;;  %v2003_v6 = vadd.f32 %v4702_v5, %v2002_v22 }
 0x37a   :  { %v1929_v11 = vpop.f32.mrf.mxu0  ;;  %v2217_v1 = vpop.f32.mrf.mxu1 }
 0x37b   :  { %v1930_v14 = vadd.f32 %v4702_v5, %v1929_v11  ;;  %v2218_v20 = vadd.f32 %v4711_v25, %v2217_v1  ;;  %v2821_v39 = vpop.eup %2820 }
 0x37d   :  { %2822 = vtanh.f32 %v1930_v14  ;;  %2371 = vst.msk [vmem:[%s5070_s7 + $0x28] sm:$0xff] %vm2365_vm0, %v2218_v20  ;;  %v2297_v28 = vpop.f32.mrf.mxu3 }
 0x37e   :  { %v2298_v50 = vadd.f32 %v4711_v25, %v2297_v28  ;;  %2824 = vtanh.f32 %v2003_v6 }
 0x37f   :  { %v2004_v9 = vpop.f32.mrf.mxu2 }
 0x380   :  { %v2005_v8 = vadd.f32 %v4702_v5, %v2004_v9  ;;  %2403 = vst.msk [vmem:[%s5070_s7 + $0x128] sm:$0xff] %vm2365_vm0, %v2298_v50 }
 0x382   :  { %v1932_v57 = vpop.f32.mrf.mxu0  ;;  %2826 = vtanh.f32 %v2005_v8  ;;  %v2220_v30 = vpop.f32.mrf.mxu1 }
 0x383   :  { %v2823_v33 = vpop.eup %2822  ;;  %v2221_v7 = vadd.f32 %v4711_v25, %v2220_v30  ;;  %v1933_v0 = vadd.f32 %v4702_v5, %v1932_v57 }
 0x384   :  { %v2107_v58 = vpack.c.bf16 %v2823_v33, %v2821_v39  ;;  %v2825_v3 = vpop.eup %2824 }
 0x385   :  { %2372 = vst.msk [vmem:[%s5070_s7 + $0x30] sm:$0xff] %vm2365_vm0, %v2221_v7  ;;  %2828 = vtanh.f32 %v1933_v0 }
 0x386   :  { %2259 = vmatmul.bf16.gmra.mxu1 %v2107_v58 }
 0x388   :  { %v2827_v55 = vpop.eup %2826 }
 0x389   :  { %v2007_v2 = vpop.f32.mrf.mxu2  ;;  %v2122_v21 = vpack.c.bf16 %v2827_v55, %v2825_v3 }
 0x38a   :  { %v1934_v31 = vpop.f32.mrf.mxu0  ;;  %v2222_v41 = vpop.f32.mrf.mxu1  ;;  %v2008_v46 = vadd.f32 %v4702_v5, %v2007_v2 }
 0x38b   :  { %v1935_v18 = vadd.f32 %v4702_v5, %v1934_v31  ;;  %v2223_v54 = vadd.f32 %v4711_v25, %v2222_v41  ;;  %2334 = vmatmul.bf16.gmra.mxu3 %v2122_v21  ;;  %v2829_v60 = vpop.eup %2828 }
 0x38d   :  { %2830 = vtanh.f32 %v1935_v18  ;;  %2373 = vst.msk [vmem:[%s5070_s7 + $0x38] sm:$0xff] %vm2365_vm0, %v2223_v54 }
 0x38e   :  { %2832 = vtanh.f32 %v2008_v46 }
 0x391   :  { %v2300_v63 = vpop.f32.mrf.mxu3  ;;  %v2009_v16 = vpop.f32.mrf.mxu2 }
 0x392   :  { %v1937_v48 = vpop.f32.mrf.mxu0  ;;  %v2301_v32 = vadd.f32 %v4711_v25, %v2300_v63  ;;  %v2225_v36 = vpop.f32.mrf.mxu1  ;;  %v2010_v27 = vadd.f32 %v4702_v5, %v2009_v16 }
 0x393   :  { %v2831_v52 = vpop.eup %2830  ;;  %v2226_v26 = vadd.f32 %v4711_v25, %v2225_v36  ;;  %v1938_v34 = vadd.f32 %v4702_v5, %v1937_v48 }
 0x394   :  { %v2108_v47 = vpack.c.bf16 %v2831_v52, %v2829_v60  ;;  %2404 = vst.msk [vmem:[%s5070_s7 + $0x130] sm:$0xff] %vm2365_vm0, %v2301_v32  ;;  %2834 = vtanh.f32 %v2010_v27  ;;  %v2833_v61 = vpop.eup %2832 }
 0x395   :  { %2374 = vst.msk [vmem:[%s5070_s7 + $0x40] sm:$0xff] %vm2365_vm0, %v2226_v26  ;;  %2836 = vtanh.f32 %v1938_v34 }
 0x396   :  { %2264 = vmatmul.bf16.gmra.mxu1 %v2108_v47 }
 0x399   :  { %v2302_v35 = vpop.f32.mrf.mxu3 }
 0x39a   :  { %v1939_v56 = vpop.f32.mrf.mxu0  ;;  %v2303_v17 = vadd.f32 %v4711_v25, %v2302_v35  ;;  %v2227_v53 = vpop.f32.mrf.mxu1 }
 0x39b   :  { %v1940_v13 = vadd.f32 %v4702_v5, %v1939_v56  ;;  %v2835_v29 = vpop.eup %2834  ;;  %v2228_v4 = vadd.f32 %v4711_v25, %v2227_v53  ;;  %v2012_v12 = vpop.f32.mrf.mxu2 }
 0x39c   :  { %2405 = vst.msk [vmem:[%s5070_s7 + $0x138] sm:$0xff] %vm2365_vm0, %v2303_v17  ;;  %v2123_v45 = vpack.c.bf16 %v2835_v29, %v2833_v61  ;;  %v2837_v62 = vpop.eup %2836  ;;  %v2013_v49 = vadd.f32 %v4702_v5, %v2012_v12 }
 0x39d   :  { %2838 = vtanh.f32 %v1940_v13  ;;  %2375 = vst.msk [vmem:[%s5070_s7 + $0x48] sm:$0xff] %vm2365_vm0, %v2228_v4 }
 0x39e   :  { %2339 = vmatmul.bf16.gmra.mxu3 %v2123_v45  ;;  %2840 = vtanh.f32 %v2013_v49 }
 0x3a2   :  { %v1942_v38 = vpop.f32.mrf.mxu0  ;;  %v2305_v40 = vpop.f32.mrf.mxu3 }
 0x3a3   :  { %v2839_v44 = vpop.eup %2838  ;;  %v2230_v51 = vpop.f32.mrf.mxu1  ;;  %v2306_v37 = vadd.f32 %v4711_v25, %v2305_v40  ;;  %v1943_v24 = vadd.f32 %v4702_v5, %v1942_v38 }
 0x3a4   :  { %v2231_v23 = vadd.f32 %v4711_v25, %v2230_v51  ;;  %v2014_v42 = vpop.f32.mrf.mxu2  ;;  %v2109_v43 = vpack.c.bf16 %v2839_v44, %v2837_v62  ;;  %v2841_v14 = vpop.eup %2840 }
 0x3a5   :  { %2406 = vst.msk [vmem:[%s5070_s7 + $0x140] sm:$0xff] %vm2365_vm0, %v2306_v37  ;;  %v2015_v59 = vadd.f32 %v4702_v5, %v2014_v42 }
 0x3a6   :  { %2376 = vst.msk [vmem:[%s5070_s7 + $0x50] sm:$0xff] %vm2365_vm0, %v2231_v23  ;;  %2269 = vmatmul.bf16.gmra.mxu1 %v2109_v43 }
 0x3a7   :  { %2842 = vtanh.f32 %v2015_v59 }
 0x3a8   :  { %2844 = vtanh.f32 %v1943_v24 }
 0x3aa   :  { %v1944_v19 = vpop.f32.mrf.mxu0  ;;  %v2307_v10 = vpop.f32.mrf.mxu3 }
 0x3ab   :  { %v1945_v15 = vadd.f32 %v4702_v5, %v1944_v19  ;;  %v2232_v22 = vpop.f32.mrf.mxu1  ;;  %v2308_v11 = vadd.f32 %v4711_v25, %v2307_v10 }
 0x3ac   :  { %v2233_v1 = vadd.f32 %v4711_v25, %v2232_v22 }
 0x3ad   :  { %v2843_v20 = vpop.eup %2842  ;;  %2846 = vtanh.f32 %v1945_v15  ;;  %2407 = vst.msk [vmem:[%s5070_s7 + $0x148] sm:$0xff] %vm2365_vm0, %v2308_v11  ;;  %v2017_v6 = vpop.f32.mrf.mxu2 }
 0x3ae   :  { %2377 = vst.msk [vmem:[%s5070_s7 + $0x58] sm:$0xff] %vm2365_vm0, %v2233_v1  ;;  %v2124_v28 = vpack.c.bf16 %v2843_v20, %v2841_v14  ;;  %v2845_v50 = vpop.eup %2844  ;;  %v2018_v8 = vadd.f32 %v4702_v5, %v2017_v6 }
 0x3b0   :  { %2344 = vmatmul.bf16.gmra.mxu3 %v2124_v28  ;;  %2848 = vtanh.f32 %v2018_v8 }
 0x3b3   :  { %v2847_v9 = vpop.eup %2846  ;;  %v2235_v39 = vpop.f32.mrf.mxu1 }
 0x3b4   :  { %v2310_v57 = vpop.f32.mrf.mxu3  ;;  %v2110_v33 = vpack.c.bf16 %v2847_v9, %v2845_v50  ;;  %v2236_v30 = vadd.f32 %v4711_v25, %v2235_v39 }
 0x3b5   :  { %v2311_v7 = vadd.f32 %v4711_v25, %v2310_v57  ;;  %v2019_v58 = vpop.f32.mrf.mxu2 }
 0x3b6   :  { %2378 = vst.msk [vmem:[%s5070_s7 + $0x60] sm:$0xff] %vm2365_vm0, %v2236_v30  ;;  %v2020_v3 = vadd.f32 %v4702_v5, %v2019_v58  ;;  %2274 = vmatmul.bf16.gmra.mxu1 %v2110_v33  ;;  %v2849_v21 = vpop.eup %2848 }
 0x3b7   :  { %2408 = vst.msk [vmem:[%s5070_s7 + $0x150] sm:$0xff] %vm2365_vm0, %v2311_v7 }
 0x3b8   :  { %2850 = vtanh.f32 %v2020_v3 }
 0x3bb   :  { %v2237_v0 = vpop.f32.mrf.mxu1 }
 0x3bc   :  { %v2312_v55 = vpop.f32.mrf.mxu3  ;;  %v2238_v31 = vadd.f32 %v4711_v25, %v2237_v0 }
 0x3bd   :  { %v2313_v2 = vadd.f32 %v4711_v25, %v2312_v55 }
 0x3be   :  { %v2851_v18 = vpop.eup %2850  ;;  %2379 = vst.msk [vmem:[%s5070_s7 + $0x68] sm:$0xff] %vm2365_vm0, %v2238_v31 }
 0x3bf   :  { %2409 = vst.msk [vmem:[%s5070_s7 + $0x158] sm:$0xff] %vm2365_vm0, %v2313_v2  ;;  %v2022_v41 = vpop.f32.mrf.mxu2  ;;  %v2125_v54 = vpack.c.bf16 %v2851_v18, %v2849_v21 }
 0x3c0   :  { %v2023_v63 = vadd.f32 %v4702_v5, %v2022_v41 }
 0x3c1   :  { %2349 = vmatmul.bf16.gmra.mxu3 %v2125_v54 }
 0x3c2   :  { %2852 = vtanh.f32 %v2023_v63 }
 0x3c3   :  { %v2240_v46 = vpop.f32.mrf.mxu1 }
 0x3c4   :  { %v2241_v60 = vadd.f32 %v4711_v25, %v2240_v46 }
 0x3c5   :  { %v2315_v48 = vpop.f32.mrf.mxu3 }
 0x3c6   :  { %2380 = vst.msk [vmem:[%s5070_s7 + $0x70] sm:$0xff] %vm2365_vm0, %v2241_v60  ;;  %v2316_v52 = vadd.f32 %v4711_v25, %v2315_v48 }
 0x3c7   :  { %v2024_v32 = vpop.f32.mrf.mxu2 }
 0x3c8   :  { %2410 = vst.msk [vmem:[%s5070_s7 + $0x160] sm:$0xff] %vm2365_vm0, %v2316_v52  ;;  %v2025_v16 = vadd.f32 %v4702_v5, %v2024_v32  ;;  %v2853_v34 = vpop.eup %2852 }
 0x3ca   :  { %2854 = vtanh.f32 %v2025_v16 }
 0x3cb   :  { %v2242_v36 = vpop.f32.mrf.mxu1 }
 0x3cc   :  { %v2243_v27 = vadd.f32 %v4711_v25, %v2242_v36 }
 0x3cd   :  { %v2317_v26 = vpop.f32.mrf.mxu3 }
 0x3ce   :  { %2381 = vst.msk [vmem:[%s5070_s7 + $0x78] sm:$0xff] %vm2365_vm0, %v2243_v27  ;;  %v2318_v47 = vadd.f32 %v4711_v25, %v2317_v26 }
 0x3d0   :  { %v2855_v35 = vpop.eup %2854  ;;  %2411 = vst.msk [vmem:[%s5070_s7 + $0x168] sm:$0xff] %vm2365_vm0, %v2318_v47 }
 0x3d1   :  { %v2027_v56 = vpop.f32.mrf.mxu2  ;;  %v2126_v61 = vpack.c.bf16 %v2855_v35, %v2853_v34 }
 0x3d2   :  { %v2028_v29 = vadd.f32 %v4702_v5, %v2027_v56 }
 0x3d3   :  { %v2245_v17 = vpop.f32.mrf.mxu1  ;;  %2354 = vmatmul.bf16.gmra.mxu3 %v2126_v61 }
 0x3d4   :  { %v1947_v13 = vpop.f32.mrf.mxu0  ;;  %v2246_v53 = vadd.f32 %v4711_v25, %v2245_v17  ;;  %2856 = vtanh.f32 %v2028_v29 }
 0x3d5   :  { %v1948_v45 = vadd.f32 %v4702_v5, %v1947_v13 }
 0x3d6   :  { %2382 = vst.msk [vmem:[%s5070_s7 + $0x80] sm:$0xff] %vm2365_vm0, %v2246_v53 }
 0x3d7   :  { %v2320_v4 = vpop.f32.mrf.mxu3 }
 0x3d8   :  { %v2321_v12 = vadd.f32 %v4711_v25, %v2320_v4 }
 0x3d9   :  { %v2029_v62 = vpop.f32.mrf.mxu2 }
 0x3da   :  { %2412 = vst.msk [vmem:[%s5070_s7 + $0x170] sm:$0xff] %vm2365_vm0, %v2321_v12  ;;  %v2030_v49 = vadd.f32 %v4702_v5, %v2029_v62  ;;  %v2857_v42 = vpop.eup %2856 }
 0x3db   :  { %v2247_v38 = vpop.f32.mrf.mxu1 }
 0x3dc   :  { %v1949_v40 = vpop.f32.mrf.mxu0  ;;  %2858 = vtanh.f32 %v2030_v49  ;;  %v2248_v44 = vadd.f32 %v4711_v25, %v2247_v38 }
 0x3dd   :  { %v1950_v51 = vadd.f32 %v4702_v5, %v1949_v40  ;;  %2860 = vtanh.f32 %v1948_v45 }
 0x3de   :  { %2383 = vst.msk [vmem:[%s5070_s7 + $0x88] sm:$0xff] %vm2365_vm0, %v2248_v44 }
 0x3df   :  { %2862 = vtanh.f32 %v1950_v51  ;;  %v2322_v37 = vpop.f32.mrf.mxu3 }
 0x3e0   :  { %v2323_v23 = vadd.f32 %v4711_v25, %v2322_v37 }
 0x3e2   :  { %v2859_v43 = vpop.eup %2858  ;;  %2413 = vst.msk [vmem:[%s5070_s7 + $0x178] sm:$0xff] %vm2365_vm0, %v2323_v23 }
 0x3e3   :  { %v2861_v59 = vpop.eup %2860  ;;  %v2250_v24 = vpop.f32.mrf.mxu1  ;;  %v2127_v5 = vpack.c.bf16 %v2859_v43, %v2857_v42 }
 0x3e4   :  { %v2251_v10 = vadd.f32 %v4711_v25, %v2250_v24 }
 0x3e5   :  { %v2863_v19 = vpop.eup %2862  ;;  %2359 = vmatmul.bf16.gmra.mxu3 %v2127_v5 }
 0x3e6   :  { %v2111_v15 = vpack.c.bf16 %v2863_v19, %v2861_v59  ;;  %2384 = vst.msk [vmem:[%s5070_s7 + $0x90] sm:$0xff] %vm2365_vm0, %v2251_v10 }
 0x3e8   :  { %2279 = vmatmul.bf16.gmra.mxu1 %v2111_v15 }
 0x3ea   :  { %v2325_v22 = vpop.f32.mrf.mxu3 }
 0x3eb   :  { %v2326_v11 = vadd.f32 %v4711_v25, %v2325_v22  ;;  %v2252_v14 = vpop.f32.mrf.mxu1 }
 0x3ec   :  { %v2253_v1 = vadd.f32 %v4711_v25, %v2252_v14 }
 0x3ed   :  { %2414 = vst.msk [vmem:[%s5070_s7 + $0x180] sm:$0xff] %vm2365_vm0, %v2326_v11 }
 0x3ee   :  { %2385 = vst.msk [vmem:[%s5070_s7 + $0x98] sm:$0xff] %vm2365_vm0, %v2253_v1 }
 0x3f2   :  { %v2327_v20 = vpop.f32.mrf.mxu3 }
 0x3f3   :  { %v2328_v6 = vadd.f32 %v4711_v25, %v2327_v20  ;;  %v2255_v28 = vpop.f32.mrf.mxu1 }
 0x3f4   :  { %v2256_v50 = vadd.f32 %v4711_v25, %v2255_v28 }
 0x3f5   :  { %2415 = vst.msk [vmem:[%s5070_s7 + $0x188] sm:$0xff] %vm2365_vm0, %v2328_v6 }
 0x3f6   :  { %2386 = vst.msk [vmem:[%s5070_s7 + $0xa0] sm:$0xff] %vm2365_vm0, %v2256_v50 }
 0x3fb   :  { %v2257_v9 = vpop.f32.mrf.mxu1  ;;  %v2330_v8 = vpop.f32.mrf.mxu3 }
 0x3fc   :  { %v2258_v39 = vadd.f32 %v4711_v25, %v2257_v9  ;;  %v2331_v57 = vadd.f32 %v4711_v25, %v2330_v8 }
 0x3fe   :  { %2387 = vst.msk [vmem:[%s5070_s7 + $0xa8] sm:$0xff] %vm2365_vm0, %v2258_v39 }
 0x3ff   :  { %2416 = vst.msk [vmem:[%s5070_s7 + $0x190] sm:$0xff] %vm2365_vm0, %v2331_v57 }
 0x403   :  { %v2260_v33 = vpop.f32.mrf.mxu1  ;;  %v2332_v30 = vpop.f32.mrf.mxu3 }
 0x404   :  { %v2261_v7 = vadd.f32 %v4711_v25, %v2260_v33  ;;  %v2333_v58 = vadd.f32 %v4711_v25, %v2332_v30 }
 0x406   :  { %2388 = vst.msk [vmem:[%s5070_s7 + $0xb0] sm:$0xff] %vm2365_vm0, %v2261_v7 }
 0x407   :  { %2417 = vst.msk [vmem:[%s5070_s7 + $0x198] sm:$0xff] %vm2365_vm0, %v2333_v58 }
 0x40b   :  { %v2262_v3 = vpop.f32.mrf.mxu1 }
 0x40c   :  { %v2263_v0 = vadd.f32 %v4711_v25, %v2262_v3 }
 0x40e   :  { %2389 = vst.msk [vmem:[%s5070_s7 + $0xb8] sm:$0xff] %vm2365_vm0, %v2263_v0  ;;  %v2335_v55 = vpop.f32.mrf.mxu3 }
 0x40f   :  { %v2336_v31 = vadd.f32 %v4711_v25, %v2335_v55 }
 0x411   :  { %2418 = vst.msk [vmem:[%s5070_s7 + $0x1a0] sm:$0xff] %vm2365_vm0, %v2336_v31 }
 0x413   :  { %v2265_v2 = vpop.f32.mrf.mxu1 }
 0x414   :  { %v2266_v21 = vadd.f32 %v4711_v25, %v2265_v2 }
 0x416   :  { %2390 = vst.msk [vmem:[%s5070_s7 + $0xc0] sm:$0xff] %vm2365_vm0, %v2266_v21  ;;  %v2337_v18 = vpop.f32.mrf.mxu3 }
 0x417   :  { %v2338_v41 = vadd.f32 %v4711_v25, %v2337_v18 }
 0x419   :  { %2419 = vst.msk [vmem:[%s5070_s7 + $0x1a8] sm:$0xff] %vm2365_vm0, %v2338_v41 }
 0x41b   :  { %v2267_v54 = vpop.f32.mrf.mxu1 }
 0x41c   :  { %v2268_v46 = vadd.f32 %v4711_v25, %v2267_v54 }
 0x41e   :  { %2391 = vst.msk [vmem:[%s5070_s7 + $0xc8] sm:$0xff] %vm2365_vm0, %v2268_v46 }
 0x421   :  { %v2340_v60 = vpop.f32.mrf.mxu3 }
 0x422   :  { %v2341_v63 = vadd.f32 %v4711_v25, %v2340_v60 }
 0x423   :  { %v2270_v48 = vpop.f32.mrf.mxu1 }
 0x424   :  { %2420 = vst.msk [vmem:[%s5070_s7 + $0x1b0] sm:$0xff] %vm2365_vm0, %v2341_v63  ;;  %v2271_v52 = vadd.f32 %v4711_v25, %v2270_v48 }
 0x426   :  { %2392 = vst.msk [vmem:[%s5070_s7 + $0xd0] sm:$0xff] %vm2365_vm0, %v2271_v52 }
 0x429   :  { %v2342_v32 = vpop.f32.mrf.mxu3 }
 0x42a   :  { %v2343_v16 = vadd.f32 %v4711_v25, %v2342_v32 }
 0x42b   :  { %v2272_v36 = vpop.f32.mrf.mxu1 }
 0x42c   :  { %2421 = vst.msk [vmem:[%s5070_s7 + $0x1b8] sm:$0xff] %vm2365_vm0, %v2343_v16  ;;  %v2273_v27 = vadd.f32 %v4711_v25, %v2272_v36 }
 0x42e   :  { %2393 = vst.msk [vmem:[%s5070_s7 + $0xd8] sm:$0xff] %vm2365_vm0, %v2273_v27 }
 0x433   :  { %v2345_v26 = vpop.f32.mrf.mxu3  ;;  %v2275_v47 = vpop.f32.mrf.mxu1 }
 0x434   :  { %v2346_v34 = vadd.f32 %v4711_v25, %v2345_v26  ;;  %v2276_v35 = vadd.f32 %v4711_v25, %v2275_v47 }
 0x436   :  { %2422 = vst.msk [vmem:[%s5070_s7 + $0x1c0] sm:$0xff] %vm2365_vm0, %v2346_v34 }
 0x437   :  { %2394 = vst.msk [vmem:[%s5070_s7 + $0xe0] sm:$0xff] %vm2365_vm0, %v2276_v35 }
 0x43b   :  { %v2347_v56 = vpop.f32.mrf.mxu3  ;;  %v2277_v61 = vpop.f32.mrf.mxu1 }
 0x43c   :  { %v2348_v17 = vadd.f32 %v4711_v25, %v2347_v56  ;;  %v2278_v13 = vadd.f32 %v4711_v25, %v2277_v61 }
 0x43e   :  { %2423 = vst.msk [vmem:[%s5070_s7 + $0x1c8] sm:$0xff] %vm2365_vm0, %v2348_v17 }
 0x43f   :  { %2395 = vst.msk [vmem:[%s5070_s7 + $0xe8] sm:$0xff] %vm2365_vm0, %v2278_v13 }
 0x444   :  { %v2350_v53 = vpop.f32.mrf.mxu3 }
 0x445   :  { %v2351_v29 = vadd.f32 %v4711_v25, %v2350_v53 }
 0x447   :  { %2424 = vst.msk [vmem:[%s5070_s7 + $0x1d0] sm:$0xff] %vm2365_vm0, %v2351_v29 }
 0x44c   :  { %v2352_v4 = vpop.f32.mrf.mxu3 }
 0x44d   :  { %v2353_v12 = vadd.f32 %v4711_v25, %v2352_v4 }
 0x44f   :  { %2425 = vst.msk [vmem:[%s5070_s7 + $0x1d8] sm:$0xff] %vm2365_vm0, %v2353_v12 }
 0x456   :  { %v2355_v45 = vpop.f32.mrf.mxu3 }
 0x457   :  { %v2356_v62 = vadd.f32 %v4711_v25, %v2355_v45 }
 0x459   :  { %2426 = vst.msk [vmem:[%s5070_s7 + $0x1e0] sm:$0xff] %vm2365_vm0, %v2356_v62 }
 0x45e   :  { %v2357_v49 = vpop.f32.mrf.mxu3 }
 0x45f   :  { %v2358_v38 = vadd.f32 %v4711_v25, %v2357_v49 }
 0x461   :  { %2427 = vst.msk [vmem:[%s5070_s7 + $0x1e8] sm:$0xff] %vm2365_vm0, %v2358_v38 }
 0x465   :  { %v2280_v40 = vpop.f32.mrf.mxu1 }
 0x466   :  { %v2281_v44 = vadd.f32 %v4711_v25, %v2280_v40 }
 0x468   :  { %2396 = vst.msk [vmem:[%s5070_s7 + $0xf0] sm:$0xff] %vm2365_vm0, %v2281_v44  ;;  %v2360_v51 = vpop.f32.mrf.mxu3 }
 0x469   :  { %v2361_v37 = vadd.f32 %v4711_v25, %v2360_v51 }
 0x46b   :  { %2428 = vst.msk [vmem:[%s5070_s7 + $0x1f0] sm:$0xff] %vm2365_vm0, %v2361_v37 }
 0x46d   :  { %v2282_v23 = vpop.f32.mrf.mxu1 }
 0x46e   :  { %v2283_v42 = vadd.f32 %v4711_v25, %v2282_v23 }
 0x470   :  { %2397 = vst.msk [vmem:[%s5070_s7 + $0xf8] sm:$0xff] %vm2365_vm0, %v2283_v42  ;;  %v2362_v43 = vpop.f32.mrf.mxu3 }
 0x471   :  { %v2363_v59 = vadd.f32 %v4711_v25, %v2362_v43 }
 0x473   :  { %2429 = vst.msk [vmem:[%s5070_s7 + $0x1f8] sm:$0xff] %vm2365_vm0, %v2363_v59 }

</bundles_post_ra>
